<compile_context>
chip_gen: v7x
topology: tpu7x:2x2x1
jax: 0.10.0
libtpu: 0.0.40
codegen_flags: <defaults>
</compile_context>

<pallas_src>
import math

import jax
import jax.numpy as jnp
import numpy as np
from jax.experimental import pallas as pl
from jax.experimental.pallas import tpu as pltpu

PI = math.pi  # torch.acos(torch.zeros(1)).item() * 2 == math.pi

_LANES = 384                      # 3 * 128: one full phase period, lane-dense
_MAX_ROWS_PER_BLOCK = 1024        # 1024 x 384 x 4B = 1.5 MB per data block
_PALLAS_MIN_BYTES = 1 << 20       # below this, plain XLA beats a Pallas launch


# ----------------------------------------------------------------------------
# Pallas kernel: one (TR, 384) row-block of one batch.
#   coef_ref : (8, 384)  rows 0..5 = [C0, C-1, C-2, C+1, C+2, Tv], rows 6,7 pad
#   x_ref    : (TR, 384) flattened points; lane 3n+k of a row is comp k of pt n
#   o_ref    : (TR, 384) rotated + translated points, same layout
#
# Math: out[3n+j] = sum_k R[j,k] * x[3n+k] + T[j]
#                 = C0[l]*x[l] + C-1[l]*x[l-1] + C-2[l]*x[l-2]
#                 + C+1[l]*x[l+1] + C+2[l]*x[l+2] + Tv[l]
# where the C/Tv rows are lane-periodic (period 3) and zero wherever a shift
# would cross a triple boundary, so the per-row roll wrap-around is always
# multiplied by 0 and never contaminates a valid output lane.
# ----------------------------------------------------------------------------
def houv_kernel(coef_ref, x_ref, o_ref):
    x = x_ref[...]                       # (TR, 384)
    lanes = x.shape[-1]                  # 384

    def crow(k):                         # (1, 384) coefficient row, broadcasts
        return coef_ref[k:k + 1, :]      # over the sublane/row dim

    # Accumulate one shifted term at a time so only ~one rolled temporary is
    # live at once (keeps Mosaic's VMEM temporaries small at 1.5 MB blocks).
    acc = crow(0) * x + crow(5)                                   # C0*x + T
    acc = acc + crow(1) * pltpu.roll(x, 1, axis=1)                # C-1 * x[l-1]
    acc = acc + crow(2) * pltpu.roll(x, 2, axis=1)                # C-2 * x[l-2]
    acc = acc + crow(3) * pltpu.roll(x, lanes - 1, axis=1)        # C+1 * x[l+1]
    acc = acc + crow(4) * pltpu.roll(x, lanes - 2, axis=1)        # C+2 * x[l+2]
    o_ref[...] = acc


# ----------------------------------------------------------------------------
# Wrapper-side helpers
# ----------------------------------------------------------------------------
_PHASE_MASKS = np.stack(
    [(np.arange(_LANES) % 3) == p for p in range(3)]).astype(np.float32)  # (3,384)


def _build_coef(R, T3):
    """R: (B,3,3), T3: (B,3) -> (B, 8, 384) lane-periodic coefficient rows.

    Row order: 0:C0 (shift 0), 1:C-1, 2:C-2, 3:C+1, 4:C+2, 5:Tv, 6-7: zeros.
    Cost is O(B*384) plain-XLA work -- negligible next to the point cloud.
    """
    m = jnp.asarray(_PHASE_MASKS)                      # (3, 384)
    B = R.shape[0]
    zero = jnp.zeros((B,), jnp.float32)

    def row(p0, p1, p2):                               # values at phase 0/1/2
        return p0[:, None] * m[0] + p1[:, None] * m[1] + p2[:, None] * m[2]

    c0 = row(R[:, 0, 0], R[:, 1, 1], R[:, 2, 2])       # coeff of x[l]
    cm1 = row(zero, R[:, 1, 0], R[:, 2, 1])            # coeff of x[l-1]
    cm2 = row(zero, zero, R[:, 2, 0])                  # coeff of x[l-2]
    cp1 = row(R[:, 0, 1], R[:, 1, 2], zero)            # coeff of x[l+1]
    cp2 = row(R[:, 0, 2], zero, zero)                  # coeff of x[l+2]
    tv = row(T3[:, 0], T3[:, 1], T3[:, 2])             # additive translation
    pad = jnp.zeros_like(tv)
    return jnp.stack([c0, cm1, cm2, cp1, cp2, tv, pad, pad], axis=1)  # (B,8,384)


def _rotate_translate_pallas(src3, R, T3, *, max_rows_per_block=_MAX_ROWS_PER_BLOCK):
    """src3: (B, N, 3) f32, R: (B,3,3), T3: (B,3) -> (B, N, 3) via Pallas."""
    assert max_rows_per_block % 8 == 0
    B, N, _ = src3.shape
    L = 3 * N
    Lpad = ((L + _LANES - 1) // _LANES) * _LANES       # multiple of 384
    Lr = Lpad // _LANES                                # 384-lane rows per batch

    x = src3.reshape(B, L).astype(jnp.float32)         # free, lane-dense view
    if Lpad != L:                                      # only when N % 128 != 0
        x = jnp.pad(x, ((0, 0), (0, Lpad - L)))
    x3 = x.reshape(B, Lr, _LANES)                      # free reshape

    coef = _build_coef(R.astype(jnp.float32), T3.astype(jnp.float32))  # (B,8,384)

    TR = Lr if Lr <= max_rows_per_block else max_rows_per_block
    grid_r = pl.cdiv(Lr, TR)

    out3 = pl.pallas_call(
        houv_kernel,
        out_shape=jax.ShapeDtypeStruct((B, Lr, _LANES), jnp.float32),
        grid=(B, grid_r),
        in_specs=[
            pl.BlockSpec((None, 8, _LANES), lambda bi, ri: (bi, 0, 0)),
            pl.BlockSpec((None, TR, _LANES), lambda bi, ri: (bi, ri, 0)),
        ],
        out_specs=pl.BlockSpec((None, TR, _LANES), lambda bi, ri: (bi, ri, 0)),
        compiler_params=pltpu.CompilerParams(
            dimension_semantics=("parallel", "parallel"),
            vmem_limit_bytes=32 * 1024 * 1024),
        cost_estimate=pl.CostEstimate(
            flops=10 * B * Lpad,
            transcendentals=0,
            bytes_accessed=(2 * B * Lpad + B * 8 * _LANES) * 4),
    )(coef, x3)

    out = out3.reshape(B, Lpad)
    if Lpad != L:
        out = out[:, :L]
    return out.reshape(B, N, 3)


# ----------------------------------------------------------------------------
# Glue: parameter-derived R / T (tiny 3x3 math, plain JAX).
# ----------------------------------------------------------------------------
def cd_rotation(angle, V):
    """angle: (B,1), V: (B,3) -> R: (B,3,3). Mirrors HOUV.cd_rotation
    (including its eps-free normalization)."""
    V = V / jnp.sqrt(jnp.sum(V * V, axis=1, keepdims=True))
    zero = jnp.zeros((V.shape[0],), V.dtype)
    A = jnp.stack(
        [
            jnp.stack([zero, -V[:, 2], V[:, 1]], axis=-1),
            jnp.stack([V[:, 2], zero, -V[:, 0]], axis=-1),
            jnp.stack([-V[:, 1], V[:, 0], zero], axis=-1),
        ],
        axis=1,
    )
    eye = jnp.eye(3, dtype=V.dtype)[None]
    return (eye + jnp.sin(angle)[:, :, None] * A
            + (1.0 - jnp.cos(angle))[:, :, None] * jnp.matmul(A, A))


def translation(tran, s):
    """tran: (B,3), s: (B,1) -> T: (B,1,3). Mirrors HOUV.translation."""
    tran = tran / jnp.sqrt(jnp.sum(tran * tran, axis=1, keepdims=True))
    return (tran * s)[:, None, :]


def houv_forward(src, params, angle_base, *,
                 min_pallas_bytes=_PALLAS_MIN_BYTES,
                 max_rows_per_block=_MAX_ROWS_PER_BLOCK):
    """src: (1, B, N, 3) f32 -> (src_temp (B,N,3), R (B,3,3), T (B,1,3))."""
    V_c, angle_c = params["V_c"], params["angle_c"]
    tran_c, tran_s = params["tran_c"], params["tran_s"]
    src3 = src[0].astype(jnp.float32)    # squeeze(0) -> (B, N, 3)
    B, N, _ = src3.shape

    angle = jnp.sin(angle_c * PI) * (PI / 8) + PI / 8 + angle_base * PI / 4
    R = cd_rotation(angle, V_c)                          # (B,3,3)
    s_eff = jnp.sin(tran_s * PI) * 0.125 + 0.125         # (B,1)
    T = translation(tran_c, s_eff)                       # (B,1,3)

    if src3.size * 4 < min_pallas_bytes:
        # Tiny problem: one-step Pallas grid + launch cost loses to plain XLA.
        src_temp = jnp.matmul(src3, jnp.swapaxes(R, 1, 2),
                              precision=jax.lax.Precision.HIGHEST) + T
    else:
        src_temp = _rotate_translate_pallas(
            src3, R, T[:, 0, :], max_rows_per_block=max_rows_per_block)
    return src_temp, R, T


def init_params(batch_size, key):
    """Deterministic init matching HOUV.__init__ shapes (synthetic weights)."""
    corners = []
    for x0 in (-1, 0, 1):
        for y0 in (-1, 0, 1):
            for z0 in (-1, 0, 1):
                if x0 == 0 and y0 == 0 and z0 == 0:
                    continue
                corners.append((x0, y0, z0))
    k0, k1, k2, k3 = jax.random.split(key, 4)
    vc = np.array(corners, dtype=np.float32)
    if batch_size <= vc.shape[0]:
        V_c = jnp.asarray(vc[:batch_size])
    else:
        extra = jax.random.normal(k0, (batch_size - vc.shape[0], 3), jnp.float32)
        V_c = jnp.concatenate([jnp.asarray(vc), extra], axis=0)
    return {
        "V_c": V_c,
        "angle_c": jax.random.normal(k1, (batch_size, 1), jnp.float32),
        "tran_c": jax.random.normal(k2, (batch_size, 3), jnp.float32),
        "tran_s": jax.random.normal(k3, (batch_size, 1), jnp.float32),
    }


if __name__ == "__main__":
    angle_base = 1.0
    key = jax.random.PRNGKey(0)

    test_cases = [
        # (B, N, houv_forward kwargs)
        (8, 16384, {}),                                   # natural Pallas path, N % 128 == 0
        (4, 1000, dict(min_pallas_bytes=0)),              # awkward N -> padded-lane path
        (2, 16000, dict(min_pallas_bytes=0,               # multi row-block grid with ragged tail
                        max_rows_per_block=64)),
        (4, 64, {}),                                      # tiny input -> XLA fallback path
    ]

    for B, N, kw in test_cases:
        key, pkey, skey = jax.random.split(key, 3)
        params = init_params(B, pkey)
        src = jax.random.normal(skey, (1, B, N, 3), jnp.float32)

        src_temp, R, T = houv_forward(src, params, angle_base, **kw)
        jax.block_until_ready((src_temp, R, T))

        # Pure-JAX reference for the kernelized hot path (exact f32 matmul).
        ref = jnp.matmul(src[0], jnp.swapaxes(R, 1, 2),
                         precision=jax.lax.Precision.HIGHEST) + T
        np.testing.assert_allclose(np.asarray(src_temp), np.asarray(ref),
                                   rtol=1e-5, atol=1e-5)
        assert src_temp.shape == (B, N, 3)
        assert R.shape == (B, 3, 3) and T.shape == (B, 1, 3)

    print("KERNEL_OK")
</pallas_src>

<mosaic_0001>
module attributes {stable_mosaic.version = 11 : i64} {
  func.func @houv_kernel(%arg0: i32, %arg1: i32, %arg2: memref<1x8x384xf32, #tpu.memory_space<vmem>>, %arg3: memref<1x128x384xf32, #tpu.memory_space<vmem>>, %arg4: memref<1x128x384xf32, #tpu.memory_space<vmem>>) attributes {dimension_semantics = [#tpu.dimension_semantics<parallel>, #tpu.dimension_semantics<parallel>], iteration_bounds = array<i64: 8, 1>, scalar_prefetch = 0 : i64, scratch_operands = 0 : i64, tpu.core_type = #tpu.core_type<tc>, window_params = [{transform_indices = @transform_0, window_bounds = array<i64: 1, 8, 384>}, {transform_indices = @transform_1, window_bounds = array<i64: 1, 128, 384>}, {transform_indices = @transform_2, window_bounds = array<i64: 1, 128, 384>}]} {
    %c0 = arith.constant 0 : index
    %c0_0 = arith.constant 0 : index
    %c0_1 = arith.constant 0 : index
    %0 = vector.load %arg3[%c0, %c0_0, %c0_1] : memref<1x128x384xf32, #tpu.memory_space<vmem>>, vector<1x128x384xf32>
    %1 = vector.shape_cast %0 : vector<1x128x384xf32> to vector<128x384xf32>
    %c0_2 = arith.constant 0 : index
    %c0_3 = arith.constant 0 : index
    %c0_4 = arith.constant 0 : index
    %2 = vector.load %arg2[%c0_2, %c0_3, %c0_4] : memref<1x8x384xf32, #tpu.memory_space<vmem>>, vector<1x1x384xf32>
    %3 = vector.shape_cast %2 : vector<1x1x384xf32> to vector<1x384xf32>
    %4 = vector.broadcast %3 : vector<1x384xf32> to vector<128x384xf32>
    %5 = arith.mulf %4, %1 : vector<128x384xf32>
    %c0_5 = arith.constant 0 : index
    %c5 = arith.constant 5 : index
    %c0_6 = arith.constant 0 : index
    %6 = vector.load %arg2[%c0_5, %c5, %c0_6] : memref<1x8x384xf32, #tpu.memory_space<vmem>>, vector<1x1x384xf32>
    %7 = vector.shape_cast %6 : vector<1x1x384xf32> to vector<1x384xf32>
    %8 = vector.broadcast %7 : vector<1x384xf32> to vector<128x384xf32>
    %9 = arith.addf %5, %8 : vector<128x384xf32>
    %c0_7 = arith.constant 0 : index
    %c1 = arith.constant 1 : index
    %c0_8 = arith.constant 0 : index
    %10 = vector.load %arg2[%c0_7, %c1, %c0_8] : memref<1x8x384xf32, #tpu.memory_space<vmem>>, vector<1x1x384xf32>
    %11 = vector.shape_cast %10 : vector<1x1x384xf32> to vector<1x384xf32>
    %c1_i32 = arith.constant 1 : i32
    %12 = tpu.dynamic_rotate %1 by %c1_i32 dim 1 : vector<128x384xf32>, i32 -> vector<128x384xf32>
    %13 = vector.broadcast %11 : vector<1x384xf32> to vector<128x384xf32>
    %14 = arith.mulf %13, %12 : vector<128x384xf32>
    %15 = arith.addf %9, %14 : vector<128x384xf32>
    %c0_9 = arith.constant 0 : index
    %c2 = arith.constant 2 : index
    %c0_10 = arith.constant 0 : index
    %16 = vector.load %arg2[%c0_9, %c2, %c0_10] : memref<1x8x384xf32, #tpu.memory_space<vmem>>, vector<1x1x384xf32>
    %17 = vector.shape_cast %16 : vector<1x1x384xf32> to vector<1x384xf32>
    %c2_i32 = arith.constant 2 : i32
    %18 = tpu.dynamic_rotate %1 by %c2_i32 dim 1 : vector<128x384xf32>, i32 -> vector<128x384xf32>
    %19 = vector.broadcast %17 : vector<1x384xf32> to vector<128x384xf32>
    %20 = arith.mulf %19, %18 : vector<128x384xf32>
    %21 = arith.addf %15, %20 : vector<128x384xf32>
    %c0_11 = arith.constant 0 : index
    %c3 = arith.constant 3 : index
    %c0_12 = arith.constant 0 : index
    %22 = vector.load %arg2[%c0_11, %c3, %c0_12] : memref<1x8x384xf32, #tpu.memory_space<vmem>>, vector<1x1x384xf32>
    %23 = vector.shape_cast %22 : vector<1x1x384xf32> to vector<1x384xf32>
    %c383_i32 = arith.constant 383 : i32
    %24 = tpu.dynamic_rotate %1 by %c383_i32 dim 1 : vector<128x384xf32>, i32 -> vector<128x384xf32>
    %25 = vector.broadcast %23 : vector<1x384xf32> to vector<128x384xf32>
    %26 = arith.mulf %25, %24 : vector<128x384xf32>
    %27 = arith.addf %21, %26 : vector<128x384xf32>
    %c0_13 = arith.constant 0 : index
    %c4 = arith.constant 4 : index
    %c0_14 = arith.constant 0 : index
    %28 = vector.load %arg2[%c0_13, %c4, %c0_14] : memref<1x8x384xf32, #tpu.memory_space<vmem>>, vector<1x1x384xf32>
    %29 = vector.shape_cast %28 : vector<1x1x384xf32> to vector<1x384xf32>
    %c382_i32 = arith.constant 382 : i32
    %30 = tpu.dynamic_rotate %1 by %c382_i32 dim 1 : vector<128x384xf32>, i32 -> vector<128x384xf32>
    %31 = vector.broadcast %29 : vector<1x384xf32> to vector<128x384xf32>
    %32 = arith.mulf %31, %30 : vector<128x384xf32>
    %33 = arith.addf %27, %32 : vector<128x384xf32>
    %c0_15 = arith.constant 0 : index
    %c0_16 = arith.constant 0 : index
    %c0_17 = arith.constant 0 : index
    %34 = vector.load %arg4[%c0_15, %c0_16, %c0_17] : memref<1x128x384xf32, #tpu.memory_space<vmem>>, vector<1x128x384xf32>
    %35 = vector.shape_cast %34 : vector<1x128x384xf32> to vector<128x384xf32>
    %36 = vector.shape_cast %33 : vector<128x384xf32> to vector<1x128x384xf32>
    tpu.vector_store %arg4[%c0_15, %c0_16, %c0_17], %36 {strides = array<i32>} : memref<1x128x384xf32, #tpu.memory_space<vmem>>, vector<1x128x384xf32>,
    return
  }
  func.func @transform_0(%arg0: i32, %arg1: i32) -> (i32, i32, i32) {
    %c0_i32 = arith.constant 0 : i32
    %c0_i32_0 = arith.constant 0 : i32
    %c0_i32_1 = arith.constant 0 : i32
    return %arg0, %c0_i32, %c0_i32_0 : i32, i32, i32
  }
  func.func @transform_1(%arg0: i32, %arg1: i32) -> (i32, i32, i32) {
    %c0_i32 = arith.constant 0 : i32
    %c0_i32_0 = arith.constant 0 : i32
    return %arg0, %arg1, %c0_i32 : i32, i32, i32
  }
  func.func @transform_2(%arg0: i32, %arg1: i32) -> (i32, i32, i32) {
    %c0_i32 = arith.constant 0 : i32
    %c0_i32_0 = arith.constant 0 : i32
    return %arg0, %arg1, %c0_i32 : i32, i32, i32
  }
}

</mosaic_0001>

<bundles_post_ra>
// kernel: tpu_custom_call.1
= control target key start
LH: loop header
LB: loop body
LE: loop exit
PB: predicated region body
PF: predicated region fallthrough
CT: control target
= control target key end

     0   :  { %7 = vsyncpa [#allocation3], 0  ;;  %s4691_s0 = inlined_call_operand.hbm [shape: f32[8,8,384], index: 0, kind: input, shape index: {}]   ;;  %s4692_s1 = inlined_call_operand.hbm [shape: f32[8,128,384], index: 1, kind: input, shape index: {}]   ;;  %s4693_s2 = inlined_call_operand.hbm [shape: f32[8,128,384], index: 2, kind: output, shape index: {}]  }
   0x1   :  { %9 = vsyncpa [#allocation3 + $0x1], 0 }
   0x2   :  { %10 = vsyncpa [#allocation6], 0 }
   0x3   :  { %12 = vsyncpa [#allocation6 + $0x1], 0 }
   0x4   :  { %13 = vsyncpa [#allocation4], 0 }
   0x5   :  { %15 = vsyncpa [#allocation4 + $0x1], 0  ;;  %s1886_s9 = smov 0   ;;  %s1888_s10 = smov 0  }
   0x6   :  { %s1890_s11 = smov 0   ;;  %s1892_s12 = smov 0  }
   0x7   :  { %s1894_s13 = smov 0   ;;  %s1896_s14 = smov 0  }
   0x8 LB: > { %s1613_s15 = sadd.s32 4294967295, %s1858_s14   ;;  %s1614_s16 = sadd.s32 4294967294, %s1858_s14   ;;  %s1858_s14 = sphi %s1896_s14, %s21_s14   ;;  %s1854_s13 = sphi %s1894_s13, %s5473_s13   ;;  %s1850_s12 = sphi %s1892_s12, %s5472_s12   ;;  %s1846_s11 = sphi %s1890_s11, %s5471_s11   ;;  %s1842_s10 = sphi %s1888_s10, %s5470_s10   ;;  %s1838_s9 = sphi %s1886_s9, %s5469_s9  }
   0x9   : > { %s33_s17 = sadd.s32 1, %s1854_s13  ;;  %s40_s18 = sadd.s32 1, %s1846_s11 }
   0xa   : > { %p35_p0 = scmp.ge.s32.totalorder %s33_s17, 8  ;;  %p47_p1 = scmp.ne.s32.totalorder %s1846_s11, %s1842_s10 }
   0xb   : > { %p48_p2 = scmp.eq.s32.totalorder %s1858_s14, 0  ;;  %p53_p3 = scmp.ne.s32.totalorder %s1842_s10, %s1838_s9 }
   0xc   : > { %s5475_s17 = smov (%p35_p0, %s33_s17), 0  ;;  %p54_p5 = scmp.eq.s32.totalorder %s1613_s15, 0 }
   0xd   : > { %p1927_p4 = por %p48_p2, %p47_p1  ;;  %s37_s20 = ssub.s32 %s1854_s13, %s5475_s17 }
   0xe   : > { %p107_p6 = scmp.eq.s32.totalorder %s1613_s15, 7  ;;  %p38_p7 = scmp.eq.s32.totalorder %s37_s20, 0 }
   0xf   : > { %p1933_p8 = por %p54_p5, %p53_p3  ;;  %p113_p10 = scmp.eq.s32.totalorder %s1614_s16, 7 }
  0x10   : > { %p1937_p9 = por %p107_p6, %p47_p1  ;;  %p1652_p12 = scmp.lt.s32.totalorder %s1858_s14, 8 }
  0x11   : > { %s4855_s21 = scalar_select %p1933_p8, 1, 0 }
  0x12   : > { %s4856_s22 = scalar_select %p1937_p9, 1, 0 }
  0x13   : > { %s1942_s23 = scalar_select %p38_p7, %s1846_s11, %s40_s18  }
  0x14   : > { %p1944_p11 = por %p113_p10, %p53_p3  ;;  %s1950_s25 = sand.u32 1, %s1846_s11  }
  0x15   : > { %s1628_s26 = smul.u32 24, %s1950_s25  ;;  %p1956_p13 = pnand %p1652_p12, %p1927_p4 }
  0x16   : > { %s4857_s24 = scalar_select %p1944_p11, 1, 0 }
  0x17   : > { %s1629_s27 = smul.u32 384, %s1854_s13  ;;  %s137_s4 = scalar_lea.vmem [#allocation2], %s1628_s26 }
  0x18   : > { %s145_s5 = sshll.u32 %s137_s4, 4  ;;  %s134_s6 = scalar_lea.sflag [#allocation3], %s1950_s25  ;;  %s1966_s5 = int_to_ptr.vmem [resolvable:$true] %s145_s5 }
  0x19   : > { %s1964_s3 = scalar_lea.hbm %s4691_s0, %s1629_s27  ;;  %p1714_p2 = pneg %p1956_p13 }
  0x1a   : > { %s1712_s7 = scalar_lea.hbm %s1964_s3, 384  ;;  %s1717_s16 = scalar_lea.hbm %s4691_s0, 3072 }
  0x1b   : > { %p1713_p1 = scmp.ne.s32.totalorder %s1964_s3, %s1712_s7  ;;  %p1718_p5 = scmp.lt.u32.totalorder %s1964_s3, %s4691_s0 }
  0x1c   : > { %p1719_p6 = scmp.lt.u32.totalorder %s1717_s16, %s1712_s7  ;;  %p1721_p10 = scmp.lt.u32.totalorder %s1712_s7, %s1964_s3 }
  0x1d   : > { %p1715_p3 = pnand %p1714_p2, %p1713_p1 }
  0x1e   : > { %p1720_p7 = por %p1719_p6, %p1718_p5 }
  0x1f   : > { %p1716_p4 = pneg %p1715_p3 }
  0x20   : > { %p1722_p12 = por %p1721_p10, %p1720_p7 }
  0x22   : > { %p1723_p0 = pnand %p1722_p12, %p1716_p4 }
  0x24   : > { %1726 = shalt.err (!%p1723_p0)
}
  0x25   : > { %s1727_s20 = scalar_lea.vmem %s1966_s5, 384  ;;  %s1860_s26 = smov [#allocation2]  }
  0x26   : > { %p1728_p1 = scmp.ne.s32.totalorder %s1966_s5, %s1727_s20  ;;  %s1732_s27 = sshll.u32 %s1860_s26, 4  ;;  %s1733_s27 = int_to_ptr.vmem [resolvable:$false] %s1732_s27 }
  0x27   : > { %s1734_s29 = scalar_lea.vmem %s1733_s27, 768  ;;  %p1735_p9 = scmp.lt.s32.totalorder %s1966_s5, %s1733_s27 }
  0x28   : > { %p1730_p3 = pnand %p1728_p1, %p1714_p2  ;;  %p1736_p5 = scmp.lt.s32.totalorder %s1734_s29, %s1727_s20 }
  0x2a   : > { %p1731_p11 = pneg %p1730_p3  ;;  %p1737_p6 = por %p1736_p5, %p1735_p9 }
  0x2c   : > { %p1738_p7 = pnand %p1737_p6, %p1731_p11 }
  0x2e   : > { %1741 = shalt.err (!%p1738_p7)
}
  0x2f   : > { %1644 = dma.hbm_to_vmem [thread:$0]  (!%p1956_p13), %s1964_s3, 384, %s1966_s5, %s134_s6  }
  0x30   : > { %p174_p0 = scmp.lt.s32.totalorder %s1858_s14, 9  ;;  %s1630_s30 = smul.u32 384, %s1950_s25 }
  0x31   : > { %p4859_p4 = scmp.ge.s32.totalorder %s1858_s14, 1  ;;  %s1631_s7 = smul.u32 6144, %s1854_s13 }
  0x32   : > { %s156_s18 = scalar_lea.vmem [#allocation5], %s1630_s30  ;;  %s153_s3 = scalar_lea.sflag [#allocation6], %s1950_s25 }
  0x33   : > { %p1998_p10 = pnand %p4859_p4, %p174_p0  ;;  %s2006_s16 = scalar_lea.hbm %s4692_s1, %s1631_s7 }
  0x34   : > { %s166_s19 = sshll.u32 %s156_s18, 4  ;;  %s1742_s5 = scalar_lea.hbm %s2006_s16, 6144  ;;  %s2008_s19 = int_to_ptr.vmem [resolvable:$true] %s166_s19 }
  0x35   : > { %p1743_p9 = scmp.ne.s32.totalorder %s2006_s16, %s1742_s5  ;;  %s1747_s26 = scalar_lea.hbm %s4692_s1, 49152 }
  0x36   : > { %p1748_p1 = scmp.lt.u32.totalorder %s2006_s16, %s4692_s1  ;;  %p1749_p3 = scmp.lt.u32.totalorder %s1747_s26, %s1742_s5 }
  0x37   : > { %p1745_p11 = pnand %p1743_p9, %p1714_p2  ;;  %p1751_p6 = scmp.lt.u32.totalorder %s1742_s5, %s2006_s16 }
  0x38   : > { %p1750_p5 = por %p1749_p3, %p1748_p1 }
  0x39   : > { %p1746_p12 = pneg %p1745_p11 }
  0x3a   : > { %p1752_p7 = por %p1751_p6, %p1750_p5 }
  0x3c   : > { %p1753_p0 = pnand %p1752_p7, %p1746_p12 }
  0x3e   : > { %1756 = shalt.err (!%p1753_p0)
}
  0x3f   : > { %s1757_s30 = scalar_lea.vmem %s2008_s19, 6144  ;;  %s1861_s7 = smov [#allocation5]  }
  0x40   : > { %p1758_p4 = scmp.ne.s32.totalorder %s2008_s19, %s1757_s30  ;;  %s1762_s8 = sshll.u32 %s1861_s7, 4  ;;  %s1763_s8 = int_to_ptr.vmem [resolvable:$false] %s1762_s8 }
  0x41   : > { %s1764_s15 = scalar_lea.vmem %s1763_s8, 12288  ;;  %p1765_p8 = scmp.lt.s32.totalorder %s2008_s19, %s1763_s8 }
  0x42   : > { %p1760_p9 = pnand %p1758_p4, %p1714_p2  ;;  %p1766_p1 = scmp.lt.s32.totalorder %s1764_s15, %s1757_s30 }
  0x44   : > { %p1761_p11 = pneg %p1760_p9  ;;  %p1767_p3 = por %p1766_p1, %p1765_p8 }
  0x46   : > { %p1768_p5 = pnand %p1767_p3, %p1761_p11 }
  0x48   : > { %1771 = shalt.err (!%p1768_p5)
}
  0x49   : > { %s1862_s18 = smov 384   ;;  %s1863_s5 = smov 24  }
  0x4a   : > { %1647 = dma.hbm_to_vmem [thread:$0]  (!%p1956_p13), %s2006_s16, 6144, %s2008_s19, %s153_s3, %s1862_s18, %s1862_s18, %s1863_s5  }
  0x4b   : > { %178 = sbr.rel (%p1998_p10) target bundleno = 631 (0x277), region = 28 }
  0x52   : > { %s2039_s6 = sand.u32 1, %s1842_s10   ;;  %p4861_p8 = scmp.ne.s32.totalorder %s4855_s21, 0 }
  0x53   : > { %s1632_s20 = smul.u32 24, %s2039_s6  ;;  %s181_s26 = scalar_lea.sflag [#allocation3], %s2039_s6 }
  0x55   : > { %s2043_s27 = scalar_lea.vmem [#allocation2], %s1632_s20 }
  0x56   : > { %1825 = dma.done.wait (%p4861_p8), %s181_s26, 384  }
  0x57   : > { %1827 = vsyncadd (%p4861_p8), %s181_s26, 4294966912  ;;  %s1633_s25 = smul.u32 384, %s2039_s6  ;;  %s190_s28 = scalar_lea.sflag [#allocation6], %s2039_s6 }
  0x59   : > { %s2053_s4 = scalar_lea.vmem [#allocation5], %s1633_s25 }
  0x5a   : > { %1829 = dma.done.wait (%p4861_p8), %s190_s28, 6144  }
  0x5b   : > { %1831 = vsyncadd (%p4861_p8), %s190_s28, 4294961152  ;;  %v2060_v0 = vld [vmem:[%s2053_s4 + $0x30] sm:$0xff]  ;;  %v2063_v1 = vld [vmem:[%s2053_s4] sm:$0xff]  ;;  %s1864_s16 = smov 1   ;;  %s1865_s21 = smov 2  }
  0x5c   : > { %406 = vrot.lane.b32.xlu1 %v2060_v0, %s1864_s16  ;;  %402 = vrot.lane.b32.xlu0 %v2063_v1, %s1864_s16  ;;  %v2070_v2 = vld [vmem:[%s2053_s4 + $0x48] sm:$0xff]  ;;  %v2073_v3 = vld [vmem:[%s2053_s4 + $0x18] sm:$0xff]  ;;  %s1866_s19 = smov 127   ;;  %s1867_s3 = smov 126  }
  0x5d   : > { %v2080_v4 = vld [vmem:[%s2053_s4 + $0x78] sm:$0xff]  ;;  %v2083_v5 = vld [vmem:[%s2053_s4 + $0x60] sm:$0xff]  ;;  %v2090_v6 = vld [vmem:[%s2053_s4 + $0xa8] sm:$0xff]  ;;  %s4160_s29 = scalar_lea.vmem [#allocation7], %s1633_s25  ;;  %s1634_s30 = smul.u32 6144, %s1850_s12 }
  0x5e   : > { %v2093_v7 = vld [vmem:[%s2053_s4 + $0x90] sm:$0xff]  ;;  %v2100_v8 = vld [vmem:[%s2053_s4 + $0xd8] sm:$0xff]  ;;  %v2103_v9 = vld [vmem:[%s2053_s4 + $0xc0] sm:$0xff]  ;;  %s1503_s7 = sshll.u32 %s4160_s29, 4  ;;  %s1487_s18 = scalar_lea.sflag [#allocation4], %s2039_s6  ;;  %s4638_s7 = int_to_ptr.vmem [resolvable:$true] %s1503_s7 }
  0x5f   : > { %v2110_v10 = vld [vmem:[%s2053_s4 + $0x108] sm:$0xff]  ;;  %v2113_v11 = vld [vmem:[%s2053_s4 + $0xf0] sm:$0xff]  ;;  %v2120_v12 = vld [vmem:[%s2053_s4 + $0x138] sm:$0xff]  ;;  %s4636_s15 = scalar_lea.hbm %s4693_s2, %s1634_s30  ;;  %s1772_s5 = scalar_lea.vmem %s4638_s7, 6144 }
  0x60   : > { %408 = vrot.lane.b32.xlu1 %v2070_v2, %s1864_s16  ;;  %404 = vrot.lane.b32.xlu0 %v2073_v3, %s1864_s16  ;;  %4862 = vst [vmem:[#allocation11_spill] sm:$0xff] %v2120_v12  ;;  %v2123_v13 = vld [vmem:[%s2053_s4 + $0x120] sm:$0xff]  ;;  %v2130_v14 = vld [vmem:[%s2053_s4 + $0x168] sm:$0xff]  ;;  %p1773_p13 = scmp.ne.s32.totalorder %s4638_s7, %s1772_s5  ;;  %p5467_p2 = scmp.ne.s32.totalorder %s4856_s22, 0 }
  0x61   : > { %4863 = vst [vmem:[#allocation12_spill] sm:$0xff] %v2123_v13  ;;  %4864 = vst [vmem:[#allocation13_spill] sm:$0xff] %v2130_v14  ;;  %v2133_v15 = vld [vmem:[%s2053_s4 + $0x150] sm:$0xff]  ;;  %v2140_v16 = vld [vmem:[%s2053_s4 + $0x20] sm:$0xff]  ;;  %s1868_s20 = smov [#allocation7]  }
  0x62   : > { %4865 = vst [vmem:[#allocation14_spill] sm:$0xff] %v2133_v15  ;;  %v2143_v17 = vld [vmem:[%s2053_s4 + $0x8] sm:$0xff]  ;;  %v2150_v18 = vld [vmem:[%s2053_s4 + $0x50] sm:$0xff]  ;;  %v2153_v19 = vld [vmem:[%s2053_s4 + $0x38] sm:$0xff]  ;;  %p1774_p10 = pnand %p1773_p13, %p5467_p2  ;;  %s1776_s26 = sshll.u32 %s1868_s20, 4  ;;  %s1777_s26 = int_to_ptr.vmem [resolvable:$false] %s1776_s26 }
  0x63   : > { %v2160_v20 = vld [vmem:[%s2053_s4 + $0x80] sm:$0xff]  ;;  %v2163_v21 = vld [vmem:[%s2053_s4 + $0x68] sm:$0xff]  ;;  %v2170_v22 = vld [vmem:[%s2053_s4 + $0xb0] sm:$0xff]  ;;  %p1779_p6 = scmp.lt.s32.totalorder %s4638_s7, %s1777_s26 }
  0x64   : > { %412 = vrot.lane.b32.xlu1 %v2080_v4, %s1864_s16  ;;  %410 = vrot.lane.b32.xlu0 %v2083_v5, %s1864_s16  ;;  %v2173_v23 = vld [vmem:[%s2053_s4 + $0x98] sm:$0xff]  ;;  %v2180_v24 = vld [vmem:[%s2053_s4 + $0xe0] sm:$0xff]  ;;  %p1775_p12 = pneg %p1774_p10 }
  0x65   : > { %v2183_v25 = vld [vmem:[%s2053_s4 + $0xc8] sm:$0xff]  ;;  %v2190_v26 = vld [vmem:[%s2053_s4 + $0x110] sm:$0xff]  ;;  %v2193_v27 = vld [vmem:[%s2053_s4 + $0xf8] sm:$0xff] }
  0x66   : > { %v2200_v28 = vld [vmem:[%s2053_s4 + $0x140] sm:$0xff]  ;;  %v2203_v29 = vld [vmem:[%s2053_s4 + $0x128] sm:$0xff]  ;;  %v2210_v30 = vld [vmem:[%s2053_s4 + $0x170] sm:$0xff] }
  0x67   : > { %v2213_v31 = vld [vmem:[%s2053_s4 + $0x158] sm:$0xff]  ;;  %v2220_v32 = vld [vmem:[%s2053_s4 + $0x28] sm:$0xff]  ;;  %v2223_v33 = vld [vmem:[%s2053_s4 + $0x10] sm:$0xff] }
  0x68   : > { %416 = vrot.lane.b32.xlu1 %v2090_v6, %s1864_s16  ;;  %414 = vrot.lane.b32.xlu0 %v2093_v7, %s1864_s16  ;;  %v2230_v34 = vld [vmem:[%s2053_s4 + $0x58] sm:$0xff]  ;;  %v2233_v35 = vld [vmem:[%s2053_s4 + $0x40] sm:$0xff] }
  0x69   : > { %v2240_v36 = vld [vmem:[%s2053_s4 + $0x88] sm:$0xff]  ;;  %v2243_v37 = vld [vmem:[%s2053_s4 + $0x70] sm:$0xff]  ;;  %v2250_v38 = vld [vmem:[%s2053_s4 + $0xb8] sm:$0xff] }
  0x6a   : > { %v2253_v39 = vld [vmem:[%s2053_s4 + $0xa0] sm:$0xff]  ;;  %v2260_v40 = vld [vmem:[%s2053_s4 + $0xe8] sm:$0xff]  ;;  %v2263_v41 = vld [vmem:[%s2053_s4 + $0xd0] sm:$0xff] }
  0x6b   : > { %v2270_v42 = vld [vmem:[%s2053_s4 + $0x118] sm:$0xff]  ;;  %v2273_v43 = vld [vmem:[%s2053_s4 + $0x100] sm:$0xff]  ;;  %v2280_v44 = vld [vmem:[%s2053_s4 + $0x148] sm:$0xff] }
  0x6c   : > { %420 = vrot.lane.b32.xlu1 %v2100_v8, %s1864_s16  ;;  %418 = vrot.lane.b32.xlu0 %v2103_v9, %s1864_s16  ;;  %4866 = vst [vmem:[#allocation15_spill] sm:$0xff] %v2280_v44  ;;  %v2283_v45 = vld [vmem:[%s2053_s4 + $0x130] sm:$0xff]  ;;  %v2290_v46 = vld [vmem:[%s2053_s4 + $0x178] sm:$0xff] }
  0x6d   : > { %4867 = vst [vmem:[#allocation16_spill] sm:$0xff] %v2283_v45  ;;  %4868 = vst [vmem:[#allocation17_spill] sm:$0xff] %v2290_v46  ;;  %v2293_v47 = vld [vmem:[%s2053_s4 + $0x160] sm:$0xff] }
  0x6e   : > { %4869 = vst [vmem:[#allocation18_spill] sm:$0xff] %v2293_v47 }
  0x70   : > { %424 = vrot.lane.b32.xlu1 %v2110_v10, %s1864_s16  ;;  %422 = vrot.lane.b32.xlu0 %v2113_v11, %s1864_s16 }
  0x74   : > { %428 = vrot.lane.b32.xlu1 %v2120_v12, %s1864_s16  ;;  %426 = vrot.lane.b32.xlu0 %v2123_v13, %s1864_s16 }
  0x78   : > { %432 = vrot.lane.b32.xlu1 %v2130_v14, %s1864_s16  ;;  %430 = vrot.lane.b32.xlu0 %v2133_v15, %s1864_s16 }
  0x7c   : > { %436 = vrot.lane.b32.xlu1 %v2140_v16, %s1864_s16  ;;  %434 = vrot.lane.b32.xlu0 %v2143_v17, %s1864_s16 }
  0x80   : > { %440 = vrot.lane.b32.xlu1 %v2150_v18, %s1864_s16  ;;  %438 = vrot.lane.b32.xlu0 %v2153_v19, %s1864_s16 }
  0x84   : > { %444 = vrot.lane.b32.xlu1 %v2160_v20, %s1864_s16  ;;  %442 = vrot.lane.b32.xlu0 %v2163_v21, %s1864_s16 }
  0x88   : > { %448 = vrot.lane.b32.xlu1 %v2170_v22, %s1864_s16  ;;  %446 = vrot.lane.b32.xlu0 %v2173_v23, %s1864_s16 }
  0x8c   : > { %452 = vrot.lane.b32.xlu1 %v2180_v24, %s1864_s16  ;;  %450 = vrot.lane.b32.xlu0 %v2183_v25, %s1864_s16 }
  0x90   : > { %456 = vrot.lane.b32.xlu1 %v2190_v26, %s1864_s16  ;;  %454 = vrot.lane.b32.xlu0 %v2193_v27, %s1864_s16 }
  0x94   : > { %460 = vrot.lane.b32.xlu1 %v2200_v28, %s1864_s16  ;;  %458 = vrot.lane.b32.xlu0 %v2203_v29, %s1864_s16 }
  0x98   : > { %464 = vrot.lane.b32.xlu1 %v2210_v30, %s1864_s16  ;;  %462 = vrot.lane.b32.xlu0 %v2213_v31, %s1864_s16 }
  0x9c   : > { %468 = vrot.lane.b32.xlu1 %v2220_v32, %s1864_s16  ;;  %466 = vrot.lane.b32.xlu0 %v2223_v33, %s1864_s16 }
  0xa0   : > { %472 = vrot.lane.b32.xlu1 %v2230_v34, %s1864_s16  ;;  %470 = vrot.lane.b32.xlu0 %v2233_v35, %s1864_s16 }
  0xa4   : > { %476 = vrot.lane.b32.xlu1 %v2240_v36, %s1864_s16  ;;  %474 = vrot.lane.b32.xlu0 %v2243_v37, %s1864_s16 }
  0xa8   : > { %480 = vrot.lane.b32.xlu1 %v2250_v38, %s1864_s16  ;;  %478 = vrot.lane.b32.xlu0 %v2253_v39, %s1864_s16 }
  0xac   : > { %484 = vrot.lane.b32.xlu1 %v2260_v40, %s1864_s16  ;;  %482 = vrot.lane.b32.xlu0 %v2263_v41, %s1864_s16 }
  0xb0   : > { %488 = vrot.lane.b32.xlu1 %v2270_v42, %s1864_s16  ;;  %486 = vrot.lane.b32.xlu0 %v2273_v43, %s1864_s16 }
  0xb4   : > { %492 = vrot.lane.b32.xlu1 %v2280_v44, %s1864_s16  ;;  %490 = vrot.lane.b32.xlu0 %v2283_v45, %s1864_s16 }
  0xb8   : > { %496 = vrot.lane.b32.xlu1 %v2290_v46, %s1864_s16  ;;  %494 = vrot.lane.b32.xlu0 %v2293_v47, %s1864_s16 }
  0xbc   : > { %665 = vrot.lane.b32.xlu1 %v2073_v3, %s1865_s21  ;;  %663 = vrot.lane.b32.xlu0 %v2063_v1, %s1865_s21 }
  0xc0   : > { %669 = vrot.lane.b32.xlu1 %v2070_v2, %s1865_s21  ;;  %667 = vrot.lane.b32.xlu0 %v2060_v0, %s1865_s21 }
  0xc4   : > { %673 = vrot.lane.b32.xlu1 %v2080_v4, %s1865_s21  ;;  %671 = vrot.lane.b32.xlu0 %v2083_v5, %s1865_s21 }
  0xc8   : > { %677 = vrot.lane.b32.xlu1 %v2090_v6, %s1865_s21  ;;  %675 = vrot.lane.b32.xlu0 %v2093_v7, %s1865_s21 }
  0xcc   : > { %681 = vrot.lane.b32.xlu1 %v2100_v8, %s1865_s21  ;;  %679 = vrot.lane.b32.xlu0 %v2103_v9, %s1865_s21 }
  0xce   : > { %v2319_v48 = vpop.permute.xlu1 %406  ;;  %v2321_v49 = vpop.permute.xlu0 %402 }
  0xcf   : > { %4870 = vst [vmem:[#allocation19_spill] sm:$0xff] %v2319_v48  ;;  %4871 = vst [vmem:[#allocation20_spill] sm:$0xff] %v2321_v49 }
  0xd0   : > { %685 = vrot.lane.b32.xlu1 %v2110_v10, %s1865_s21  ;;  %683 = vrot.lane.b32.xlu0 %v2113_v11, %s1865_s21 }
  0xd2   : > { %v2327_v50 = vpop.permute.xlu1 %408  ;;  %v2329_v51 = vpop.permute.xlu0 %404 }
  0xd3   : > { %4872 = vst [vmem:[#allocation21_spill] sm:$0xff] %v2327_v50  ;;  %4873 = vst [vmem:[#allocation22_spill] sm:$0xff] %v2329_v51 }
  0xd4   : > { %689 = vrot.lane.b32.xlu1 %v2120_v12, %s1865_s21  ;;  %687 = vrot.lane.b32.xlu0 %v2123_v13, %s1865_s21 }
  0xd6   : > { %v2335_v52 = vpop.permute.xlu1 %412  ;;  %v2337_v53 = vpop.permute.xlu0 %410 }
  0xd7   : > { %4874 = vst [vmem:[#allocation23_spill] sm:$0xff] %v2335_v52  ;;  %4875 = vst [vmem:[#allocation24_spill] sm:$0xff] %v2337_v53 }
  0xd8   : > { %693 = vrot.lane.b32.xlu1 %v2130_v14, %s1865_s21  ;;  %691 = vrot.lane.b32.xlu0 %v2133_v15, %s1865_s21 }
  0xda   : > { %v2343_v54 = vpop.permute.xlu1 %416  ;;  %v2345_v55 = vpop.permute.xlu0 %414 }
  0xdb   : > { %4876 = vst [vmem:[#allocation25_spill] sm:$0xff] %v2343_v54  ;;  %4877 = vst [vmem:[#allocation26_spill] sm:$0xff] %v2345_v55 }
  0xdc   : > { %697 = vrot.lane.b32.xlu1 %v2140_v16, %s1865_s21  ;;  %695 = vrot.lane.b32.xlu0 %v2143_v17, %s1865_s21 }
  0xde   : > { %v2351_v56 = vpop.permute.xlu1 %420  ;;  %v2353_v57 = vpop.permute.xlu0 %418 }
  0xdf   : > { %4878 = vst [vmem:[#allocation27_spill] sm:$0xff] %v2351_v56  ;;  %4879 = vst [vmem:[#allocation28_spill] sm:$0xff] %v2353_v57 }
  0xe0   : > { %701 = vrot.lane.b32.xlu1 %v2150_v18, %s1865_s21  ;;  %699 = vrot.lane.b32.xlu0 %v2153_v19, %s1865_s21 }
  0xe2   : > { %v2359_v58 = vpop.permute.xlu1 %424  ;;  %v2361_v59 = vpop.permute.xlu0 %422 }
  0xe3   : > { %4880 = vst [vmem:[#allocation29_spill] sm:$0xff] %v2359_v58  ;;  %4881 = vst [vmem:[#allocation30_spill] sm:$0xff] %v2361_v59 }
  0xe4   : > { %705 = vrot.lane.b32.xlu1 %v2160_v20, %s1865_s21  ;;  %703 = vrot.lane.b32.xlu0 %v2163_v21, %s1865_s21 }
  0xe6   : > { %v2367_v60 = vpop.permute.xlu1 %428  ;;  %v2369_v61 = vpop.permute.xlu0 %426 }
  0xe7   : > { %4882 = vst [vmem:[#allocation31_spill] sm:$0xff] %v2367_v60  ;;  %4883 = vst [vmem:[#allocation32_spill] sm:$0xff] %v2369_v61 }
  0xe8   : > { %709 = vrot.lane.b32.xlu1 %v2170_v22, %s1865_s21  ;;  %707 = vrot.lane.b32.xlu0 %v2173_v23, %s1865_s21 }
  0xea   : > { %v2375_v62 = vpop.permute.xlu1 %432  ;;  %v2377_v63 = vpop.permute.xlu0 %430 }
  0xeb   : > { %4884 = vst [vmem:[#allocation33_spill] sm:$0xff] %v2375_v62  ;;  %4885 = vst [vmem:[#allocation34_spill] sm:$0xff] %v2377_v63 }
  0xec   : > { %713 = vrot.lane.b32.xlu1 %v2180_v24, %s1865_s21  ;;  %711 = vrot.lane.b32.xlu0 %v2183_v25, %s1865_s21 }
  0xee   : > { %v2383_v59 = vpop.permute.xlu1 %436  ;;  %v2385_v60 = vpop.permute.xlu0 %434 }
  0xef   : > { %4886 = vst [vmem:[#allocation35_spill] sm:$0xff] %v2383_v59  ;;  %4887 = vst [vmem:[#allocation36_spill] sm:$0xff] %v2385_v60  ;;  %v1620_v60 = vld [vmem:[%s2043_s27 + $0x5] ss:$8 sm:$0x7] }
  0xf0   : > { %717 = vrot.lane.b32.xlu1 %v2190_v26, %s1865_s21  ;;  %715 = vrot.lane.b32.xlu0 %v2193_v27, %s1865_s21 }
  0xf2   : > { %v2391_v61 = vpop.permute.xlu1 %440  ;;  %v2393_v58 = vpop.permute.xlu0 %438 }
  0xf3   : > { %4888 = vst [vmem:[#allocation37_spill] sm:$0xff] %v2391_v61  ;;  %4889 = vst [vmem:[#allocation38_spill] sm:$0xff] %v2393_v58  ;;  %v269_v58 = vld [vmem:[%s2043_s27] ss:$8 sm:$0x7] }
  0xf4   : > { %721 = vrot.lane.b32.xlu1 %v2200_v28, %s1865_s21  ;;  %719 = vrot.lane.b32.xlu0 %v2203_v29, %s1865_s21 }
  0xf6   : > { %v2399_v57 = vpop.permute.xlu1 %444  ;;  %v2401_v56 = vpop.permute.xlu0 %442 }
  0xf7   : > { %4890 = vst [vmem:[#allocation39_spill] sm:$0xff] %v2399_v57  ;;  %4891 = vst [vmem:[#allocation40_spill] sm:$0xff] %v2401_v56 }
  0xf8   : > { %725 = vrot.lane.b32.xlu1 %v2210_v30, %s1865_s21  ;;  %723 = vrot.lane.b32.xlu0 %v2213_v31, %s1865_s21 }
  0xfa   : > { %v2407_v63 = vpop.permute.xlu1 %448  ;;  %v2409_v62 = vpop.permute.xlu0 %446 }
  0xfb   : > { %4892 = vst [vmem:[#allocation41_spill] sm:$0xff] %v2407_v63  ;;  %4893 = vst [vmem:[#allocation42_spill] sm:$0xff] %v2409_v62 }
  0xfc   : > { %729 = vrot.lane.b32.xlu1 %v2220_v32, %s1865_s21  ;;  %727 = vrot.lane.b32.xlu0 %v2223_v33, %s1865_s21 }
  0xfe   : > { %v2415_v55 = vpop.permute.xlu1 %452  ;;  %v2417_v54 = vpop.permute.xlu0 %450 }
  0xff   : > { %4894 = vst [vmem:[#allocation43_spill] sm:$0xff] %v2415_v55  ;;  %4895 = vst [vmem:[#allocation44_spill] sm:$0xff] %v2417_v54 }
 0x100   : > { %733 = vrot.lane.b32.xlu1 %v2230_v34, %s1865_s21  ;;  %731 = vrot.lane.b32.xlu0 %v2233_v35, %s1865_s21 }
 0x102   : > { %v2423_v53 = vpop.permute.xlu1 %456  ;;  %v2425_v63 = vpop.permute.xlu0 %454 }
 0x103   : > { %4896 = vst [vmem:[#allocation45_spill] sm:$0xff] %v2423_v53  ;;  %4897 = vst [vmem:[#allocation46_spill] sm:$0xff] %v2425_v63 }
 0x104   : > { %737 = vrot.lane.b32.xlu1 %v2240_v36, %s1865_s21  ;;  %735 = vrot.lane.b32.xlu0 %v2243_v37, %s1865_s21 }
 0x106   : > { %v2431_v62 = vpop.permute.xlu1 %460  ;;  %v2433_v55 = vpop.permute.xlu0 %458 }
 0x107   : > { %4898 = vst [vmem:[#allocation47_spill] sm:$0xff] %v2431_v62  ;;  %4899 = vst [vmem:[#allocation48_spill] sm:$0xff] %v2433_v55 }
 0x108   : > { %741 = vrot.lane.b32.xlu1 %v2250_v38, %s1865_s21  ;;  %739 = vrot.lane.b32.xlu0 %v2253_v39, %s1865_s21 }
 0x10a   : > { %v2439_v54 = vpop.permute.xlu1 %464  ;;  %v2441_v53 = vpop.permute.xlu0 %462 }
 0x10b   : > { %4900 = vst [vmem:[#allocation49_spill] sm:$0xff] %v2439_v54  ;;  %4901 = vst [vmem:[#allocation50_spill] sm:$0xff] %v2441_v53 }
 0x10c   : > { %745 = vrot.lane.b32.xlu1 %v2260_v40, %s1865_s21  ;;  %743 = vrot.lane.b32.xlu0 %v2263_v41, %s1865_s21 }
 0x10e   : > { %v2447_v63 = vpop.permute.xlu1 %468  ;;  %v2449_v62 = vpop.permute.xlu0 %466 }
 0x10f   : > { %4902 = vst [vmem:[#allocation51_spill] sm:$0xff] %v2447_v63  ;;  %4903 = vst [vmem:[#allocation52_spill] sm:$0xff] %v2449_v62 }
 0x110   : > { %749 = vrot.lane.b32.xlu1 %v2270_v42, %s1865_s21  ;;  %747 = vrot.lane.b32.xlu0 %v2273_v43, %s1865_s21 }
 0x112   : > { %v2455_v55 = vpop.permute.xlu1 %472  ;;  %v2457_v54 = vpop.permute.xlu0 %470 }
 0x113   : > { %4904 = vst [vmem:[#allocation53_spill] sm:$0xff] %v2455_v55  ;;  %4905 = vst [vmem:[#allocation54_spill] sm:$0xff] %v2457_v54 }
 0x114   : > { %753 = vrot.lane.b32.xlu1 %v2280_v44, %s1865_s21  ;;  %751 = vrot.lane.b32.xlu0 %v2283_v45, %s1865_s21 }
 0x116   : > { %v2463_v53 = vpop.permute.xlu1 %476  ;;  %v2465_v63 = vpop.permute.xlu0 %474 }
 0x117   : > { %4906 = vst [vmem:[#allocation55_spill] sm:$0xff] %v2463_v53  ;;  %4907 = vst [vmem:[#allocation56_spill] sm:$0xff] %v2465_v63 }
 0x118   : > { %757 = vrot.lane.b32.xlu1 %v2290_v46, %s1865_s21  ;;  %755 = vrot.lane.b32.xlu0 %v2293_v47, %s1865_s21 }
 0x11a   : > { %v2471_v62 = vpop.permute.xlu1 %480  ;;  %v2473_v55 = vpop.permute.xlu0 %478 }
 0x11b   : > { %4908 = vst [vmem:[#allocation57_spill] sm:$0xff] %v2471_v62  ;;  %4909 = vst [vmem:[#allocation58_spill] sm:$0xff] %v2473_v55 }
 0x11c   : > { %924 = vrot.lane.b32.xlu1 %v2073_v3, %s1866_s19  ;;  %922 = vrot.lane.b32.xlu0 %v2063_v1, %s1866_s19 }
 0x11e   : > { %v2479_v53 = vpop.permute.xlu1 %484  ;;  %v2481_v63 = vpop.permute.xlu0 %482 }
 0x11f   : > { %4910 = vst [vmem:[#allocation59_spill] sm:$0xff] %v2479_v53  ;;  %4911 = vst [vmem:[#allocation60_spill] sm:$0xff] %v2481_v63 }
 0x120   : > { %928 = vrot.lane.b32.xlu1 %v2070_v2, %s1866_s19  ;;  %926 = vrot.lane.b32.xlu0 %v2060_v0, %s1866_s19 }
 0x122   : > { %v2487_v62 = vpop.permute.xlu1 %488  ;;  %v2489_v55 = vpop.permute.xlu0 %486 }
 0x123   : > { %4912 = vst [vmem:[#allocation61_spill] sm:$0xff] %v2487_v62  ;;  %4913 = vst [vmem:[#allocation62_spill] sm:$0xff] %v2489_v55 }
 0x124   : > { %932 = vrot.lane.b32.xlu1 %v2080_v4, %s1866_s19  ;;  %930 = vrot.lane.b32.xlu0 %v2083_v5, %s1866_s19 }
 0x126   : > { %v2495_v54 = vpop.permute.xlu1 %492  ;;  %v2497_v53 = vpop.permute.xlu0 %490 }
 0x127   : > { %4914 = vst [vmem:[#allocation63_spill] sm:$0xff] %v2495_v54  ;;  %4915 = vst [vmem:[#allocation64_spill] sm:$0xff] %v2497_v53 }
 0x128   : > { %936 = vrot.lane.b32.xlu1 %v2090_v6, %s1866_s19  ;;  %934 = vrot.lane.b32.xlu0 %v2093_v7, %s1866_s19 }
 0x12a   : > { %v2503_v63 = vpop.permute.xlu1 %496  ;;  %v2505_v62 = vpop.permute.xlu0 %494 }
 0x12b   : > { %4916 = vst [vmem:[#allocation65_spill] sm:$0xff] %v2503_v63  ;;  %4917 = vst [vmem:[#allocation66_spill] sm:$0xff] %v2505_v62 }
 0x12c   : > { %940 = vrot.lane.b32.xlu1 %v2100_v8, %s1866_s19  ;;  %938 = vrot.lane.b32.xlu0 %v2103_v9, %s1866_s19 }
 0x12e   : > { %v2511_v55 = vpop.permute.xlu1 %665  ;;  %v2513_v54 = vpop.permute.xlu0 %663 }
 0x12f   : > { %4918 = vst [vmem:[#allocation67_spill] sm:$0xff] %v2511_v55  ;;  %4919 = vst [vmem:[#allocation68_spill] sm:$0xff] %v2513_v54 }
 0x130   : > { %944 = vrot.lane.b32.xlu1 %v2110_v10, %s1866_s19  ;;  %942 = vrot.lane.b32.xlu0 %v2113_v11, %s1866_s19 }
 0x132   : > { %v2519_v53 = vpop.permute.xlu1 %669  ;;  %v2521_v63 = vpop.permute.xlu0 %667 }
 0x133   : > { %4920 = vst [vmem:[#allocation69_spill] sm:$0xff] %v2519_v53  ;;  %4921 = vst [vmem:[#allocation70_spill] sm:$0xff] %v2521_v63 }
 0x134   : > { %948 = vrot.lane.b32.xlu1 %v2120_v12, %s1866_s19  ;;  %946 = vrot.lane.b32.xlu0 %v2123_v13, %s1866_s19 }
 0x136   : > { %v2527_v62 = vpop.permute.xlu1 %673  ;;  %v2529_v55 = vpop.permute.xlu0 %671 }
 0x137   : > { %4922 = vst [vmem:[#allocation71_spill] sm:$0xff] %v2527_v62  ;;  %4923 = vst [vmem:[#allocation72_spill] sm:$0xff] %v2529_v55 }
 0x138   : > { %952 = vrot.lane.b32.xlu1 %v2130_v14, %s1866_s19  ;;  %950 = vrot.lane.b32.xlu0 %v2133_v15, %s1866_s19 }
 0x13a   : > { %v2535_v54 = vpop.permute.xlu1 %677  ;;  %v2537_v53 = vpop.permute.xlu0 %675 }
 0x13b   : > { %4924 = vst [vmem:[#allocation73_spill] sm:$0xff] %v2535_v54  ;;  %4925 = vst [vmem:[#allocation74_spill] sm:$0xff] %v2537_v53 }
 0x13c   : > { %956 = vrot.lane.b32.xlu1 %v2140_v16, %s1866_s19  ;;  %954 = vrot.lane.b32.xlu0 %v2143_v17, %s1866_s19 }
 0x13e   : > { %v2543_v63 = vpop.permute.xlu1 %681  ;;  %v2545_v62 = vpop.permute.xlu0 %679 }
 0x13f   : > { %4926 = vst [vmem:[#allocation75_spill] sm:$0xff] %v2543_v63  ;;  %4927 = vst [vmem:[#allocation76_spill] sm:$0xff] %v2545_v62 }
 0x140   : > { %960 = vrot.lane.b32.xlu1 %v2150_v18, %s1866_s19  ;;  %958 = vrot.lane.b32.xlu0 %v2153_v19, %s1866_s19 }
 0x142   : > { %v2551_v55 = vpop.permute.xlu1 %685  ;;  %v2553_v54 = vpop.permute.xlu0 %683 }
 0x143   : > { %4928 = vst [vmem:[#allocation77_spill] sm:$0xff] %v2551_v55  ;;  %4929 = vst [vmem:[#allocation78_spill] sm:$0xff] %v2553_v54 }
 0x144   : > { %964 = vrot.lane.b32.xlu1 %v2160_v20, %s1866_s19  ;;  %962 = vrot.lane.b32.xlu0 %v2163_v21, %s1866_s19 }
 0x146   : > { %v2559_v53 = vpop.permute.xlu1 %689  ;;  %v2561_v63 = vpop.permute.xlu0 %687 }
 0x147   : > { %4930 = vst [vmem:[#allocation79_spill] sm:$0xff] %v2559_v53  ;;  %4931 = vst [vmem:[#allocation80_spill] sm:$0xff] %v2561_v63 }
 0x148   : > { %968 = vrot.lane.b32.xlu1 %v2170_v22, %s1866_s19  ;;  %966 = vrot.lane.b32.xlu0 %v2173_v23, %s1866_s19 }
 0x14a   : > { %v2567_v62 = vpop.permute.xlu1 %693  ;;  %v2569_v55 = vpop.permute.xlu0 %691 }
 0x14b   : > { %4932 = vst [vmem:[#allocation81_spill] sm:$0xff] %v2567_v62  ;;  %4933 = vst [vmem:[#allocation82_spill] sm:$0xff] %v2569_v55 }
 0x14c   : > { %972 = vrot.lane.b32.xlu1 %v2180_v24, %s1866_s19  ;;  %970 = vrot.lane.b32.xlu0 %v2183_v25, %s1866_s19 }
 0x14e   : > { %v2575_v54 = vpop.permute.xlu1 %697  ;;  %v2577_v53 = vpop.permute.xlu0 %695 }
 0x14f   : > { %4934 = vst [vmem:[#allocation83_spill] sm:$0xff] %v2575_v54  ;;  %4935 = vst [vmem:[#allocation84_spill] sm:$0xff] %v2577_v53 }
 0x150   : > { %976 = vrot.lane.b32.xlu1 %v2190_v26, %s1866_s19  ;;  %974 = vrot.lane.b32.xlu0 %v2193_v27, %s1866_s19 }
 0x152   : > { %v2583_v63 = vpop.permute.xlu1 %701  ;;  %v2585_v62 = vpop.permute.xlu0 %699 }
 0x153   : > { %4936 = vst [vmem:[#allocation85_spill] sm:$0xff] %v2583_v63  ;;  %4937 = vst [vmem:[#allocation86_spill] sm:$0xff] %v2585_v62 }
 0x154   : > { %980 = vrot.lane.b32.xlu1 %v2200_v28, %s1866_s19  ;;  %978 = vrot.lane.b32.xlu0 %v2203_v29, %s1866_s19 }
 0x156   : > { %v2591_v55 = vpop.permute.xlu1 %705  ;;  %v2593_v54 = vpop.permute.xlu0 %703 }
 0x157   : > { %4938 = vst [vmem:[#allocation87_spill] sm:$0xff] %v2591_v55  ;;  %4939 = vst [vmem:[#allocation88_spill] sm:$0xff] %v2593_v54 }
 0x158   : > { %984 = vrot.lane.b32.xlu1 %v2210_v30, %s1866_s19  ;;  %982 = vrot.lane.b32.xlu0 %v2213_v31, %s1866_s19 }
 0x15a   : > { %v2599_v53 = vpop.permute.xlu1 %709  ;;  %v2601_v63 = vpop.permute.xlu0 %707 }
 0x15b   : > { %4940 = vst [vmem:[#allocation89_spill] sm:$0xff] %v2599_v53  ;;  %4941 = vst [vmem:[#allocation90_spill] sm:$0xff] %v2601_v63 }
 0x15c   : > { %988 = vrot.lane.b32.xlu1 %v2220_v32, %s1866_s19  ;;  %986 = vrot.lane.b32.xlu0 %v2223_v33, %s1866_s19 }
 0x15e   : > { %v2607_v62 = vpop.permute.xlu1 %713  ;;  %v2609_v55 = vpop.permute.xlu0 %711 }
 0x15f   : > { %4942 = vst [vmem:[#allocation91_spill] sm:$0xff] %v2607_v62  ;;  %4943 = vst [vmem:[#allocation92_spill] sm:$0xff] %v2609_v55 }
 0x160   : > { %992 = vrot.lane.b32.xlu1 %v2230_v34, %s1866_s19  ;;  %990 = vrot.lane.b32.xlu0 %v2233_v35, %s1866_s19 }
 0x162   : > { %v2615_v54 = vpop.permute.xlu1 %717  ;;  %v2617_v53 = vpop.permute.xlu0 %715 }
 0x163   : > { %4944 = vst [vmem:[#allocation93_spill] sm:$0xff] %v2615_v54  ;;  %4945 = vst [vmem:[#allocation94_spill] sm:$0xff] %v2617_v53 }
 0x164   : > { %996 = vrot.lane.b32.xlu1 %v2240_v36, %s1866_s19  ;;  %994 = vrot.lane.b32.xlu0 %v2243_v37, %s1866_s19 }
 0x166   : > { %v2623_v63 = vpop.permute.xlu1 %721  ;;  %v2625_v62 = vpop.permute.xlu0 %719 }
 0x167   : > { %4946 = vst [vmem:[#allocation95_spill] sm:$0xff] %v2623_v63  ;;  %4947 = vst [vmem:[#allocation96_spill] sm:$0xff] %v2625_v62 }
 0x168   : > { %1000 = vrot.lane.b32.xlu1 %v2250_v38, %s1866_s19  ;;  %998 = vrot.lane.b32.xlu0 %v2253_v39, %s1866_s19 }
 0x16a   : > { %v2631_v55 = vpop.permute.xlu1 %725  ;;  %v2633_v54 = vpop.permute.xlu0 %723 }
 0x16b   : > { %4948 = vst [vmem:[#allocation97_spill] sm:$0xff] %v2631_v55  ;;  %4949 = vst [vmem:[#allocation98_spill] sm:$0xff] %v2633_v54 }
 0x16c   : > { %1004 = vrot.lane.b32.xlu1 %v2260_v40, %s1866_s19  ;;  %1002 = vrot.lane.b32.xlu0 %v2263_v41, %s1866_s19 }
 0x16e   : > { %v2639_v53 = vpop.permute.xlu1 %729  ;;  %v2641_v63 = vpop.permute.xlu0 %727 }
 0x16f   : > { %4950 = vst [vmem:[#allocation99_spill] sm:$0xff] %v2639_v53  ;;  %4951 = vst [vmem:[#allocation100_spill] sm:$0xff] %v2641_v63 }
 0x170   : > { %1008 = vrot.lane.b32.xlu1 %v2270_v42, %s1866_s19  ;;  %1006 = vrot.lane.b32.xlu0 %v2273_v43, %s1866_s19 }
 0x172   : > { %v2647_v62 = vpop.permute.xlu1 %733  ;;  %v2649_v55 = vpop.permute.xlu0 %731 }
 0x173   : > { %4952 = vst [vmem:[#allocation101_spill] sm:$0xff] %v2647_v62  ;;  %4953 = vst [vmem:[#allocation102_spill] sm:$0xff] %v2649_v55 }
 0x174   : > { %1012 = vrot.lane.b32.xlu1 %v2280_v44, %s1866_s19  ;;  %1010 = vrot.lane.b32.xlu0 %v2283_v45, %s1866_s19 }
 0x176   : > { %v2655_v54 = vpop.permute.xlu1 %737  ;;  %v2657_v53 = vpop.permute.xlu0 %735 }
 0x177   : > { %4954 = vst [vmem:[#allocation103_spill] sm:$0xff] %v2655_v54  ;;  %4955 = vst [vmem:[#allocation104_spill] sm:$0xff] %v2657_v53 }
 0x178   : > { %1016 = vrot.lane.b32.xlu1 %v2290_v46, %s1866_s19  ;;  %1014 = vrot.lane.b32.xlu0 %v2293_v47, %s1866_s19 }
 0x17a   : > { %v2663_v63 = vpop.permute.xlu1 %741  ;;  %v2665_v62 = vpop.permute.xlu0 %739 }
 0x17b   : > { %4956 = vst [vmem:[#allocation105_spill] sm:$0xff] %v2663_v63  ;;  %4957 = vst [vmem:[#allocation106_spill] sm:$0xff] %v2665_v62 }
 0x17c   : > { %1183 = vrot.lane.b32.xlu1 %v2073_v3, %s1867_s3  ;;  %1181 = vrot.lane.b32.xlu0 %v2063_v1, %s1867_s3 }
 0x17e   : > { %v2671_v54 = vpop.permute.xlu1 %745  ;;  %v2673_v53 = vpop.permute.xlu0 %743 }
 0x17f   : > { %4958 = vst [vmem:[#allocation107_spill] sm:$0xff] %v2671_v54  ;;  %4959 = vst [vmem:[#allocation108_spill] sm:$0xff] %v2673_v53 }
 0x180   : > { %1187 = vrot.lane.b32.xlu1 %v2070_v2, %s1867_s3  ;;  %1185 = vrot.lane.b32.xlu0 %v2060_v0, %s1867_s3 }
 0x182   : > { %v2679_v63 = vpop.permute.xlu1 %749  ;;  %v2681_v62 = vpop.permute.xlu0 %747 }
 0x183   : > { %4960 = vst [vmem:[#allocation109_spill] sm:$0xff] %v2679_v63  ;;  %4961 = vst [vmem:[#allocation110_spill] sm:$0xff] %v2681_v62  ;;  %v271_v62 = vlaneseq }
 0x184   : > { %1191 = vrot.lane.b32.xlu1 %v2080_v4, %s1867_s3  ;;  %1189 = vrot.lane.b32.xlu0 %v2083_v5, %s1867_s3 }
 0x185   : > { %v272_v56 = vshrl.u32 %v271_v62, 7 }
 0x186   : > { %v2687_v55 = vpop.permute.xlu1 %753  ;;  %v2689_v54 = vpop.permute.xlu0 %751 }
 0x187   : > { %4962 = vst [vmem:[#allocation111_spill] sm:$0xff] %v2687_v55  ;;  %4963 = vst [vmem:[#allocation112_spill] sm:$0xff] %v2689_v54  ;;  %v2723_v48 = vsub.s32 1, %v272_v56  ;;  %v2757_v45 = vsub.s32 0, %v272_v56 }
 0x188   : > { %1195 = vrot.lane.b32.xlu1 %v2090_v6, %s1867_s3  ;;  %1193 = vrot.lane.b32.xlu0 %v2093_v7, %s1867_s3 }
 0x189   : > { %4968 = vst [vmem:[#allocation117_spill] sm:$0xff] %v2723_v48  ;;  %v278_v49 = vrot.slane %v269_v58, %v2723_v48  ;;  %v344_v47 = vrot.slane %v1620_v60, %v2723_v48  ;;  %4974 = vst [vmem:[#allocation123_spill] sm:$0xff] %v2757_v45 }
 0x18a   : > { %v2695_v53 = vpop.permute.xlu1 %757  ;;  %v2697_v63 = vpop.permute.xlu0 %755 }
 0x18b   : > { %4964 = vst [vmem:[#allocation113_spill] sm:$0xff] %v2695_v53  ;;  %4965 = vst [vmem:[#allocation114_spill] sm:$0xff] %v2697_v63  ;;  %v296_v46 = vmul.f32 %v278_v49, %v2150_v18 }
 0x18c   : > { %1199 = vrot.lane.b32.xlu1 %v2100_v8, %s1867_s3  ;;  %1197 = vrot.lane.b32.xlu0 %v2103_v9, %s1867_s3 }
 0x18e   : > { %v2703_v55 = vpop.permute.xlu1 %924  ;;  %v2705_v54 = vpop.permute.xlu0 %922 }
 0x190   : > { %1203 = vrot.lane.b32.xlu1 %v2110_v10, %s1867_s3  ;;  %1201 = vrot.lane.b32.xlu0 %v2113_v11, %s1867_s3 }
 0x192   : > { %v2711_v63 = vpop.permute.xlu1 %928  ;;  %v2713_v53 = vpop.permute.xlu0 %926 }
 0x194   : > { %1207 = vrot.lane.b32.xlu1 %v2120_v12, %s1867_s3  ;;  %1205 = vrot.lane.b32.xlu0 %v2123_v13, %s1867_s3 }
 0x196   : > { %v2719_v52 = vpop.permute.xlu1 %932  ;;  %v2721_v57 = vpop.permute.xlu0 %930 }
 0x197   : > { %4966 = vst [vmem:[#allocation115_spill] sm:$0xff] %v2719_v52  ;;  %4967 = vst [vmem:[#allocation116_spill] sm:$0xff] %v2721_v57  ;;  %v323_v52 = vmul.f32 %v278_v49, %v2203_v29 }
 0x198   : > { %1211 = vrot.lane.b32.xlu1 %v2130_v14, %s1867_s3  ;;  %1209 = vrot.lane.b32.xlu0 %v2133_v15, %s1867_s3  ;;  %v1621_v15 = vld [vmem:[%s2043_s27 + $0x1] ss:$8 sm:$0x7]  ;;  %v2751_v14 = vsub.s32 2, %v272_v56  ;;  %v305_v56 = vmul.f32 %v278_v49, %v2173_v23 }
 0x19a   : > { %v2730_v50 = vpop.permute.xlu1 %936  ;;  %v2732_v61 = vpop.permute.xlu0 %934  ;;  %4973 = vst [vmem:[#allocation122_spill] sm:$0xff] %v2751_v14 }
 0x19b   : > { %4969 = vst [vmem:[#allocation118_spill] sm:$0xff] %v2730_v50  ;;  %4970 = vst [vmem:[#allocation119_spill] sm:$0xff] %v2732_v61  ;;  %v290_v50 = vmul.f32 %v278_v49, %v2140_v16  ;;  %v287_v61 = vmul.f32 %v278_v49, %v2143_v17 }
 0x19c   : > { %1215 = vrot.lane.b32.xlu1 %v2140_v16, %s1867_s3  ;;  %1213 = vrot.lane.b32.xlu0 %v2143_v17, %s1867_s3  ;;  %v2761_v16 = vand.u32 127, %v271_v62  ;;  %v2764_v17 = vrot.slane %v1621_v15, %v2723_v48  ;;  %v2777_v62 = vadd.f32 %v344_v47, %v296_v46  ;;  %v311_v48 = vmul.f32 %v278_v49, %v2183_v25 }
 0x19d   : > { %v2769_v44 = vadd.f32 %v344_v47, %v290_v50  ;;  %v2771_v12 = vadd.f32 %v344_v47, %v287_v61 }
 0x19e   : > { %v2740_v51 = vpop.permute.xlu1 %940  ;;  %v2742_v59 = vpop.permute.xlu0 %938  ;;  %4976 = vst [vmem:[#allocation125_spill] sm:$0xff] %v2764_v17  ;;  %4980 = vst [vmem:[#allocation129_spill] sm:$0xff] %v2777_v62  ;;  %v2782_v17 = vrot.slane %v269_v58, %v2751_v14  ;;  %vm1018_vm0 = vcmp.lt.s32.totalorder %v2761_v16, 127  ;;  %vm500_vm1 = vcmp.lt.s32.totalorder %v2761_v16, 1  ;;  %vm759_vm2 = vcmp.lt.s32.totalorder %v2761_v16, 2 }
 0x19f   : > { %4971 = vst [vmem:[#allocation120_spill] sm:$0xff] %v2740_v51  ;;  %4972 = vst [vmem:[#allocation121_spill] sm:$0xff] %v2742_v59  ;;  %v293_v51 = vmul.f32 %v278_v49, %v2153_v19  ;;  %v302_v59 = vmul.f32 %v278_v49, %v2160_v20  ;;  %vm1277_vm3 = vcmp.lt.s32.totalorder %v2761_v16, 126 }
 0x1a0   : > { %1219 = vrot.lane.b32.xlu1 %v2150_v18, %s1867_s3  ;;  %1217 = vrot.lane.b32.xlu0 %v2153_v19, %s1867_s3  ;;  %v299_v18 = vmul.f32 %v278_v49, %v2163_v21  ;;  %4978 = vst [vmem:[#allocation127_spill] sm:$0xff] %v2769_v44  ;;  %4979 = vst [vmem:[#allocation128_spill] sm:$0xff] %v2771_v12  ;;  %v308_v19 = vmul.f32 %v278_v49, %v2170_v22 }
 0x1a1   : > { %v2786_v50 = vadd.f32 %v344_v47, %v293_v51  ;;  %v2788_v61 = vadd.f32 %v344_v47, %v302_v59  ;;  %v317_v12 = vmul.f32 %v278_v49, %v2193_v27  ;;  %v326_v44 = vmul.f32 %v278_v49, %v2200_v28 }
 0x1a2   : > { %v2759_v13 = vpop.permute.xlu1 %944  ;;  %v2767_v57 = vpop.permute.xlu0 %942  ;;  %v2796_v62 = vadd.f32 %v344_v47, %v299_v18  ;;  %v2803_v51 = vadd.f32 %v344_v47, %v308_v19  ;;  %v2805_v59 = vadd.f32 %v344_v47, %v305_v56 }
 0x1a3   : > { %4975 = vst [vmem:[#allocation124_spill] sm:$0xff] %v2759_v13  ;;  %4977 = vst [vmem:[#allocation126_spill] sm:$0xff] %v2767_v57  ;;  %v314_v13 = vmul.f32 %v278_v49, %v2180_v24  ;;  %v320_v57 = vmul.f32 %v278_v49, %v2190_v26  ;;  %v2833_v56 = vadd.f32 %v344_v47, %v317_v12 }
 0x1a4   : > { %1223 = vrot.lane.b32.xlu1 %v2160_v20, %s1867_s3  ;;  %1221 = vrot.lane.b32.xlu0 %v2163_v21, %s1867_s3  ;;  %4981 = vst [vmem:[#allocation130_spill] sm:$0xff] %v2788_v61  ;;  %v2792_v20 = vrot.slane %v269_v58, %v2757_v45  ;;  %4983 = vst [vmem:[#allocation132_spill] sm:$0xff] %v2796_v62  ;;  %v332_v61 = vmul.f32 %v278_v49, %v2210_v30 }
 0x1a5   : > { %v329_v58 = vmul.f32 %v278_v49, %v2213_v31  ;;  %v2811_v18 = vadd.f32 %v344_v47, %v314_v13  ;;  %v291_v62 = vmul.f32 %v2782_v17, %v2220_v32  ;;  %v2822_v19 = vadd.f32 %v344_v47, %v320_v57 }
 0x1a6   : > { %v2794_v46 = vpop.permute.xlu1 %948  ;;  %v2801_v21 = vpop.permute.xlu0 %946  ;;  %v2825_v49 = vrot.slane %v1620_v60, %v2757_v45  ;;  %v289_v13 = vmul.f32 %v2792_v20, %v2073_v3  ;;  %v295_v3 = vmul.f32 %v2792_v20, %v2070_v2 }
 0x1a7   : > { %4982 = vst [vmem:[#allocation131_spill] sm:$0xff] %v2794_v46  ;;  %4984 = vst [vmem:[#allocation133_spill] sm:$0xff] %v2801_v21  ;;  %v2813_v46 = vadd.f32 %v344_v47, %v311_v48  ;;  %v2818_v21 = vrot.slane %v1620_v60, %v2751_v14  ;;  %v2843_v60 = vadd.f32 %v344_v47, %v332_v61 }
 0x1a8   : > { %1227 = vrot.lane.b32.xlu1 %v2170_v22, %s1867_s3  ;;  %4985 = vst [vmem:[#allocation134_spill] sm:$0xff] %v2811_v18  ;;  %1225 = vrot.lane.b32.xlu0 %v2173_v23, %s1867_s3  ;;  %4987 = vst [vmem:[#allocation136_spill] sm:$0xff] %v2822_v19  ;;  %v288_v22 = vmul.f32 %v2782_v17, %v2223_v33  ;;  %v2837_v18 = vadd.f32 %v344_v47, %v323_v52 }
 0x1a9   : > { %4986 = vst [vmem:[#allocation135_spill] sm:$0xff] %v2813_v46  ;;  %v2835_v46 = vadd.f32 %v344_v47, %v326_v44  ;;  %v286_v23 = vmul.f32 %v2792_v20, %v2063_v1  ;;  %v2845_v19 = vadd.f32 %v344_v47, %v329_v58  ;;  %v2853_v12 = vadd.f32 %v2818_v21, %v291_v62 }
 0x1aa   : > { %v2831_v48 = vpop.permute.xlu1 %952  ;;  %v2841_v57 = vpop.permute.xlu0 %950  ;;  %v2856_v44 = vrot.slane %v1621_v15, %v2757_v45  ;;  %v2859_v1 = vrot.slane %v1621_v15, %v2751_v14  ;;  %v297_v47 = vmul.f32 %v2782_v17, %v2230_v34  ;;  %v2866_v2 = vadd.f32 %v2825_v49, %v289_v13 }
 0x1ab   : > { %4988 = vst [vmem:[#allocation137_spill] sm:$0xff] %v2853_v12  ;;  %v292_v52 = vmul.f32 %v2792_v20, %v2060_v0  ;;  %v294_v62 = vmul.f32 %v2782_v17, %v2233_v35  ;;  %v2878_v61 = vadd.f32 %v2825_v49, %v286_v23  ;;  %v303_v58 = vmul.f32 %v2782_v17, %v2240_v36  ;;  %v5058_v12 = vld [vmem:[#allocation41_spill] sm:$0xff] }
 0x1ac   : > { %1231 = vrot.lane.b32.xlu1 %v2180_v24, %s1867_s3  ;;  %1229 = vrot.lane.b32.xlu0 %v2183_v25, %s1867_s3  ;;  %v2869_v24 = vadd.f32 %v2818_v21, %v288_v22  ;;  %v301_v25 = vmul.f32 %v2792_v20, %v2080_v4  ;;  %v2893_v22 = vadd.f32 %v2825_v49, %v295_v3 }
 0x1ad   : > { %4990 = vst [vmem:[#allocation139_spill] sm:$0xff] %v2878_v61  ;;  %v298_v23 = vmul.f32 %v2792_v20, %v2083_v5  ;;  %v300_v4 = vmul.f32 %v2782_v17, %v2243_v37  ;;  %v2909_v3 = vadd.f32 %v2818_v21, %v297_v47  ;;  %v307_v5 = vmul.f32 %v2792_v20, %v2090_v6 }
 0x1ae   : > { %4989 = vst [vmem:[#allocation138_spill] sm:$0xff] %v2869_v24  ;;  %v2875_v15 = vpop.permute.xlu1 %956  ;;  %v2890_v0 = vpop.permute.xlu0 %954  ;;  %4992 = vst [vmem:[#allocation141_spill] sm:$0xff] %v2893_v22  ;;  %v304_v22 = vmul.f32 %v2792_v20, %v2093_v7  ;;  %v306_v47 = vmul.f32 %v2782_v17, %v2253_v39  ;;  %v313_v6 = vmul.f32 %v2792_v20, %v2100_v8 }
 0x1af   : > { %v2888_v13 = vsel %vm1018_vm0, %v2703_v55, %v2875_v15  ;;  %v2903_v24 = vsel %vm1018_vm0, %v2705_v54, %v2890_v0  ;;  %4994 = vst [vmem:[#allocation143_spill] sm:$0xff] %v2909_v3  ;;  %v2932_v61 = vadd.f32 %v2825_v49, %v301_v25  ;;  %v2935_v7 = vadd.f32 %v2818_v21, %v303_v58 }
 0x1b0   : > { %4991 = vst [vmem:[#allocation140_spill] sm:$0xff] %v2888_v13  ;;  %4993 = vst [vmem:[#allocation142_spill] sm:$0xff] %v2903_v24  ;;  %1235 = vrot.lane.b32.xlu1 %v2190_v26, %s1867_s3  ;;  %v309_v13 = vmul.f32 %v2782_v17, %v2250_v38  ;;  %1233 = vrot.lane.b32.xlu0 %v2193_v27, %s1867_s3  ;;  %v2920_v24 = vadd.f32 %v2825_v49, %v292_v52 }
 0x1b1   : > { %v2923_v26 = vadd.f32 %v2818_v21, %v294_v62  ;;  %4997 = vst [vmem:[#allocation146_spill] sm:$0xff] %v2932_v61  ;;  %4998 = vst [vmem:[#allocation147_spill] sm:$0xff] %v2935_v7  ;;  %v315_v27 = vmul.f32 %v2782_v17, %v2260_v40  ;;  %v2948_v8 = vadd.f32 %v2825_v49, %v298_v23  ;;  %v5021_v61 = vld [vmem:[#allocation13_spill] sm:$0xff] }
 0x1b2   : > { %4995 = vst [vmem:[#allocation144_spill] sm:$0xff] %v2920_v24  ;;  %v2929_v3 = vpop.permute.xlu1 %960  ;;  %v2945_v62 = vpop.permute.xlu0 %958  ;;  %v2951_v25 = vadd.f32 %v2818_v21, %v300_v4  ;;  %v310_v58 = vmul.f32 %v2792_v20, %v2103_v9  ;;  %v2967_v23 = vadd.f32 %v2818_v21, %v309_v13  ;;  %v2970_v4 = vadd.f32 %v2825_v49, %v304_v22  ;;  %v5025_v24 = vld [vmem:[#allocation14_spill] sm:$0xff] }
 0x1b3   : > { %4996 = vst [vmem:[#allocation145_spill] sm:$0xff] %v2923_v26  ;;  %v2943_v52 = vsel %vm1018_vm0, %v2711_v63, %v2929_v3  ;;  %5000 = vst [vmem:[#allocation149_spill] sm:$0xff] %v2948_v8  ;;  %v2959_v7 = vsel %vm1018_vm0, %v2713_v53, %v2945_v62  ;;  %v312_v9 = vmul.f32 %v2782_v17, %v2263_v41  ;;  %v5020_v8 = vld [vmem:[#allocation16_spill] sm:$0xff] }
 0x1b4   : > { %4999 = vst [vmem:[#allocation148_spill] sm:$0xff] %v2943_v52  ;;  %5001 = vst [vmem:[#allocation150_spill] sm:$0xff] %v2951_v25  ;;  %1239 = vrot.lane.b32.xlu1 %v2200_v28, %s1867_s3  ;;  %v2964_v52 = vadd.f32 %v2825_v49, %v307_v5  ;;  %1237 = vrot.lane.b32.xlu0 %v2203_v29, %s1867_s3  ;;  %v2980_v28 = vadd.f32 %v2825_v49, %v313_v6  ;;  %v5010_v6 = vld [vmem:[#allocation115_spill] sm:$0xff] }
 0x1b5   : > { %5002 = vst [vmem:[#allocation151_spill] sm:$0xff] %v2959_v7  ;;  %5004 = vst [vmem:[#allocation153_spill] sm:$0xff] %v2967_v23  ;;  %v2977_v7 = vadd.f32 %v2818_v21, %v306_v47  ;;  %v319_v5 = vmul.f32 %v2792_v20, %v2110_v10  ;;  %v321_v13 = vmul.f32 %v2782_v17, %v2270_v42  ;;  %v5014_v23 = vld [vmem:[#allocation11_spill] sm:$0xff] }
 0x1b6   : > { %5003 = vst [vmem:[#allocation152_spill] sm:$0xff] %v2964_v52  ;;  %5005 = vst [vmem:[#allocation154_spill] sm:$0xff] %v2970_v4  ;;  %v2986_v22 = vpop.permute.xlu1 %964  ;;  %v2989_v4 = vadd.f32 %v2818_v21, %v315_v27  ;;  %v316_v29 = vmul.f32 %v2792_v20, %v2113_v11  ;;  %v318_v47 = vmul.f32 %v2782_v17, %v2273_v43  ;;  %v3001_v10 = vpop.permute.xlu0 %962  ;;  %v5016_v52 = vld [vmem:[#allocation116_spill] sm:$0xff] }
 0x1b7   : > { %5006 = vst [vmem:[#allocation155_spill] sm:$0xff] %v2977_v7  ;;  %5007 = vst [vmem:[#allocation156_spill] sm:$0xff] %v2980_v28  ;;  %v2999_v28 = vsel %vm1018_vm0, %v5010_v6, %v2986_v22  ;;  %v3004_v7 = vadd.f32 %v2825_v49, %v310_v58  ;;  %v325_v27 = vmul.f32 %v2792_v20, %v5014_v23  ;;  %v5019_v58 = vld [vmem:[#allocation12_spill] sm:$0xff]  ;;  %v5051_v6 = vld [vmem:[#allocation23_spill] sm:$0xff] }
 0x1b8   : > { %5008 = vst [vmem:[#allocation157_spill] sm:$0xff] %v2986_v22  ;;  %5009 = vst [vmem:[#allocation158_spill] sm:$0xff] %v2989_v4  ;;  %v5015_v4 = vld [vmem:[#allocation15_spill] sm:$0xff]  ;;  %v3014_v25 = vsel %vm1018_vm0, %v5016_v52, %v3001_v10  ;;  %1243 = vrot.lane.b32.xlu1 %v2210_v30, %s1867_s3  ;;  %v324_v23 = vmul.f32 %v2782_v17, %v5020_v8  ;;  %v331_v26 = vmul.f32 %v2792_v20, %v5021_v61 }
 0x1b9   : > { %5011 = vst [vmem:[#allocation159_spill] sm:$0xff] %v2999_v28  ;;  %5012 = vst [vmem:[#allocation160_spill] sm:$0xff] %v3001_v10  ;;  %v327_v11 = vmul.f32 %v2782_v17, %v5015_v4  ;;  %v3019_v28 = vadd.f32 %v2818_v21, %v312_v9  ;;  %1241 = vrot.lane.b32.xlu0 %v2213_v31, %s1867_s3  ;;  %v3033_v30 = vadd.f32 %v2818_v21, %v321_v13  ;;  %v5024_v9 = vld [vmem:[#allocation17_spill] sm:$0xff]  ;;  %v5029_v31 = vld [vmem:[#allocation18_spill] sm:$0xff] }
 0x1ba   : > { %5013 = vst [vmem:[#allocation161_spill] sm:$0xff] %v3004_v7  ;;  %5017 = vst [vmem:[#allocation11_spill] sm:$0xff] %v3014_v25  ;;  %v322_v7 = vmul.f32 %v2792_v20, %v5019_v58  ;;  %v3030_v25 = vadd.f32 %v2825_v49, %v319_v5  ;;  %v328_v58 = vmul.f32 %v2792_v20, %v5025_v24  ;;  %v3039_v52 = vpop.permute.xlu1 %968  ;;  %v5030_v13 = vld [vmem:[#allocation118_spill] sm:$0xff]  ;;  %v5033_v20 = vld [vmem:[#allocation35_spill] sm:$0xff] }
 0x1bb   : > { %5018 = vst [vmem:[#allocation15_spill] sm:$0xff] %v3019_v28  ;;  %5023 = vst [vmem:[#allocation16_spill] sm:$0xff] %v3033_v30  ;;  %v333_v28 = vmul.f32 %v2782_v17, %v5024_v9  ;;  %v3042_v10 = vadd.f32 %v2825_v49, %v316_v29  ;;  %v3045_v61 = vadd.f32 %v2818_v21, %v318_v47  ;;  %v3055_v9 = vpop.permute.xlu0 %966  ;;  %v5034_v24 = vld [vmem:[#allocation22_spill] sm:$0xff] }
 0x1bc   : > { %5022 = vst [vmem:[#allocation12_spill] sm:$0xff] %v3030_v25  ;;  %5026 = vst [vmem:[#allocation13_spill] sm:$0xff] %v3039_v52  ;;  %v330_v5 = vmul.f32 %v2782_v17, %v5029_v31  ;;  %v3053_v30 = vsel %vm1018_vm0, %v5030_v13, %v3039_v52  ;;  %v518_v29 = vsel %vm500_vm1, %v5034_v24, %v5033_v20  ;;  %v5037_v17 = vld [vmem:[#allocation119_spill] sm:$0xff]  ;;  %1247 = vrot.lane.b32.xlu1 %v2220_v32, %s1867_s3 }
 0x1bd   : > { %5027 = vst [vmem:[#allocation17_spill] sm:$0xff] %v3042_v10  ;;  %5028 = vst [vmem:[#allocation14_spill] sm:$0xff] %v3045_v61  ;;  %v3062_v47 = vadd.f32 %v2825_v49, %v325_v27  ;;  %v3065_v61 = vadd.f32 %v2818_v21, %v327_v11  ;;  %v3071_v31 = vsel %vm1018_vm0, %v5037_v17, %v3055_v9  ;;  %v5040_v10 = vld [vmem:[#allocation20_spill] sm:$0xff]  ;;  %1245 = vrot.lane.b32.xlu0 %v2223_v33, %s1867_s3  ;;  %v5045_v17 = vld [vmem:[#allocation38_spill] sm:$0xff] }
 0x1be   : > { %5031 = vst [vmem:[#allocation18_spill] sm:$0xff] %v3053_v30  ;;  %5032 = vst [vmem:[#allocation162_spill] sm:$0xff] %v3055_v9  ;;  %v5039_v30 = vld [vmem:[#allocation36_spill] sm:$0xff]  ;;  %v3080_v27 = vadd.f32 %v2825_v49, %v322_v7  ;;  %v3083_v11 = vadd.f32 %v2818_v21, %v324_v23  ;;  %v5046_v9 = vld [vmem:[#allocation19_spill] sm:$0xff]  ;;  %v3102_v23 = vadd.f32 %v2825_v49, %v328_v58 }
 0x1bf   : > { %5035 = vst [vmem:[#allocation35_spill] sm:$0xff] %v3062_v47  ;;  %5036 = vst [vmem:[#allocation22_spill] sm:$0xff] %v3065_v61  ;;  %v517_v25 = vsel %vm500_vm1, %v5040_v10, %v5039_v30  ;;  %v3086_v61 = vadd.f32 %v2825_v49, %v331_v26  ;;  %v5044_v47 = vld [vmem:[#allocation21_spill] sm:$0xff]  ;;  %v519_v7 = vsel %vm500_vm1, %v5046_v9, %v5045_v17  ;;  %v5050_v52 = vld [vmem:[#allocation39_spill] sm:$0xff]  ;;  %v3121_v49 = vpop.permute.xlu0 %970 }
 0x1c0   : > { %5038 = vst [vmem:[#allocation163_spill] sm:$0xff] %v3071_v31  ;;  %5041 = vst [vmem:[#allocation36_spill] sm:$0xff] %v3080_v27  ;;  %v5043_v31 = vld [vmem:[#allocation37_spill] sm:$0xff]  ;;  %v3099_v27 = vadd.f32 %v2818_v21, %v333_v28  ;;  %v522_v22 = vsel %vm500_vm1, %v5051_v6, %v5050_v52  ;;  %v5053_v9 = vld [vmem:[#allocation120_spill] sm:$0xff]  ;;  %1251 = vrot.lane.b32.xlu1 %v2230_v34, %s1867_s3 }
 0x1c1   : > { %5042 = vst [vmem:[#allocation20_spill] sm:$0xff] %v3083_v11  ;;  %v520_v32 = vsel %vm500_vm1, %v5044_v47, %v5043_v31  ;;  %v1622_v26 = vld [vmem:[%s2043_s27 + $0x2] ss:$8 sm:$0x7]  ;;  %v3105_v11 = vpop.permute.xlu1 %972  ;;  %v3113_v31 = vadd.f32 %v2818_v21, %v330_v5  ;;  %5055 = vst [vmem:[#allocation166_spill] sm:$0xff] %v3121_v49  ;;  %1249 = vrot.lane.b32.xlu0 %v2233_v35, %s1867_s3 }
 0x1c2   : > { %5047 = vst [vmem:[#allocation21_spill] sm:$0xff] %v3099_v27  ;;  %5048 = vst [vmem:[#allocation164_spill] sm:$0xff] %v3105_v11  ;;  %v5049_v33 = vld [vmem:[#allocation125_spill] sm:$0xff]  ;;  %v3119_v28 = vsel %vm1018_vm0, %v5053_v9, %v3105_v11  ;;  %v5056_v27 = vld [vmem:[#allocation40_spill] sm:$0xff]  ;;  %v3154_v34 = vrot.slane %v1622_v26, %v2757_v45 }
 0x1c3   : > { %v569_v13 = vmul.f32 %v5049_v33, %v518_v29  ;;  %5052 = vst [vmem:[#allocation125_spill] sm:$0xff] %v3113_v31  ;;  %5054 = vst [vmem:[#allocation165_spill] sm:$0xff] %v3119_v28  ;;  %v566_v58 = vmul.f32 %v5049_v33, %v517_v25  ;;  %v5057_v29 = vld [vmem:[#allocation24_spill] sm:$0xff]  ;;  %v5059_v52 = vld [vmem:[#allocation25_spill] sm:$0xff]  ;;  %v575_v25 = vmul.f32 %v5049_v33, %v520_v32 }
 0x1c4   : > { %v521_v17 = vsel %vm500_vm1, %v5057_v29, %v5056_v27  ;;  %v524_v21 = vsel %vm500_vm1, %v5059_v52, %v5058_v12  ;;  %v5060_v5 = vld [vmem:[#allocation121_spill] sm:$0xff]  ;;  %v572_v28 = vmul.f32 %v5049_v33, %v519_v7  ;;  %v581_v52 = vmul.f32 %v5049_v33, %v522_v22  ;;  %v5064_v12 = vld [vmem:[#allocation42_spill] sm:$0xff]  ;;  %5066 = vst [vmem:[#allocation169_spill] sm:$0xff] %v3154_v34  ;;  %v5070_v29 = vld [vmem:[#allocation124_spill] sm:$0xff] }
 0x1c5   : > { %v3136_v31 = vsel %vm1018_vm0, %v5060_v5, %v3121_v49  ;;  %v5062_v9 = vld [vmem:[#allocation117_spill] sm:$0xff]  ;;  %v5065_v5 = vld [vmem:[#allocation26_spill] sm:$0xff]  ;;  %v3157_v32 = vrot.slane %v1622_v26, %v2751_v14  ;;  %v3159_v7 = vpop.permute.xlu1 %976  ;;  %1255 = vrot.lane.b32.xlu1 %v2240_v36, %s1867_s3  ;;  %1253 = vrot.lane.b32.xlu0 %v2243_v37, %s1867_s3  ;;  %v5088_v36 = vld [vmem:[#allocation43_spill] sm:$0xff] }
 0x1c6   : > { %5061 = vst [vmem:[#allocation167_spill] sm:$0xff] %v3136_v31  ;;  %v3144_v11 = vrot.slane %v1622_v26, %v5062_v9  ;;  %v523_v31 = vsel %vm500_vm1, %v5065_v5, %v5064_v12  ;;  %v578_v9 = vmul.f32 %v5049_v33, %v521_v17  ;;  %v5068_v35 = vld [vmem:[#allocation33_spill] sm:$0xff]  ;;  %v3171_v12 = vsel %vm1018_vm0, %v5070_v29, %v3159_v7  ;;  %v3173_v5 = vpop.permute.xlu0 %974  ;;  %v5073_v26 = vld [vmem:[#allocation127_spill] sm:$0xff]  ;;  %v5078_v27 = vld [vmem:[#allocation66_spill] sm:$0xff] }
 0x1c7   : > { %5067 = vst [vmem:[#allocation170_spill] sm:$0xff] %v3157_v32  ;;  %v5069_v49 = vld [vmem:[#allocation65_spill] sm:$0xff]  ;;  %5071 = vst [vmem:[#allocation33_spill] sm:$0xff] %v3171_v12  ;;  %v3176_v14 = vadd.f32 %v569_v13, %v5073_v26  ;;  %v5075_v32 = vld [vmem:[#allocation128_spill] sm:$0xff] }
 0x1c8   : > { %5063 = vst [vmem:[#allocation168_spill] sm:$0xff] %v3144_v11  ;;  %v587_v11 = vmul.f32 %v5049_v33, %v524_v21  ;;  %v548_v22 = vsel %vm500_vm1, %v5069_v49, %v5068_v35  ;;  %5072 = vst [vmem:[#allocation171_spill] sm:$0xff] %v3173_v5  ;;  %v3179_v17 = vadd.f32 %v566_v58, %v5075_v32  ;;  %v5077_v21 = vld [vmem:[#allocation34_spill] sm:$0xff]  ;;  %v5081_v13 = vld [vmem:[#allocation129_spill] sm:$0xff] }
 0x1c9   : > { %5074 = vst [vmem:[#allocation127_spill] sm:$0xff] %v3176_v14  ;;  %v547_v6 = vsel %vm500_vm1, %v5078_v27, %v5077_v21  ;;  %v5079_v49 = vld [vmem:[#allocation126_spill] sm:$0xff]  ;;  %v3194_v26 = vadd.f32 %v575_v25, %v5081_v13  ;;  %v3197_v58 = vadd.f32 %v572_v28, %v2786_v50  ;;  %v584_v32 = vmul.f32 %v5049_v33, %v523_v31  ;;  %v5084_v12 = vld [vmem:[#allocation81_spill] sm:$0xff] }
 0x1ca   : > { %5076 = vst [vmem:[#allocation128_spill] sm:$0xff] %v3179_v17  ;;  %v3189_v29 = vsel %vm1018_vm0, %v5079_v49, %v3173_v5  ;;  %v5085_v17 = vld [vmem:[#allocation113_spill] sm:$0xff]  ;;  %v5089_v5 = vld [vmem:[#allocation27_spill] sm:$0xff]  ;;  %v610_v50 = vmul.f32 %v2856_v44, %v548_v22  ;;  %v5090_v28 = vld [vmem:[#allocation82_spill] sm:$0xff]  ;;  %v3224_v37 = vadd.f32 %v587_v11, %v2803_v51  ;;  %1259 = vrot.lane.b32.xlu1 %v2250_v38, %s1867_s3 }
 0x1cb   : > { %5080 = vst [vmem:[#allocation34_spill] sm:$0xff] %v3189_v29  ;;  %5082 = vst [vmem:[#allocation129_spill] sm:$0xff] %v3194_v26  ;;  %v807_v14 = vsel %vm759_vm2, %v5085_v17, %v5084_v12  ;;  %v5086_v29 = vld [vmem:[#allocation130_spill] sm:$0xff]  ;;  %v526_v25 = vsel %vm500_vm1, %v5089_v5, %v5088_v36  ;;  %v5093_v12 = vld [vmem:[#allocation132_spill] sm:$0xff]  ;;  %v3236_v17 = vpop.permute.xlu0 %978  ;;  %1257 = vrot.lane.b32.xlu0 %v2253_v39, %s1867_s3 }
 0x1cc   : > { %5083 = vst [vmem:[#allocation172_spill] sm:$0xff] %v3197_v58  ;;  %v3207_v49 = vadd.f32 %v581_v52, %v5086_v29  ;;  %v5091_v31 = vld [vmem:[#allocation114_spill] sm:$0xff]  ;;  %v3218_v58 = vpop.permute.xlu1 %980  ;;  %v3221_v26 = vadd.f32 %v578_v9, %v5093_v12  ;;  %5095 = vst [vmem:[#allocation132_spill] sm:$0xff] %v3224_v37  ;;  %v607_v52 = vmul.f32 %v2856_v44, %v547_v6  ;;  %v5101_v9 = vld [vmem:[#allocation45_spill] sm:$0xff] }
 0x1cd   : > { %v806_v13 = vsel %vm759_vm2, %v5091_v31, %v5090_v28  ;;  %5092 = vst [vmem:[#allocation43_spill] sm:$0xff] %v3218_v58  ;;  %v3228_v29 = vld [vmem:[%s2043_s27 + $0x3] ss:$8 sm:$0x7]  ;;  %5098 = vst [vmem:[#allocation174_spill] sm:$0xff] %v3236_v17  ;;  %v869_v11 = vmul.f32 %v3154_v34, %v807_v14 }
 0x1ce   : > { %5087 = vst [vmem:[#allocation130_spill] sm:$0xff] %v3207_v49  ;;  %5094 = vst [vmem:[#allocation27_spill] sm:$0xff] %v3221_v26  ;;  %v5096_v49 = vld [vmem:[#allocation131_spill] sm:$0xff]  ;;  %v5099_v28 = vld [vmem:[#allocation44_spill] sm:$0xff]  ;;  %v866_v14 = vmul.f32 %v3154_v34, %v806_v13  ;;  %1263 = vrot.lane.b32.xlu1 %v2260_v40, %s1867_s3 }
 0x1cf   : > { %v3234_v22 = vsel %vm1018_vm0, %v5096_v49, %v3218_v58  ;;  %v5100_v31 = vld [vmem:[#allocation28_spill] sm:$0xff]  ;;  %v5102_v51 = vld [vmem:[#allocation29_spill] sm:$0xff]  ;;  %v593_v49 = vmul.f32 %v5049_v33, %v526_v25  ;;  %v5106_v58 = vld [vmem:[#allocation46_spill] sm:$0xff]  ;;  %v658_v25 = vadd.f32 %v610_v50, %v3086_v61  ;;  %1261 = vrot.lane.b32.xlu0 %v2263_v41, %s1867_s3 }
 0x1d0   : > { %5097 = vst [vmem:[#allocation173_spill] sm:$0xff] %v3234_v22  ;;  %v525_v12 = vsel %vm500_vm1, %v5100_v31, %v5099_v28  ;;  %v528_v6 = vsel %vm500_vm1, %v5102_v51, %v5101_v9  ;;  %v5103_v37 = vld [vmem:[#allocation133_spill] sm:$0xff]  ;;  %v3256_v22 = vadd.f32 %v584_v32, %v2805_v59  ;;  %v5107_v27 = vld [vmem:[#allocation30_spill] sm:$0xff]  ;;  %v5111_v59 = vld [vmem:[#allocation32_spill] sm:$0xff]  ;;  %v3279_v13 = vpop.permute.xlu1 %984 }
 0x1d1   : > { %v3251_v26 = vsel %vm1018_vm0, %v5103_v37, %v3236_v17  ;;  %v527_v51 = vsel %vm500_vm1, %v5107_v27, %v5106_v58  ;;  %v5108_v37 = vld [vmem:[#allocation47_spill] sm:$0xff]  ;;  %v5110_v17 = vld [vmem:[#allocation48_spill] sm:$0xff]  ;;  %v590_v39 = vmul.f32 %v5049_v33, %v525_v12  ;;  %v599_v34 = vmul.f32 %v5049_v33, %v528_v6 }
 0x1d2   : > { %5104 = vst [vmem:[#allocation44_spill] sm:$0xff] %v3251_v26  ;;  %5105 = vst [vmem:[#allocation28_spill] sm:$0xff] %v3256_v22  ;;  %v5109_v26 = vld [vmem:[#allocation31_spill] sm:$0xff]  ;;  %v529_v32 = vsel %vm500_vm1, %v5111_v59, %v5110_v17  ;;  %v3277_v22 = vrot.slane %v3228_v29, %v2757_v45  ;;  %v655_v58 = vadd.f32 %v607_v52, %v3102_v23  ;;  %v3288_v17 = vpop.permute.xlu0 %982  ;;  %1267 = vrot.lane.b32.xlu1 %v2270_v42, %s1867_s3 }
 0x1d3   : > { %v530_v38 = vsel %vm500_vm1, %v5109_v26, %v5108_v37  ;;  %v1050_v37 = vsel %vm1018_vm0, %v2831_v48, %v3279_v13  ;;  %v596_v61 = vmul.f32 %v5049_v33, %v527_v51  ;;  %v917_v50 = vadd.f32 %v869_v11, %v658_v25  ;;  %v5113_v51 = vld [vmem:[#allocation49_spill] sm:$0xff]  ;;  %v5114_v11 = vld [vmem:[#allocation50_spill] sm:$0xff]  ;;  %1265 = vrot.lane.b32.xlu0 %v2273_v43, %s1867_s3 }
 0x1d4   : > { %5112 = vst [vmem:[#allocation45_spill] sm:$0xff] %v3277_v22  ;;  %v1128_v45 = vmul.f32 %v3277_v22, %v1050_v37  ;;  %v1049_v12 = vsel %vm1018_vm0, %v2841_v57, %v3288_v17  ;;  %v605_v23 = vmul.f32 %v5049_v33, %v530_v38  ;;  %v602_v52 = vmul.f32 %v5049_v33, %v529_v32  ;;  %v5115_v38 = vld [vmem:[#allocation51_spill] sm:$0xff]  ;;  %v989_v32 = vpop.permute.xlu1 %988 }
 0x1d5   : > { %v914_v6 = vadd.f32 %v866_v14, %v655_v58  ;;  %v1125_v59 = vmul.f32 %v3277_v22, %v1049_v12  ;;  %v532_v37 = vsel %vm500_vm1, %v5068_v35, %v5113_v51  ;;  %v531_v40 = vsel %vm500_vm1, %v5077_v21, %v5114_v11 }
 0x1d6   : > { %v534_v58 = vsel %vm500_vm1, %v5115_v38, %v5034_v24  ;;  %v3315_v14 = vadd.f32 %v1128_v45, %v917_v50  ;;  %v502_v41 = vsel %vm500_vm1, %v5033_v20, %v5115_v38  ;;  %v3326_v35 = vsel %vm1018_vm0, %v2875_v15, %v989_v32  ;;  %v987_v45 = vpop.permute.xlu0 %986  ;;  %v5120_v24 = vld [vmem:[#allocation52_spill] sm:$0xff]  ;;  %1271 = vrot.lane.b32.xlu1 %v5015_v4, %s1867_s3 }
 0x1d7   : > { %v3321_v25 = vadd.f32 %v1125_v59, %v914_v6  ;;  %5118 = vst [vmem:[#allocation49_spill] sm:$0xff] %v3326_v35  ;;  %v3331_v21 = vsel %vm1018_vm0, %v989_v32, %v2703_v55  ;;  %v501_v50 = vsel %vm500_vm1, %v5039_v30, %v5120_v24  ;;  %v533_v20 = vsel %vm500_vm1, %v5120_v24, %v5040_v10  ;;  %v5123_v59 = vld [vmem:[#allocation134_spill] sm:$0xff] }
 0x1d8   : > { %5116 = vst [vmem:[#allocation30_spill] sm:$0xff] %v3315_v14  ;;  %5119 = vst [vmem:[#allocation50_spill] sm:$0xff] %v3331_v21  ;;  %v3344_v15 = vsel %vm1018_vm0, %v2890_v0, %v987_v45  ;;  %v3349_v55 = vsel %vm1018_vm0, %v987_v45, %v2705_v54  ;;  %v3354_v30 = vadd.f32 %v593_v49, %v5123_v59  ;;  %v5124_v0 = vld [vmem:[#allocation135_spill] sm:$0xff]  ;;  %v5125_v54 = vld [vmem:[#allocation136_spill] sm:$0xff]  ;;  %v993_v45 = vpop.permute.xlu1 %992  ;;  %1269 = vrot.lane.b32.xlu0 %v5020_v8, %s1867_s3 }
 0x1d9   : > { %5117 = vst [vmem:[#allocation31_spill] sm:$0xff] %v3321_v25  ;;  %5121 = vst [vmem:[#allocation51_spill] sm:$0xff] %v3344_v15  ;;  %v611_v12 = vmul.f32 %v5049_v33, %v532_v37  ;;  %v608_v10 = vmul.f32 %v5049_v33, %v531_v40  ;;  %v568_v6 = vmul.f32 %v2856_v44, %v534_v58  ;;  %v5137_v8 = vld [vmem:[#allocation139_spill] sm:$0xff]  ;;  %v5158_v25 = vld [vmem:[#allocation13_spill] sm:$0xff] }
 0x1da   : > { %5122 = vst [vmem:[#allocation52_spill] sm:$0xff] %v3349_v55  ;;  %v3362_v38 = vadd.f32 %v590_v39, %v5124_v0  ;;  %v3365_v32 = vadd.f32 %v599_v34, %v5125_v54  ;;  %v3368_v42 = vadd.f32 %v596_v61, %v2833_v56  ;;  %v570_v49 = vmul.f32 %v2859_v1, %v502_v41  ;;  %v991_v39 = vpop.permute.xlu0 %990  ;;  %v5136_v41 = vld [vmem:[#allocation19_spill] sm:$0xff]  ;;  %v5240_v15 = vld [vmem:[#allocation69_spill] sm:$0xff] }
 0x1db   : > { %v565_v37 = vmul.f32 %v2856_v44, %v533_v20  ;;  %v567_v33 = vmul.f32 %v2859_v1, %v501_v50  ;;  %v3376_v43 = vsel %vm1018_vm0, %v2929_v3, %v993_v45  ;;  %v3381_v34 = vsel %vm1018_vm0, %v993_v45, %v2711_v63  ;;  %v5138_v20 = vld [vmem:[#allocation138_spill] sm:$0xff]  ;;  %v5143_v45 = vld [vmem:[#allocation23_spill] sm:$0xff] }
 0x1dc   : > { %5126 = vst [vmem:[#allocation134_spill] sm:$0xff] %v3376_v43  ;;  %5127 = vst [vmem:[#allocation135_spill] sm:$0xff] %v3381_v34  ;;  %v3384_v56 = vadd.f32 %v605_v23, %v2835_v46  ;;  %v3387_v61 = vadd.f32 %v602_v52, %v2837_v18  ;;  %v3392_v40 = vsel %vm1018_vm0, %v2945_v62, %v991_v39  ;;  %v5131_v62 = vld [vmem:[#allocation53_spill] sm:$0xff]  ;;  %v5134_v52 = vld [vmem:[#allocation54_spill] sm:$0xff]  ;;  %v997_v24 = vpop.permute.xlu1 %996 }
 0x1dd   : > { %5128 = vst [vmem:[#allocation136_spill] sm:$0xff] %v3392_v40  ;;  %v3397_v3 = vsel %vm1018_vm0, %v991_v39, %v2713_v53  ;;  %v3402_v63 = vadd.f32 %v611_v12, %v2843_v60  ;;  %v3405_v46 = vadd.f32 %v608_v10, %v2845_v19  ;;  %v3408_v18 = vadd.f32 %v568_v6, %v2866_v2  ;;  %v5132_v53 = vld [vmem:[#allocation137_spill] sm:$0xff]  ;;  %v5135_v2 = vld [vmem:[#allocation38_spill] sm:$0xff]  ;;  %v5141_v6 = vld [vmem:[#allocation115_spill] sm:$0xff] }
 0x1de   : > { %5129 = vst [vmem:[#allocation175_spill] sm:$0xff] %v3397_v3  ;;  %v536_v23 = vsel %vm500_vm1, %v5131_v62, %v5044_v47  ;;  %v3417_v4 = vadd.f32 %v570_v49, %v5132_v53  ;;  %v5133_v60 = vld [vmem:[#allocation37_spill] sm:$0xff]  ;;  %v503_v58 = vsel %vm500_vm1, %v5135_v2, %v5134_v52  ;;  %v535_v47 = vsel %vm500_vm1, %v5134_v52, %v5136_v41  ;;  %v995_v54 = vpop.permute.xlu0 %994  ;;  %v5144_v39 = vld [vmem:[#allocation55_spill] sm:$0xff]  ;;  %v5147_v53 = vld [vmem:[#allocation116_spill] sm:$0xff] }
 0x1df   : > { %5130 = vst [vmem:[#allocation176_spill] sm:$0xff] %v3405_v46  ;;  %v504_v19 = vsel %vm500_vm1, %v5133_v60, %v5131_v62  ;;  %v3432_v50 = vadd.f32 %v565_v37, %v5137_v8  ;;  %v3435_v59 = vadd.f32 %v567_v33, %v5138_v20  ;;  %v5139_v12 = vld [vmem:[#allocation157_spill] sm:$0xff]  ;;  %v3445_v0 = vsel %vm1018_vm0, %v997_v24, %v5141_v6  ;;  %v5145_v33 = vld [vmem:[#allocation160_spill] sm:$0xff]  ;;  %v1710_v52 = vld [vmem:[%s2053_s4 + $0x178] sm:$0xff] }
 0x1e0   : > { %v3440_v10 = vsel %vm1018_vm0, %v5139_v12, %v997_v24  ;;  %5142 = vst [vmem:[#allocation137_spill] sm:$0xff] %v3445_v0  ;;  %v574_v49 = vmul.f32 %v2856_v44, %v536_v23  ;;  %v538_v37 = vsel %vm500_vm1, %v5144_v39, %v5143_v45  ;;  %v3455_v62 = vsel %vm1018_vm0, %v5145_v33, %v995_v54  ;;  %v5149_v24 = vld [vmem:[#allocation39_spill] sm:$0xff]  ;;  %v5150_v12 = vld [vmem:[#allocation56_spill] sm:$0xff]  ;;  %v5214_v3 = vld [vmem:[#allocation170_spill] sm:$0xff] }
 0x1e1   : > { %5140 = vst [vmem:[#allocation53_spill] sm:$0xff] %v3440_v10  ;;  %5146 = vst [vmem:[#allocation37_spill] sm:$0xff] %v3455_v62  ;;  %v3460_v60 = vsel %vm1018_vm0, %v995_v54, %v5147_v53  ;;  %1275 = vrot.lane.b32.xlu1 %v1710_v52, %s1867_s3  ;;  %v576_v23 = vmul.f32 %v2859_v1, %v504_v19  ;;  %v571_v2 = vmul.f32 %v2856_v44, %v535_v47  ;;  %v1711_v20 = vld [vmem:[%s2053_s4 + $0x160] sm:$0xff]  ;;  %v5151_v6 = vld [vmem:[#allocation40_spill] sm:$0xff]  ;;  %v1001_v52 = vpop.permute.xlu1 %1000 }
 0x1e2   : > { %5148 = vst [vmem:[#allocation54_spill] sm:$0xff] %v3460_v60  ;;  %v573_v41 = vmul.f32 %v2859_v1, %v503_v58  ;;  %v506_v8 = vsel %vm500_vm1, %v5149_v24, %v5144_v39  ;;  %1273 = vrot.lane.b32.xlu0 %v1711_v20, %s1867_s3  ;;  %v505_v54 = vsel %vm500_vm1, %v5151_v6, %v5150_v12  ;;  %v5152_v45 = vld [vmem:[#allocation24_spill] sm:$0xff]  ;;  %v5153_v47 = vld [vmem:[#allocation57_spill] sm:$0xff]  ;;  %v5156_v20 = vld [vmem:[#allocation26_spill] sm:$0xff]  ;;  %v999_v14 = vpop.permute.xlu0 %998 }
 0x1e3   : > { %v537_v19 = vsel %vm500_vm1, %v5150_v12, %v5152_v45  ;;  %v5154_v58 = vld [vmem:[#allocation41_spill] sm:$0xff]  ;;  %v580_v24 = vmul.f32 %v2856_v44, %v538_v37  ;;  %v5157_v6 = vld [vmem:[#allocation58_spill] sm:$0xff]  ;;  %v3497_v12 = vsel %vm1018_vm0, %v5158_v25, %v1001_v52  ;;  %v5165_v25 = vld [vmem:[#allocation119_spill] sm:$0xff] }
 0x1e4   : > { %v508_v33 = vsel %vm500_vm1, %v5154_v58, %v5153_v47  ;;  %v5155_v53 = vld [vmem:[#allocation25_spill] sm:$0xff]  ;;  %v539_v46 = vsel %vm500_vm1, %v5157_v6, %v5156_v20  ;;  %5159 = vst [vmem:[#allocation38_spill] sm:$0xff] %v3497_v12  ;;  %v5160_v45 = vld [vmem:[#allocation118_spill] sm:$0xff]  ;;  %v3517_v12 = vsel %vm1018_vm0, %v999_v14, %v5165_v25 }
 0x1e5   : > { %v540_v39 = vsel %vm500_vm1, %v5153_v47, %v5155_v53  ;;  %v3502_v58 = vsel %vm1018_vm0, %v1001_v52, %v5160_v45  ;;  %v582_v47 = vmul.f32 %v2859_v1, %v506_v8  ;;  %v5162_v37 = vld [vmem:[#allocation42_spill] sm:$0xff]  ;;  %5166 = vst [vmem:[#allocation138_spill] sm:$0xff] %v3517_v12  ;;  %v577_v52 = vmul.f32 %v2856_v44, %v537_v19  ;;  %v5167_v62 = vld [vmem:[#allocation141_spill] sm:$0xff]  ;;  %v1005_v25 = vpop.permute.xlu1 %1004 }
 0x1e6   : > { %5161 = vst [vmem:[#allocation19_spill] sm:$0xff] %v3502_v58  ;;  %v507_v53 = vsel %vm500_vm1, %v5162_v37, %v5157_v6  ;;  %v5163_v60 = vld [vmem:[#allocation162_spill] sm:$0xff]  ;;  %v579_v45 = vmul.f32 %v2859_v1, %v505_v54  ;;  %v586_v8 = vmul.f32 %v2856_v44, %v540_v39  ;;  %v588_v58 = vmul.f32 %v2859_v1, %v508_v33  ;;  %v5168_v37 = vld [vmem:[#allocation143_spill] sm:$0xff]  ;;  %v5170_v12 = vld [vmem:[#allocation145_spill] sm:$0xff] }
 0x1e7   : > { %v3512_v20 = vsel %vm1018_vm0, %v5163_v60, %v999_v14  ;;  %v3524_v6 = vadd.f32 %v574_v49, %v5167_v62  ;;  %v3527_v0 = vadd.f32 %v576_v23, %v5168_v37  ;;  %v5169_v60 = vld [vmem:[#allocation144_spill] sm:$0xff]  ;;  %v583_v14 = vmul.f32 %v2856_v44, %v539_v46  ;;  %v1003_v23 = vpop.permute.xlu0 %1002  ;;  %v5176_v46 = vld [vmem:[#allocation147_spill] sm:$0xff]  ;;  %v5188_v10 = vld [vmem:[#allocation154_spill] sm:$0xff] }
 0x1e8   : > { %5164 = vst [vmem:[#allocation139_spill] sm:$0xff] %v3512_v20  ;;  %v3530_v20 = vadd.f32 %v571_v2, %v5169_v60  ;;  %v3534_v19 = vadd.f32 %v573_v41, %v5170_v12  ;;  %v585_v54 = vmul.f32 %v2859_v1, %v507_v53  ;;  %v5171_v39 = vld [vmem:[#allocation164_spill] sm:$0xff]  ;;  %v5175_v2 = vld [vmem:[#allocation146_spill] sm:$0xff]  ;;  %v3551_v60 = vadd.f32 %v582_v47, %v5176_v46  ;;  %v5179_v53 = vld [vmem:[#allocation121_spill] sm:$0xff] }
 0x1e9   : > { %v3540_v33 = vsel %vm1018_vm0, %v5171_v39, %v1005_v25  ;;  %v5173_v49 = vld [vmem:[#allocation120_spill] sm:$0xff]  ;;  %v3548_v37 = vadd.f32 %v580_v24, %v5175_v2  ;;  %v5177_v41 = vld [vmem:[#allocation166_spill] sm:$0xff]  ;;  %v3561_v39 = vsel %vm1018_vm0, %v1003_v23, %v5179_v53  ;;  %v5186_v47 = vld [vmem:[#allocation153_spill] sm:$0xff] }
 0x1ea   : > { %5172 = vst [vmem:[#allocation157_spill] sm:$0xff] %v3540_v33  ;;  %v3545_v62 = vsel %vm1018_vm0, %v1005_v25, %v5173_v49  ;;  %v3556_v12 = vsel %vm1018_vm0, %v5177_v41, %v1003_v23  ;;  %5180 = vst [vmem:[#allocation55_spill] sm:$0xff] %v3561_v39  ;;  %v5181_v33 = vld [vmem:[#allocation149_spill] sm:$0xff]  ;;  %v5182_v49 = vld [vmem:[#allocation150_spill] sm:$0xff]  ;;  %v3573_v46 = vadd.f32 %v588_v58, %v5186_v47  ;;  %v1009_v58 = vpop.permute.xlu1 %1008 }
 0x1eb   : > { %5174 = vst [vmem:[#allocation115_spill] sm:$0xff] %v3545_v62  ;;  %5178 = vst [vmem:[#allocation23_spill] sm:$0xff] %v3556_v12  ;;  %v3564_v25 = vadd.f32 %v577_v52, %v5181_v33  ;;  %v3567_v62 = vadd.f32 %v579_v45, %v5182_v49  ;;  %v5184_v24 = vld [vmem:[#allocation152_spill] sm:$0xff]  ;;  %v3576_v41 = vadd.f32 %v583_v14, %v5188_v10  ;;  %v5190_v12 = vld [vmem:[#allocation59_spill] sm:$0xff] }
 0x1ec   : > { %v3570_v2 = vadd.f32 %v586_v8, %v5184_v24  ;;  %5187 = vst [vmem:[#allocation39_spill] sm:$0xff] %v3573_v46  ;;  %v510_v23 = vsel %vm500_vm1, %v5088_v36, %v5190_v12  ;;  %v542_v52 = vsel %vm500_vm1, %v5190_v12, %v5089_v5  ;;  %v5191_v45 = vld [vmem:[#allocation60_spill] sm:$0xff]  ;;  %v5192_v33 = vld [vmem:[#allocation155_spill] sm:$0xff]  ;;  %v5194_v10 = vld [vmem:[#allocation65_spill] sm:$0xff]  ;;  %v3600_v36 = vsel %vm1018_vm0, %v3159_v7, %v1009_v58 }
 0x1ed   : > { %5183 = vst [vmem:[#allocation160_spill] sm:$0xff] %v3567_v62  ;;  %5189 = vst [vmem:[#allocation56_spill] sm:$0xff] %v3576_v41  ;;  %v541_v8 = vsel %vm500_vm1, %v5191_v45, %v5100_v31  ;;  %v3591_v53 = vadd.f32 %v585_v54, %v5192_v33  ;;  %v516_v14 = vsel %vm500_vm1, %v5113_v51, %v5194_v10  ;;  %v5196_v5 = vld [vmem:[#allocation124_spill] sm:$0xff]  ;;  %v1007_v31 = vpop.permute.xlu0 %1006  ;;  %v5198_v49 = vld [vmem:[#allocation66_spill] sm:$0xff] }
 0x1ee   : > { %5185 = vst [vmem:[#allocation116_spill] sm:$0xff] %v3570_v2  ;;  %5195 = vst [vmem:[#allocation24_spill] sm:$0xff] %v3600_v36  ;;  %v3605_v12 = vsel %vm1018_vm0, %v1009_v58, %v5196_v5  ;;  %v509_v54 = vsel %vm500_vm1, %v5099_v28, %v5191_v45  ;;  %v515_v51 = vsel %vm500_vm1, %v5114_v11, %v5198_v49  ;;  %v5199_v24 = vld [vmem:[#allocation171_spill] sm:$0xff]  ;;  %v5201_v47 = vld [vmem:[#allocation126_spill] sm:$0xff] }
 0x1ef   : > { %5193 = vst [vmem:[#allocation40_spill] sm:$0xff] %v3591_v53  ;;  %5197 = vst [vmem:[#allocation57_spill] sm:$0xff] %v3605_v12  ;;  %v3618_v7 = vsel %vm1018_vm0, %v5199_v24, %v1007_v31  ;;  %v3623_v58 = vsel %vm1018_vm0, %v1007_v31, %v5201_v47  ;;  %v592_v33 = vmul.f32 %v2856_v44, %v542_v52  ;;  %v5203_v45 = vld [vmem:[#allocation113_spill] sm:$0xff]  ;;  %v5208_v47 = vld [vmem:[#allocation98_spill] sm:$0xff] }
 0x1f0   : > { %5200 = vst [vmem:[#allocation41_spill] sm:$0xff] %v3618_v7  ;;  %5202 = vst [vmem:[#allocation25_spill] sm:$0xff] %v3623_v58  ;;  %v594_v10 = vmul.f32 %v2859_v1, %v510_v23  ;;  %v589_v28 = vmul.f32 %v2856_v44, %v541_v8  ;;  %v5204_v5 = vld [vmem:[#allocation97_spill] sm:$0xff]  ;;  %v612_v52 = vmul.f32 %v2859_v1, %v516_v14  ;;  %v5207_v23 = vld [vmem:[#allocation114_spill] sm:$0xff]  ;;  %v1013_v58 = vpop.permute.xlu1 %1012 }
 0x1f1   : > { %v775_v11 = vsel %vm759_vm2, %v5204_v5, %v5203_v45  ;;  %v5205_v49 = vld [vmem:[#allocation61_spill] sm:$0xff]  ;;  %v774_v8 = vsel %vm759_vm2, %v5208_v47, %v5207_v23  ;;  %v5209_v45 = vld [vmem:[#allocation62_spill] sm:$0xff]  ;;  %v5210_v36 = vld [vmem:[#allocation43_spill] sm:$0xff]  ;;  %v591_v23 = vmul.f32 %v2859_v1, %v509_v54 }
 0x1f2   : > { %v512_v24 = vsel %vm500_vm1, %v5101_v9, %v5205_v49  ;;  %v5206_v7 = vld [vmem:[#allocation29_spill] sm:$0xff]  ;;  %v543_v12 = vsel %vm500_vm1, %v5209_v45, %v5107_v27  ;;  %v609_v9 = vmul.f32 %v2859_v1, %v515_v51  ;;  %v3653_v39 = vsel %vm1018_vm0, %v5210_v36, %v1013_v58  ;;  %v5215_v34 = vld [vmem:[#allocation174_spill] sm:$0xff]  ;;  %v5300_v46 = vld [vmem:[#allocation95_spill] sm:$0xff] }
 0x1f3   : > { %v544_v31 = vsel %vm500_vm1, %v5205_v49, %v5206_v7  ;;  %5211 = vst [vmem:[#allocation26_spill] sm:$0xff] %v3653_v39  ;;  %v5212_v7 = vld [vmem:[#allocation131_spill] sm:$0xff]  ;;  %v1011_v49 = vpop.permute.xlu0 %1010  ;;  %v871_v40 = vmul.f32 %v5214_v3, %v775_v11  ;;  %v5217_v51 = vld [vmem:[#allocation133_spill] sm:$0xff]  ;;  %v5219_v39 = vld [vmem:[#allocation156_spill] sm:$0xff]  ;;  %v868_v11 = vmul.f32 %v5214_v3, %v774_v8 }
 0x1f4   : > { %v3658_v14 = vsel %vm1018_vm0, %v1013_v58, %v5212_v7  ;;  %v3665_v27 = vsel %vm1018_vm0, %v5215_v34, %v1011_v49  ;;  %v3670_v36 = vsel %vm1018_vm0, %v1011_v49, %v5217_v51  ;;  %v3673_v43 = vadd.f32 %v592_v33, %v5219_v39  ;;  %v5221_v7 = vld [vmem:[#allocation46_spill] sm:$0xff]  ;;  %v1017_v39 = vpop.permute.xlu1 %1016  ;;  %v5225_v33 = vld [vmem:[#allocation63_spill] sm:$0xff] }
 0x1f5   : > { %5213 = vst [vmem:[#allocation58_spill] sm:$0xff] %v3658_v14  ;;  %5216 = vst [vmem:[#allocation13_spill] sm:$0xff] %v3665_v27  ;;  %v598_v58 = vmul.f32 %v2856_v44, %v544_v31  ;;  %v511_v54 = vsel %vm500_vm1, %v5221_v7, %v5209_v45  ;;  %v600_v34 = vmul.f32 %v2859_v1, %v512_v24  ;;  %v5222_v14 = vld [vmem:[#allocation21_spill] sm:$0xff]  ;;  %v5223_v49 = vld [vmem:[#allocation122_spill] sm:$0xff] }
 0x1f6   : > { %5218 = vst [vmem:[#allocation118_spill] sm:$0xff] %v3670_v36  ;;  %5220 = vst [vmem:[#allocation42_spill] sm:$0xff] %v3673_v43  ;;  %v595_v27 = vmul.f32 %v2856_v44, %v543_v12  ;;  %v660_v55 = vadd.f32 %v612_v52, %v5222_v14  ;;  %v3686_v51 = vrot.slane %v3228_v29, %v5223_v49  ;;  %v5226_v36 = vld [vmem:[#allocation125_spill] sm:$0xff]  ;;  %v5248_v53 = vld [vmem:[#allocation86_spill] sm:$0xff] }
 0x1f7   : > { %v546_v31 = vsel %vm500_vm1, %v5225_v33, %v5109_v26  ;;  %v657_v45 = vadd.f32 %v609_v9, %v5226_v36  ;;  %v3696_v24 = vsel %vm1018_vm0, %v3279_v13, %v1017_v39  ;;  %v1066_v12 = vsel %vm1018_vm0, %v1017_v39, %v2831_v48  ;;  %v1015_v52 = vpop.permute.xlu0 %1014  ;;  %v5229_v13 = vld [vmem:[#allocation47_spill] sm:$0xff]  ;;  %v5230_v36 = vld [vmem:[#allocation32_spill] sm:$0xff]  ;;  %v5249_v41 = vld [vmem:[#allocation70_spill] sm:$0xff] }
 0x1f8   : > { %5224 = vst [vmem:[#allocation162_spill] sm:$0xff] %v3686_v51  ;;  %5227 = vst [vmem:[#allocation119_spill] sm:$0xff] %v3696_v24  ;;  %v919_v8 = vadd.f32 %v871_v40, %v660_v55  ;;  %v1130_v14 = vmul.f32 %v3686_v51, %v1066_v12  ;;  %v3705_v7 = vsel %vm1018_vm0, %v3288_v17, %v1015_v52  ;;  %v5231_v48 = vld [vmem:[#allocation64_spill] sm:$0xff]  ;;  %v3730_v24 = vpop.permute.xlu1 %1183  ;;  %v5301_v2 = vld [vmem:[#allocation79_spill] sm:$0xff] }
 0x1f9   : > { %5228 = vst [vmem:[#allocation141_spill] sm:$0xff] %v3705_v7  ;;  %v1065_v26 = vsel %vm1018_vm0, %v1015_v52, %v2841_v57  ;;  %v514_v9 = vsel %vm500_vm1, %v5229_v13, %v5225_v33  ;;  %v545_v55 = vsel %vm500_vm1, %v5231_v48, %v5230_v36  ;;  %v916_v40 = vadd.f32 %v868_v11, %v657_v45  ;;  %v5232_v12 = vld [vmem:[#allocation48_spill] sm:$0xff]  ;;  %v5233_v52 = vld [vmem:[#allocation83_spill] sm:$0xff]  ;;  %v5239_v36 = vld [vmem:[#allocation85_spill] sm:$0xff] }
 0x1fa   : > { %v1127_v39 = vmul.f32 %v3686_v51, %v1065_v26  ;;  %v597_v17 = vmul.f32 %v2859_v1, %v511_v54  ;;  %v513_v57 = vsel %vm500_vm1, %v5232_v12, %v5231_v48  ;;  %v5234_v7 = vld [vmem:[#allocation67_spill] sm:$0xff]  ;;  %v3728_v13 = vadd.f32 %v1130_v14, %v919_v8  ;;  %5236 = vst [vmem:[#allocation144_spill] sm:$0xff] %v3730_v24  ;;  %v5237_v45 = vld [vmem:[#allocation84_spill] sm:$0xff]  ;;  %v5243_v8 = vld [vmem:[#allocation158_spill] sm:$0xff] }
 0x1fb   : > { %v777_v33 = vsel %vm759_vm2, %v5234_v7, %v5233_v52  ;;  %v604_v11 = vmul.f32 %v2856_v44, %v546_v31  ;;  %v5238_v26 = vld [vmem:[#allocation68_spill] sm:$0xff]  ;;  %v779_v48 = vsel %vm759_vm2, %v5240_v15, %v5239_v36  ;;  %v3743_v51 = vpop.permute.xlu0 %1181  ;;  %v3746_v14 = vadd.f32 %v594_v10, %v5243_v8 }
 0x1fc   : > { %5235 = vst [vmem:[#allocation143_spill] sm:$0xff] %v3728_v13  ;;  %v776_v54 = vsel %vm759_vm2, %v5238_v26, %v5237_v45  ;;  %v3741_v12 = vadd.f32 %v1127_v39, %v916_v40  ;;  %5242 = vst [vmem:[#allocation164_spill] sm:$0xff] %v3743_v51  ;;  %v5245_v13 = vld [vmem:[#allocation161_spill] sm:$0xff]  ;;  %v606_v31 = vmul.f32 %v2859_v1, %v514_v9  ;;  %v5247_v24 = vld [vmem:[#allocation168_spill] sm:$0xff] }
 0x1fd   : > { %5244 = vst [vmem:[#allocation120_spill] sm:$0xff] %v3746_v14  ;;  %v3749_v21 = vadd.f32 %v589_v28, %v5245_v13  ;;  %v601_v35 = vmul.f32 %v2856_v44, %v545_v55  ;;  %v603_v49 = vmul.f32 %v2859_v1, %v513_v57  ;;  %v828_v43 = vmul.f32 %v5247_v24, %v777_v33  ;;  %v5250_v39 = vld [vmem:[#allocation87_spill] sm:$0xff]  ;;  %v5254_v9 = vld [vmem:[#allocation12_spill] sm:$0xff]  ;;  %v3771_v55 = vpop.permute.xlu1 %1187  ;;  %v5259_v51 = vld [vmem:[#allocation17_spill] sm:$0xff] }
 0x1fe   : > { %5241 = vst [vmem:[#allocation145_spill] sm:$0xff] %v3741_v12  ;;  %v778_v40 = vsel %vm759_vm2, %v5249_v41, %v5248_v53  ;;  %v5251_v12 = vld [vmem:[#allocation71_spill] sm:$0xff]  ;;  %v3767_v8 = vadd.f32 %v598_v58, %v5254_v9  ;;  %v825_v44 = vmul.f32 %v5247_v24, %v776_v54  ;;  %v834_v1 = vmul.f32 %v5247_v24, %v779_v48  ;;  %v5257_v57 = vld [vmem:[#allocation16_spill] sm:$0xff]  ;;  %v5261_v14 = vld [vmem:[#allocation14_spill] sm:$0xff] }
 0x1ff   : > { %5246 = vst [vmem:[#allocation146_spill] sm:$0xff] %v3749_v21  ;;  %v781_v10 = vsel %vm759_vm2, %v5251_v12, %v5250_v39  ;;  %v5252_v28 = vld [vmem:[#allocation15_spill] sm:$0xff]  ;;  %5256 = vst [vmem:[#allocation121_spill] sm:$0xff] %v3771_v55  ;;  %v3774_v33 = vadd.f32 %v600_v34, %v5257_v57  ;;  %v3777_v21 = vadd.f32 %v595_v27, %v5259_v51  ;;  %v3785_v58 = vpop.permute.xlu0 %1185  ;;  %v5266_v9 = vld [vmem:[#allocation22_spill] sm:$0xff] }
 0x200   : > { %v3764_v13 = vadd.f32 %v591_v23, %v5252_v28  ;;  %5255 = vst [vmem:[#allocation166_spill] sm:$0xff] %v3767_v8  ;;  %v3780_v22 = vadd.f32 %v597_v17, %v5261_v14  ;;  %v5263_v23 = vld [vmem:[#allocation35_spill] sm:$0xff]  ;;  %5265 = vst [vmem:[#allocation154_spill] sm:$0xff] %v3785_v58  ;;  %v3788_v54 = vadd.f32 %v606_v31, %v5266_v9  ;;  %v5268_v34 = vld [vmem:[#allocation88_spill] sm:$0xff] }
 0x201   : > { %5258 = vst [vmem:[#allocation149_spill] sm:$0xff] %v3774_v33  ;;  %5260 = vst [vmem:[#allocation150_spill] sm:$0xff] %v3777_v21  ;;  %v3783_v28 = vadd.f32 %v604_v11, %v5263_v23  ;;  %v831_v48 = vmul.f32 %v5247_v24, %v778_v40  ;;  %v840_v8 = vmul.f32 %v5247_v24, %v781_v10  ;;  %v5269_v57 = vld [vmem:[#allocation72_spill] sm:$0xff]  ;;  %v5274_v23 = vld [vmem:[#allocation127_spill] sm:$0xff] }
 0x202   : > { %5253 = vst [vmem:[#allocation147_spill] sm:$0xff] %v3764_v13  ;;  %5262 = vst [vmem:[#allocation152_spill] sm:$0xff] %v3780_v22  ;;  %v780_v27 = vsel %vm759_vm2, %v5269_v57, %v5268_v34  ;;  %v5270_v51 = vld [vmem:[#allocation36_spill] sm:$0xff]  ;;  %v5276_v31 = vld [vmem:[#allocation117_spill] sm:$0xff]  ;;  %v789_v62 = vsel %vm759_vm2, %v5301_v2, %v5300_v46 }
 0x203   : > { %5264 = vst [vmem:[#allocation153_spill] sm:$0xff] %v3783_v28  ;;  %5267 = vst [vmem:[#allocation59_spill] sm:$0xff] %v3788_v54  ;;  %v3797_v17 = vadd.f32 %v601_v35, %v5270_v51  ;;  %v5272_v14 = vld [vmem:[#allocation20_spill] sm:$0xff]  ;;  %v3803_v28 = vadd.f32 %v828_v43, %v5274_v23  ;;  %v3807_v9 = vrot.slane %v3228_v29, %v5276_v31  ;;  %v5280_v54 = vld [vmem:[#allocation129_spill] sm:$0xff]  ;;  %v3838_v31 = vpop.permute.xlu0 %1189 }
 0x204   : > { %v3800_v11 = vadd.f32 %v603_v49, %v5272_v14  ;;  %v5278_v40 = vld [vmem:[#allocation128_spill] sm:$0xff]  ;;  %v3813_v22 = vadd.f32 %v834_v1, %v5280_v54  ;;  %v5282_v21 = vld [vmem:[#allocation89_spill] sm:$0xff]  ;;  %v5284_v49 = vld [vmem:[#allocation90_spill] sm:$0xff]  ;;  %v3823_v14 = vpop.permute.xlu1 %1191  ;;  %v837_v29 = vmul.f32 %v5247_v24, %v780_v27  ;;  %5293 = vst [vmem:[#allocation113_spill] sm:$0xff] %v3838_v31 }
 0x205   : > { %5271 = vst [vmem:[#allocation60_spill] sm:$0xff] %v3797_v17  ;;  %5275 = vst [vmem:[#allocation65_spill] sm:$0xff] %v3803_v28  ;;  %v3810_v10 = vadd.f32 %v825_v44, %v5278_v40  ;;  %v5283_v33 = vld [vmem:[#allocation73_spill] sm:$0xff]  ;;  %v5285_v51 = vld [vmem:[#allocation74_spill] sm:$0xff] }
 0x206   : > { %5273 = vst [vmem:[#allocation155_spill] sm:$0xff] %v3800_v11  ;;  %5277 = vst [vmem:[#allocation124_spill] sm:$0xff] %v3807_v9  ;;  %v783_v35 = vsel %vm759_vm2, %v5283_v33, %v5282_v21  ;;  %v782_v43 = vsel %vm759_vm2, %v5285_v51, %v5284_v49  ;;  %v5287_v23 = vld [vmem:[#allocation91_spill] sm:$0xff]  ;;  %v5289_v54 = vld [vmem:[#allocation92_spill] sm:$0xff] }
 0x207   : > { %5279 = vst [vmem:[#allocation66_spill] sm:$0xff] %v3810_v10  ;;  %5281 = vst [vmem:[#allocation171_spill] sm:$0xff] %v3813_v22  ;;  %v5288_v44 = vld [vmem:[#allocation75_spill] sm:$0xff]  ;;  %v5290_v40 = vld [vmem:[#allocation76_spill] sm:$0xff]  ;;  %v843_v31 = vmul.f32 %v5247_v24, %v782_v43 }
 0x208   : > { %5286 = vst [vmem:[#allocation126_spill] sm:$0xff] %v3823_v14  ;;  %v785_v1 = vsel %vm759_vm2, %v5288_v44, %v5287_v23  ;;  %v784_v22 = vsel %vm759_vm2, %v5290_v40, %v5289_v54  ;;  %v5291_v10 = vld [vmem:[#allocation93_spill] sm:$0xff]  ;;  %v5294_v11 = vld [vmem:[#allocation172_spill] sm:$0xff]  ;;  %v5296_v27 = vld [vmem:[#allocation130_spill] sm:$0xff]  ;;  %v3871_v46 = vpop.permute.xlu1 %1195 }
 0x209   : > { %v5292_v28 = vld [vmem:[#allocation77_spill] sm:$0xff]  ;;  %v3841_v17 = vadd.f32 %v831_v48, %v5294_v11  ;;  %v3844_v14 = vadd.f32 %v840_v8, %v5296_v27  ;;  %v5298_v58 = vld [vmem:[#allocation94_spill] sm:$0xff]  ;;  %v5303_v48 = vld [vmem:[#allocation80_spill] sm:$0xff]  ;;  %5306 = vst [vmem:[#allocation29_spill] sm:$0xff] %v3871_v46 }
 0x20a   : > { %v787_v9 = vsel %vm759_vm2, %v5292_v28, %v5291_v10  ;;  %v5299_v55 = vld [vmem:[#allocation78_spill] sm:$0xff]  ;;  %v846_v10 = vmul.f32 %v5247_v24, %v783_v35  ;;  %v5302_v28 = vld [vmem:[#allocation96_spill] sm:$0xff]  ;;  %v5304_v11 = vld [vmem:[#allocation81_spill] sm:$0xff] }
 0x20b   : > { %5295 = vst [vmem:[#allocation97_spill] sm:$0xff] %v3841_v17  ;;  %5297 = vst [vmem:[#allocation61_spill] sm:$0xff] %v3844_v14  ;;  %v786_v13 = vsel %vm759_vm2, %v5299_v55, %v5298_v58  ;;  %v788_v8 = vsel %vm759_vm2, %v5303_v48, %v5302_v28  ;;  %v791_v27 = vsel %vm759_vm2, %v5304_v11, %v5204_v5  ;;  %v5305_v35 = vld [vmem:[#allocation99_spill] sm:$0xff]  ;;  %v5310_v11 = vld [vmem:[#allocation100_spill] sm:$0xff] }
 0x20c   : > { %v852_v14 = vmul.f32 %v5247_v24, %v785_v1  ;;  %v849_v17 = vmul.f32 %v5247_v24, %v784_v22  ;;  %v858_v2 = vmul.f32 %v5247_v24, %v787_v9  ;;  %v793_v43 = vsel %vm759_vm2, %v5305_v35, %v5234_v7  ;;  %v5307_v55 = vld [vmem:[#allocation27_spill] sm:$0xff]  ;;  %v3882_v9 = vpop.permute.xlu0 %1193 }
 0x20d   : > { %v3874_v28 = vadd.f32 %v837_v29, %v5307_v55  ;;  %v855_v48 = vmul.f32 %v5247_v24, %v786_v13  ;;  %v864_v5 = vmul.f32 %v5247_v24, %v789_v62  ;;  %v761_v22 = vsel %vm759_vm2, %v5233_v52, %v5305_v35  ;;  %5309 = vst [vmem:[#allocation98_spill] sm:$0xff] %v3882_v9  ;;  %v5311_v13 = vld [vmem:[#allocation132_spill] sm:$0xff] }
 0x20e   : > { %v861_v1 = vmul.f32 %v5247_v24, %v788_v8  ;;  %v870_v7 = vmul.f32 %v5247_v24, %v791_v27  ;;  %v760_v55 = vsel %vm759_vm2, %v5237_v45, %v5310_v11  ;;  %v792_v62 = vsel %vm759_vm2, %v5310_v11, %v5238_v26  ;;  %v5312_v52 = vld [vmem:[#allocation28_spill] sm:$0xff]  ;;  %v5313_v8 = vld [vmem:[#allocation82_spill] sm:$0xff] }
 0x20f   : > { %5308 = vst [vmem:[#allocation114_spill] sm:$0xff] %v3874_v28  ;;  %v3895_v29 = vadd.f32 %v846_v10, %v5311_v13  ;;  %v3898_v35 = vadd.f32 %v843_v31, %v5312_v52  ;;  %v790_v27 = vsel %vm759_vm2, %v5313_v8, %v5208_v47  ;;  %v5314_v28 = vld [vmem:[#allocation169_spill] sm:$0xff]  ;;  %v3906_v45 = vadd.f32 %v852_v14, %v3354_v30  ;;  %v3915_v31 = vpop.permute.xlu1 %1199 }
 0x210   : > { %v827_v9 = vmul.f32 %v5314_v28, %v793_v43  ;;  %v3909_v46 = vadd.f32 %v849_v17, %v3362_v38  ;;  %v3912_v26 = vadd.f32 %v858_v2, %v3365_v32  ;;  %v829_v10 = vmul.f32 %v5214_v3, %v761_v22  ;;  %5318 = vst [vmem:[#allocation170_spill] sm:$0xff] %v3915_v31  ;;  %v3925_v14 = vpop.permute.xlu0 %1197 }
 0x211   : > { %5315 = vst [vmem:[#allocation62_spill] sm:$0xff] %v3906_v45  ;;  %v3918_v11 = vadd.f32 %v855_v48, %v3368_v42  ;;  %v3921_v47 = vadd.f32 %v864_v5, %v3384_v56  ;;  %v824_v43 = vmul.f32 %v5314_v28, %v792_v62  ;;  %v826_v30 = vmul.f32 %v5214_v3, %v760_v55  ;;  %v5325_v42 = vld [vmem:[#allocation101_spill] sm:$0xff]  ;;  %v5326_v48 = vld [vmem:[#allocation102_spill] sm:$0xff] }
 0x212   : > { %5316 = vst [vmem:[#allocation43_spill] sm:$0xff] %v3909_v46  ;;  %5317 = vst [vmem:[#allocation131_spill] sm:$0xff] %v3912_v26  ;;  %v3928_v38 = vadd.f32 %v861_v1, %v3387_v61  ;;  %v3931_v32 = vadd.f32 %v870_v7, %v3402_v63  ;;  %v3934_v2 = vmul.f32 %v5247_v24, %v790_v27  ;;  %v5331_v27 = vld [vmem:[#allocation106_spill] sm:$0xff]  ;;  %v5370_v46 = vld [vmem:[#allocation149_spill] sm:$0xff] }
 0x213   : > { %5319 = vst [vmem:[#allocation174_spill] sm:$0xff] %v3918_v11  ;;  %5320 = vst [vmem:[#allocation133_spill] sm:$0xff] %v3921_v47  ;;  %v795_v56 = vsel %vm759_vm2, %v5325_v42, %v5240_v15  ;;  %v3941_v17 = vadd.f32 %v827_v9, %v3408_v18  ;;  %v763_v61 = vsel %vm759_vm2, %v5239_v36, %v5325_v42  ;;  %v5327_v18 = vld [vmem:[#allocation103_spill] sm:$0xff]  ;;  %v3970_v9 = vpop.permute.xlu1 %1203 }
 0x214   : > { %5321 = vst [vmem:[#allocation156_spill] sm:$0xff] %v3925_v14  ;;  %5322 = vst [vmem:[#allocation46_spill] sm:$0xff] %v3928_v38  ;;  %v762_v63 = vsel %vm759_vm2, %v5248_v53, %v5326_v48  ;;  %v794_v24 = vsel %vm759_vm2, %v5326_v48, %v5249_v41  ;;  %v3956_v15 = vadd.f32 %v829_v10, %v3417_v4  ;;  %v5328_v53 = vld [vmem:[#allocation104_spill] sm:$0xff]  ;;  %v3983_v1 = vpop.permute.xlu0 %1201 }
 0x215   : > { %5323 = vst [vmem:[#allocation21_spill] sm:$0xff] %v3931_v32  ;;  %5324 = vst [vmem:[#allocation63_spill] sm:$0xff] %v3934_v2  ;;  %v765_v5 = vsel %vm759_vm2, %v5250_v39, %v5327_v18  ;;  %v797_v36 = vsel %vm759_vm2, %v5327_v18, %v5251_v12  ;;  %v796_v22 = vsel %vm759_vm2, %v5328_v53, %v5269_v57  ;;  %v5361_v32 = vld [vmem:[#allocation95_spill] sm:$0xff] }
 0x216   : > { %v3973_v4 = vadd.f32 %v824_v43, %v3432_v50  ;;  %v3976_v41 = vadd.f32 %v826_v30, %v3435_v59  ;;  %v833_v39 = vmul.f32 %v5314_v28, %v795_v56  ;;  %v764_v12 = vsel %vm759_vm2, %v5268_v34, %v5328_v53  ;;  %5329 = vst [vmem:[#allocation125_spill] sm:$0xff] %v3983_v1  ;;  %v5330_v50 = vld [vmem:[#allocation105_spill] sm:$0xff]  ;;  %v5332_v43 = vld [vmem:[#allocation107_spill] sm:$0xff]  ;;  %v5334_v56 = vld [vmem:[#allocation108_spill] sm:$0xff] }
 0x217   : > { %v835_v7 = vmul.f32 %v5214_v3, %v763_v61  ;;  %v830_v57 = vmul.f32 %v5314_v28, %v794_v24  ;;  %v832_v55 = vmul.f32 %v5214_v3, %v762_v63  ;;  %v799_v59 = vsel %vm759_vm2, %v5330_v50, %v5283_v33  ;;  %v4013_v42 = vpop.permute.xlu1 %1207 }
 0x218   : > { %v839_v62 = vmul.f32 %v5314_v28, %v797_v36  ;;  %v841_v13 = vmul.f32 %v5214_v3, %v765_v5  ;;  %v836_v34 = vmul.f32 %v5314_v28, %v796_v22  ;;  %v767_v52 = vsel %vm759_vm2, %v5282_v21, %v5330_v50  ;;  %5333 = vst [vmem:[#allocation47_spill] sm:$0xff] %v4013_v42  ;;  %v4043_v36 = vld [vmem:[%s2043_s27 + $0x4] ss:$8 sm:$0x7]  ;;  %s1778_s27 = scalar_lea.vmem %s1777_s26, 12288 }
 0x219   : > { %v838_v8 = vmul.f32 %v5214_v3, %v764_v12  ;;  %v766_v33 = vsel %vm759_vm2, %v5284_v49, %v5331_v27  ;;  %v798_v10 = vsel %vm759_vm2, %v5331_v27, %v5285_v51  ;;  %v801_v30 = vsel %vm759_vm2, %v5332_v43, %v5288_v44  ;;  %v4028_v44 = vpop.permute.xlu0 %1205  ;;  %v5336_v12 = vld [vmem:[#allocation160_spill] sm:$0xff]  ;;  %v5338_v50 = vld [vmem:[#allocation39_spill] sm:$0xff]  ;;  %v5342_v27 = vld [vmem:[#allocation45_spill] sm:$0xff]  ;;  %p1780_p7 = scmp.lt.s32.totalorder %s1778_s27, %s1772_s5 }
 0x21a   : > { %v845_v21 = vmul.f32 %v5314_v28, %v799_v59  ;;  %v769_v49 = vsel %vm759_vm2, %v5287_v23, %v5332_v43  ;;  %v768_v51 = vsel %vm759_vm2, %v5289_v54, %v5334_v56  ;;  %v800_v61 = vsel %vm759_vm2, %v5334_v56, %v5290_v40  ;;  %5335 = vst [vmem:[#allocation32_spill] sm:$0xff] %v4028_v44  ;;  %v5345_v43 = vld [vmem:[#allocation40_spill] sm:$0xff]  ;;  %v5347_v56 = vld [vmem:[#allocation142_spill] sm:$0xff] }
 0x21b   : > { %v881_v48 = vadd.f32 %v833_v39, %v3524_v6  ;;  %v4032_v63 = vadd.f32 %v835_v7, %v3527_v0  ;;  %v878_v24 = vadd.f32 %v830_v57, %v3530_v20  ;;  %v847_v23 = vmul.f32 %v5214_v3, %v767_v52  ;;  %v4051_v22 = vpop.permute.xlu1 %1211  ;;  %v5337_v57 = vld [vmem:[#allocation116_spill] sm:$0xff]  ;;  %v5340_v52 = vld [vmem:[#allocation109_spill] sm:$0xff]  ;;  %p1781_p0 = por %p1780_p7, %p1779_p6 }
 0x21c   : > { %v4037_v18 = vadd.f32 %v832_v55, %v3534_v19  ;;  %v842_v54 = vmul.f32 %v5314_v28, %v798_v10  ;;  %v844_v5 = vmul.f32 %v5214_v3, %v766_v33  ;;  %v851_v40 = vmul.f32 %v5314_v28, %v801_v30  ;;  %v5344_v33 = vld [vmem:[#allocation56_spill] sm:$0xff] }
 0x21d   : > { %v4046_v6 = vadd.f32 %v839_v62, %v3548_v37  ;;  %v853_v0 = vmul.f32 %v5214_v3, %v769_v49  ;;  %v848_v20 = vmul.f32 %v5314_v28, %v800_v61  ;;  %v850_v53 = vmul.f32 %v5214_v3, %v768_v51  ;;  %v4065_v55 = vpop.permute.xlu0 %1209  ;;  %v5339_v62 = vld [vmem:[#allocation77_spill] sm:$0xff]  ;;  %v5348_v61 = vld [vmem:[#allocation120_spill] sm:$0xff]  ;;  %p1782_p4 = pnand %p1781_p0, %p1775_p12 }
 0x21e   : > { %v4054_v19 = vadd.f32 %v841_v13, %v3551_v60  ;;  %v4057_v39 = vadd.f32 %v836_v34, %v3564_v25  ;;  %v4060_v7 = vadd.f32 %v838_v8, %v5336_v12  ;;  %v4063_v37 = vadd.f32 %v845_v21, %v5337_v57  ;;  %v5341_v13 = vld [vmem:[#allocation140_spill] sm:$0xff]  ;;  %v5343_v34 = vld [vmem:[#allocation123_spill] sm:$0xff]  ;;  %v5346_v21 = vld [vmem:[#allocation42_spill] sm:$0xff] }
 0x21f   : > { %v4068_v59 = vadd.f32 %v847_v23, %v5338_v50  ;;  %v803_v60 = vsel %vm759_vm2, %v5340_v52, %v5339_v62  ;;  %v1086_v25 = vmul.f32 %v5342_v27, %v5341_v13  ;;  %v4078_v8 = vrot.slane %v4043_v36, %v5343_v34  ;;  %v5350_v12 = vld [vmem:[#allocation146_spill] sm:$0xff]  ;;  %v5351_v50 = vld [vmem:[#allocation147_spill] sm:$0xff]  ;;  %v4104_v13 = vpop.permute.xlu1 %1215 }
 0x220   : > { %v4081_v10 = vadd.f32 %v842_v54, %v5344_v33  ;;  %v4084_v30 = vadd.f32 %v844_v5, %v5345_v43  ;;  %v4087_v49 = vadd.f32 %v851_v40, %v5346_v21  ;;  %v1083_v51 = vmul.f32 %v5342_v27, %v5347_v56  ;;  %v5353_v54 = vld [vmem:[#allocation93_spill] sm:$0xff]  ;;  %v5354_v34 = vld [vmem:[#allocation110_spill] sm:$0xff] }
 0x221   : > { %v4092_v23 = vadd.f32 %v853_v0, %v5348_v61  ;;  %v4095_v57 = vadd.f32 %v848_v20, %v5350_v12  ;;  %v4098_v62 = vadd.f32 %v850_v53, %v5351_v50  ;;  %v771_v5 = vsel %vm759_vm2, %v5353_v54, %v5340_v52  ;;  %v5355_v33 = vld [vmem:[#allocation78_spill] sm:$0xff]  ;;  %v5356_v53 = vld [vmem:[#allocation144_spill] sm:$0xff]  ;;  %v4119_v52 = vpop.permute.xlu0 %1213 }
 0x222   : > { %v857_v40 = vmul.f32 %v5314_v28, %v803_v60  ;;  %v770_v0 = vsel %vm759_vm2, %v5298_v58, %v5354_v34  ;;  %v802_v20 = vsel %vm759_vm2, %v5354_v34, %v5355_v33  ;;  %v1295_v43 = vsel %vm1277_vm3, %v5356_v53, %v4104_v13  ;;  %v5357_v60 = vld [vmem:[#allocation148_spill] sm:$0xff]  ;;  %v5359_v34 = vld [vmem:[#allocation151_spill] sm:$0xff] }
 0x223   : > { %5349 = vst [vmem:[#allocation64_spill] sm:$0xff] %v4092_v23  ;;  %5352 = vst [vmem:[#allocation48_spill] sm:$0xff] %v4098_v62  ;;  %v1134_v21 = vadd.f32 %v1086_v25, %v3941_v17  ;;  %v1092_v56 = vmul.f32 %v5342_v27, %v5357_v60  ;;  %v1345_v61 = vmul.f32 %v4078_v8, %v1295_v43  ;;  %v5358_v58 = vld [vmem:[#allocation164_spill] sm:$0xff]  ;;  %v5360_v43 = vld [vmem:[#allocation111_spill] sm:$0xff]  ;;  %v4140_v47 = vpop.permute.xlu1 %1219 }
 0x224   : > { %v1294_v12 = vsel %vm1277_vm3, %v5358_v58, %v4119_v52  ;;  %v859_v50 = vmul.f32 %v5214_v3, %v771_v5  ;;  %v1131_v54 = vadd.f32 %v1083_v51, %v3973_v4  ;;  %v1089_v33 = vmul.f32 %v5342_v27, %v5359_v34  ;;  %v5362_v5 = vld [vmem:[#allocation79_spill] sm:$0xff]  ;;  %v5363_v51 = vld [vmem:[#allocation80_spill] sm:$0xff] }
 0x225   : > { %v1342_v17 = vmul.f32 %v4078_v8, %v1294_v12  ;;  %v854_v25 = vmul.f32 %v5314_v28, %v802_v20  ;;  %v856_v60 = vmul.f32 %v5214_v3, %v770_v0  ;;  %v773_v2 = vsel %vm759_vm2, %v5361_v32, %v5360_v43  ;;  %v5364_v34 = vld [vmem:[#allocation112_spill] sm:$0xff]  ;;  %v5365_v0 = vld [vmem:[#allocation121_spill] sm:$0xff]  ;;  %v4154_v32 = vpop.permute.xlu0 %1217 }
 0x226   : > { %v1393_v38 = vadd.f32 %v1345_v61, %v1134_v21  ;;  %v805_v4 = vsel %vm759_vm2, %v5360_v43, %v5362_v5  ;;  %v804_v20 = vsel %vm759_vm2, %v5364_v34, %v5363_v51  ;;  %v1297_v11 = vsel %vm1277_vm3, %v5365_v0, %v4140_v47  ;;  %v5366_v61 = vld [vmem:[#allocation159_spill] sm:$0xff]  ;;  %v5368_v5 = vld [vmem:[#allocation166_spill] sm:$0xff]  ;;  %v5372_v23 = vld [vmem:[#allocation96_spill] sm:$0xff] }
 0x227   : > { %v1390_v12 = vadd.f32 %v1342_v17, %v1131_v54  ;;  %v1140_v21 = vadd.f32 %v1092_v56, %v881_v48  ;;  %v1098_v26 = vmul.f32 %v5342_v27, %v5366_v61  ;;  %v1351_v43 = vmul.f32 %v4078_v8, %v1297_v11  ;;  %v5367_v54 = vld [vmem:[#allocation154_spill] sm:$0xff]  ;;  %v5369_v56 = vld [vmem:[#allocation11_spill] sm:$0xff] }
 0x228   : > { %1441 = vst [vmem:[%s4160_s29 + $0x18] sm:$0xff] %v1393_v38  ;;  %v1296_v17 = vsel %vm1277_vm3, %v5367_v54, %v4154_v32  ;;  %v4169_v51 = vadd.f32 %v857_v40, %v5368_v5  ;;  %v1137_v48 = vadd.f32 %v1089_v33, %v878_v24  ;;  %v1095_v61 = vmul.f32 %v5342_v27, %v5369_v56  ;;  %v4183_v24 = vpop.permute.xlu1 %1223  ;;  %v5375_v56 = vld [vmem:[#allocation18_spill] sm:$0xff] }
 0x229   : > { %1438 = vst [vmem:[%s4160_s29] sm:$0xff] %v1390_v12  ;;  %v1348_v62 = vmul.f32 %v4078_v8, %v1296_v17  ;;  %v4176_v38 = vadd.f32 %v859_v50, %v5370_v46  ;;  %v863_v11 = vmul.f32 %v5314_v28, %v805_v4  ;;  %v772_v45 = vsel %vm759_vm2, %v5372_v23, %v5364_v34  ;;  %v5373_v17 = vld [vmem:[#allocation126_spill] sm:$0xff]  ;;  %v4191_v50 = vpop.permute.xlu0 %1221 }
 0x22a   : > { %v1399_v40 = vadd.f32 %v1351_v43, %v1140_v21  ;;  %v865_v33 = vmul.f32 %v5214_v3, %v773_v2  ;;  %v860_v12 = vmul.f32 %v5314_v28, %v804_v20  ;;  %v1299_v46 = vsel %vm1277_vm3, %v5373_v17, %v4183_v24  ;;  %5374 = vst [vmem:[#allocation67_spill] sm:$0xff] %v4191_v50  ;;  %v5376_v2 = vld [vmem:[#allocation113_spill] sm:$0xff]  ;;  %v5377_v21 = vld [vmem:[#allocation163_spill] sm:$0xff] }
 0x22b   : > { %5371 = vst [vmem:[#allocation83_spill] sm:$0xff] %v4176_v38  ;;  %v1396_v5 = vadd.f32 %v1348_v62, %v1137_v48  ;;  %v1146_v4 = vadd.f32 %v1098_v26, %v4046_v6  ;;  %v1104_v23 = vmul.f32 %v5342_v27, %v5375_v56  ;;  %v1357_v34 = vmul.f32 %v4078_v8, %v1299_v46  ;;  %v5378_v6 = vld [vmem:[#allocation150_spill] sm:$0xff]  ;;  %v5380_v56 = vld [vmem:[#allocation153_spill] sm:$0xff] }
 0x22c   : > { %1447 = vst [vmem:[%s4160_s29 + $0x48] sm:$0xff] %v1399_v40  ;;  %v1298_v28 = vsel %vm1277_vm3, %v5376_v2, %v4191_v50  ;;  %v862_v62 = vmul.f32 %v5214_v3, %v772_v45  ;;  %v1143_v20 = vadd.f32 %v1095_v61, %v4057_v39  ;;  %v1101_v43 = vmul.f32 %v5342_v27, %v5377_v21  ;;  %v5379_v40 = vld [vmem:[#allocation152_spill] sm:$0xff]  ;;  %v4213_v50 = vpop.permute.xlu1 %1227  ;;  %v5381_v3 = vld [vmem:[#allocation59_spill] sm:$0xff]  ;;  %v5383_v39 = vld [vmem:[#allocation165_spill] sm:$0xff] }
 0x22d   : > { %1444 = vst [vmem:[%s4160_s29 + $0x30] sm:$0xff] %v1396_v5  ;;  %v1354_v26 = vmul.f32 %v4078_v8, %v1298_v28  ;;  %v902_v48 = vadd.f32 %v854_v25, %v5378_v6  ;;  %v4210_v46 = vadd.f32 %v856_v60, %v5379_v40  ;;  %v911_v38 = vadd.f32 %v863_v11, %v5380_v56  ;;  %v5384_v28 = vld [vmem:[#allocation29_spill] sm:$0xff]  ;;  %v4224_v60 = vpop.permute.xlu0 %1225  ;;  %v5385_v21 = vld [vmem:[#allocation167_spill] sm:$0xff] }
 0x22e   : > { %v1405_v2 = vadd.f32 %v1357_v34, %v1146_v4  ;;  %v4216_v45 = vadd.f32 %v865_v33, %v5381_v3  ;;  %v1110_v61 = vmul.f32 %v5342_v27, %v5383_v39  ;;  %v1301_v25 = vsel %vm1277_vm3, %v5384_v28, %v4213_v50  ;;  %v5386_v34 = vld [vmem:[#allocation98_spill] sm:$0xff]  ;;  %v5388_v40 = vld [vmem:[#allocation155_spill] sm:$0xff] }
 0x22f   : > { %v1402_v5 = vadd.f32 %v1354_v26, %v1143_v20  ;;  %v1152_v11 = vadd.f32 %v1104_v23, %v4063_v37  ;;  %v1107_v4 = vmul.f32 %v5342_v27, %v5385_v21  ;;  %v1363_v33 = vmul.f32 %v4078_v8, %v1301_v25  ;;  %v5387_v26 = vld [vmem:[#allocation60_spill] sm:$0xff]  ;;  %v5390_v23 = vld [vmem:[#allocation33_spill] sm:$0xff] }
 0x230   : > { %5382 = vst [vmem:[#allocation84_spill] sm:$0xff] %v4216_v45  ;;  %1453 = vst [vmem:[%s4160_s29 + $0x78] sm:$0xff] %v1405_v2  ;;  %v1300_v20 = vsel %vm1277_vm3, %v5386_v34, %v4224_v60  ;;  %v908_v6 = vadd.f32 %v860_v12, %v5387_v26  ;;  %v4237_v56 = vadd.f32 %v862_v62, %v5388_v40  ;;  %v4244_v25 = vpop.permute.xlu1 %1231  ;;  %v5392_v21 = vld [vmem:[#allocation117_spill] sm:$0xff]  ;;  %v5393_v12 = vld [vmem:[#allocation122_spill] sm:$0xff] }
 0x231   : > { %v1149_v3 = vadd.f32 %v1101_v43, %v4081_v10  ;;  %1450 = vst [vmem:[%s4160_s29 + $0x60] sm:$0xff] %v1402_v5  ;;  %v1360_v37 = vmul.f32 %v4078_v8, %v1300_v20  ;;  %v1116_v2 = vmul.f32 %v5342_v27, %v5390_v23  ;;  %v1411_v39 = vadd.f32 %v1363_v33, %v1152_v11  ;;  %v5394_v43 = vld [vmem:[#allocation34_spill] sm:$0xff]  ;;  %v4261_v33 = vpop.permute.xlu0 %1229  ;;  %v5396_v40 = vld [vmem:[#allocation173_spill] sm:$0xff] }
 0x232   : > { %5389 = vst [vmem:[#allocation68_spill] sm:$0xff] %v4237_v56  ;;  %5391 = vst [vmem:[#allocation85_spill] sm:$0xff] %v4244_v25  ;;  %v4248_v45 = vrot.slane %v4043_v36, %v5392_v21  ;;  %v4252_v62 = vrot.slane %v4043_v36, %v5393_v12  ;;  %v1158_v10 = vadd.f32 %v1110_v61, %v4087_v49  ;;  %v5397_v61 = vld [vmem:[#allocation44_spill] sm:$0xff]  ;;  %v5401_v56 = vld [vmem:[#allocation162_spill] sm:$0xff] }
 0x233   : > { %v1113_v5 = vmul.f32 %v5342_v27, %v5394_v43  ;;  %v1408_v20 = vadd.f32 %v1360_v37, %v1149_v3  ;;  %v1303_v11 = vsel %vm1277_vm3, %v3915_v31, %v4244_v25  ;;  %5395 = vst [vmem:[#allocation69_spill] sm:$0xff] %v4261_v33  ;;  %v1155_v26 = vadd.f32 %v1107_v4, %v4095_v57  ;;  %v5398_v37 = vld [vmem:[#allocation49_spill] sm:$0xff]  ;;  %v5399_v21 = vld [vmem:[#allocation124_spill] sm:$0xff]  ;;  %v5400_v43 = vld [vmem:[#allocation50_spill] sm:$0xff] }
 0x234   : > { %v1122_v23 = vmul.f32 %v5342_v27, %v5396_v40  ;;  %1459 = vst [vmem:[%s4160_s29 + $0xa8] sm:$0xff] %v1411_v39  ;;  %v1369_v36 = vmul.f32 %v4078_v8, %v1303_v11  ;;  %v1302_v49 = vsel %vm1277_vm3, %v3925_v14, %v4261_v33  ;;  %v1119_v3 = vmul.f32 %v5342_v27, %v5397_v61  ;;  %v5402_v11 = vld [vmem:[#allocation51_spill] sm:$0xff]  ;;  %v5403_v31 = vld [vmem:[#allocation52_spill] sm:$0xff]  ;;  %v4285_v61 = vpop.permute.xlu1 %1235  ;;  %v5404_v33 = vld [vmem:[#allocation134_spill] sm:$0xff] }
 0x235   : > { %v1087_v12 = vmul.f32 %v5399_v21, %v5398_v37  ;;  %v1088_v57 = vmul.f32 %v5401_v56, %v5400_v43  ;;  %1456 = vst [vmem:[%s4160_s29 + $0x90] sm:$0xff] %v1408_v20  ;;  %v1366_v4 = vmul.f32 %v4078_v8, %v1302_v49  ;;  %v1164_v39 = vadd.f32 %v1116_v2, %v4169_v51  ;;  %v4293_v2 = vpop.permute.xlu0 %1233  ;;  %v5405_v49 = vld [vmem:[#allocation135_spill] sm:$0xff] }
 0x236   : > { %v1084_v40 = vmul.f32 %v5399_v21, %v5402_v11  ;;  %v1085_v14 = vmul.f32 %v5401_v56, %v5403_v31  ;;  %v1417_v27 = vadd.f32 %v1369_v36, %v1158_v10  ;;  %v1161_v37 = vadd.f32 %v1113_v5, %v902_v48 }
 0x237   : > { %v1093_v25 = vmul.f32 %v5399_v21, %v5404_v33  ;;  %v1414_v43 = vadd.f32 %v1366_v4, %v1155_v26  ;;  %v1305_v51 = vsel %vm1277_vm3, %v3970_v9, %v4285_v61  ;;  %v1170_v20 = vadd.f32 %v1122_v23, %v911_v38  ;;  %v5406_v33 = vld [vmem:[#allocation65_spill] sm:$0xff]  ;;  %v5407_v23 = vld [vmem:[#allocation66_spill] sm:$0xff] }
 0x238   : > { %v1094_v31 = vmul.f32 %v5401_v56, %v5405_v49  ;;  %1465 = vst [vmem:[%s4160_s29 + $0xd8] sm:$0xff] %v1417_v27  ;;  %v1375_v10 = vmul.f32 %v4078_v8, %v1305_v51  ;;  %v1304_v48 = vsel %vm1277_vm3, %v3983_v1, %v4293_v2  ;;  %v1167_v5 = vadd.f32 %v1119_v3, %v908_v6  ;;  %v5408_v27 = vld [vmem:[#allocation136_spill] sm:$0xff]  ;;  %v4319_v3 = vpop.permute.xlu1 %1239 }
 0x239   : > { %v4304_v26 = vadd.f32 %v1087_v12, %v5406_v33  ;;  %v4307_v36 = vadd.f32 %v1088_v57, %v3956_v15  ;;  %1462 = vst [vmem:[%s4160_s29 + $0xc0] sm:$0xff] %v1414_v43  ;;  %v1372_v38 = vmul.f32 %v4078_v8, %v1304_v48  ;;  %v4312_v4 = vadd.f32 %v1084_v40, %v5407_v23  ;;  %v5410_v12 = vld [vmem:[#allocation171_spill] sm:$0xff]  ;;  %v5414_v48 = vld [vmem:[#allocation137_spill] sm:$0xff] }
 0x23a   : > { %v4315_v11 = vadd.f32 %v1085_v14, %v3976_v41  ;;  %v1090_v51 = vmul.f32 %v5399_v21, %v5408_v27  ;;  %v1423_v6 = vadd.f32 %v1375_v10, %v1164_v39  ;;  %5409 = vst [vmem:[#allocation158_spill] sm:$0xff] %v4319_v3  ;;  %v4322_v49 = vadd.f32 %v1093_v25, %v5410_v12  ;;  %v5411_v15 = vld [vmem:[#allocation175_spill] sm:$0xff]  ;;  %v4330_v41 = vpop.permute.xlu0 %1237  ;;  %v5413_v39 = vld [vmem:[#allocation53_spill] sm:$0xff]  ;;  %v5416_v27 = vld [vmem:[#allocation54_spill] sm:$0xff] }
 0x23b   : > { %v1091_v57 = vmul.f32 %v5401_v56, %v5411_v15  ;;  %v1420_v43 = vadd.f32 %v1372_v38, %v1161_v37  ;;  %v1307_v14 = vsel %vm1277_vm3, %v4013_v42, %v4319_v3  ;;  %5412 = vst [vmem:[#allocation161_spill] sm:$0xff] %v4330_v41  ;;  %v4333_v40 = vadd.f32 %v1094_v31, %v4032_v63  ;;  %v5415_v38 = vld [vmem:[#allocation37_spill] sm:$0xff]  ;;  %v5418_v15 = vld [vmem:[#allocation19_spill] sm:$0xff]  ;;  %v5421_v3 = vld [vmem:[#allocation138_spill] sm:$0xff] }
 0x23c   : > { %v1099_v10 = vmul.f32 %v5399_v21, %v5413_v39  ;;  %1471 = vst [vmem:[%s4160_s29 + $0x108] sm:$0xff] %v1423_v6  ;;  %v1381_v25 = vmul.f32 %v4078_v8, %v1307_v14  ;;  %v1306_v37 = vsel %vm1277_vm3, %v4028_v44, %v4330_v41  ;;  %v1100_v33 = vmul.f32 %v5401_v56, %v5414_v48  ;;  %v5417_v6 = vld [vmem:[#allocation38_spill] sm:$0xff]  ;;  %v5419_v39 = vld [vmem:[#allocation139_spill] sm:$0xff]  ;;  %v4357_v41 = vpop.permute.xlu1 %1243 }
 0x23d   : > { %v1096_v23 = vmul.f32 %v5399_v21, %v5415_v38  ;;  %v1097_v63 = vmul.f32 %v5401_v56, %v5416_v27  ;;  %1468 = vst [vmem:[%s4160_s29 + $0xf0] sm:$0xff] %v1420_v43  ;;  %v1378_v31 = vmul.f32 %v4078_v8, %v1306_v37  ;;  %v1105_v12 = vmul.f32 %v5399_v21, %v5417_v6  ;;  %v5420_v38 = vld [vmem:[#allocation97_spill] sm:$0xff] }
 0x23e   : > { %v1106_v14 = vmul.f32 %v5401_v56, %v5418_v15  ;;  %v1102_v44 = vmul.f32 %v5399_v21, %v5419_v39  ;;  %v1429_v48 = vadd.f32 %v1381_v25, %v1170_v20  ;;  %v1138_v42 = vadd.f32 %v1090_v51, %v5420_v38  ;;  %v4366_v6 = vpop.permute.xlu0 %1241  ;;  %v5422_v39 = vld [vmem:[#allocation61_spill] sm:$0xff] }
 0x23f   : > { %v1103_v43 = vmul.f32 %v5401_v56, %v5421_v3  ;;  %v1426_v27 = vadd.f32 %v1378_v31, %v1167_v5  ;;  %v1309_v37 = vsel %vm1277_vm3, %v4051_v22, %v4357_v41  ;;  %v1139_v15 = vadd.f32 %v1091_v57, %v4037_v18  ;;  %v5423_v3 = vld [vmem:[#allocation114_spill] sm:$0xff] }
 0x240   : > { %v4370_v1 = vadd.f32 %v1099_v10, %v5422_v39  ;;  %1477 = vst [vmem:[%s4160_s29 + $0x138] sm:$0xff] %v1429_v48  ;;  %v1387_v20 = vmul.f32 %v4078_v8, %v1309_v37  ;;  %v1308_v5 = vsel %vm1277_vm3, %v4065_v55, %v4366_v6  ;;  %v4379_v51 = vadd.f32 %v1100_v33, %v4054_v19  ;;  %v5424_v19 = vld [vmem:[#allocation30_spill] sm:$0xff]  ;;  %v5428_v39 = vld [vmem:[#allocation23_spill] sm:$0xff] }
 0x241   : > { %v4382_v25 = vadd.f32 %v1096_v23, %v5423_v3  ;;  %v4385_v18 = vadd.f32 %v1097_v63, %v4060_v7  ;;  %1474 = vst [vmem:[%s4160_s29 + $0x120] sm:$0xff] %v1426_v27  ;;  %v1384_v57 = vmul.f32 %v4078_v8, %v1308_v5  ;;  %v4390_v10 = vadd.f32 %v1105_v12, %v3895_v29  ;;  %v1248_v23 = vpop.permute.xlu1 %1247  ;;  %v5425_v7 = vld [vmem:[#allocation31_spill] sm:$0xff] }
 0x242   : > { %v4393_v31 = vadd.f32 %v1106_v14, %v4068_v59  ;;  %v4396_v48 = vadd.f32 %v1102_v44, %v3898_v35  ;;  %v1435_v33 = vadd.f32 %v1387_v20, %v5424_v19  ;;  %v4400_v38 = vadd.f32 %v1103_v43, %v4084_v30  ;;  %v1246_v8 = vpop.permute.xlu0 %1245  ;;  %v5426_v14 = vld [vmem:[#allocation157_spill] sm:$0xff]  ;;  %v5427_v43 = vld [vmem:[#allocation115_spill] sm:$0xff] }
 0x243   : > { %v1432_v63 = vadd.f32 %v1384_v57, %v5425_v7  ;;  %v1279_v29 = vsel %vm1277_vm3, %v4104_v13, %v1248_v23  ;;  %v1311_v59 = vsel %vm1277_vm3, %v1248_v23, %v5356_v53  ;;  %v1278_v30 = vsel %vm1277_vm3, %v4119_v52, %v1246_v8  ;;  %v5429_v20 = vld [vmem:[#allocation55_spill] sm:$0xff] }
 0x244   : > { %1483 = vst [vmem:[%s4160_s29 + $0x168] sm:$0xff] %v1435_v33  ;;  %v1346_v35 = vmul.f32 %v4248_v45, %v1279_v29  ;;  %v1347_v44 = vmul.f32 %v4252_v62, %v1311_v59  ;;  %v1310_v12 = vsel %vm1277_vm3, %v1246_v8, %v5358_v58  ;;  %v1111_v13 = vmul.f32 %v5399_v21, %v5426_v14  ;;  %v5431_v59 = vld [vmem:[#allocation64_spill] sm:$0xff] }
 0x245   : > { %v1112_v53 = vmul.f32 %v5401_v56, %v5427_v43  ;;  %1480 = vst [vmem:[%s4160_s29 + $0x150] sm:$0xff] %v1432_v63  ;;  %v1343_v27 = vmul.f32 %v4248_v45, %v1278_v30  ;;  %v1344_v37 = vmul.f32 %v4252_v62, %v1310_v12  ;;  %v1108_v52 = vmul.f32 %v5399_v21, %v5428_v39  ;;  %v1252_v57 = vpop.permute.xlu1 %1251  ;;  %v5433_v30 = vld [vmem:[#allocation48_spill] sm:$0xff] }
 0x246   : > { %v1109_v5 = vmul.f32 %v5401_v56, %v5429_v20  ;;  %v1394_v58 = vadd.f32 %v1346_v35, %v4304_v26  ;;  %v1395_v3 = vadd.f32 %v1347_v44, %v4307_v36  ;;  %v1281_v23 = vsel %vm1277_vm3, %v4140_v47, %v1252_v57  ;;  %v1250_v63 = vpop.permute.xlu0 %1249  ;;  %v5430_v47 = vld [vmem:[#allocation62_spill] sm:$0xff]  ;;  %v5432_v44 = vld [vmem:[#allocation43_spill] sm:$0xff] }
 0x247   : > { %v1391_v19 = vadd.f32 %v1343_v27, %v4312_v4  ;;  %v1392_v33 = vadd.f32 %v1344_v37, %v4315_v11  ;;  %v1313_v7 = vsel %vm1277_vm3, %v1252_v57, %v5365_v0  ;;  %v1352_v26 = vmul.f32 %v4248_v45, %v1281_v23  ;;  %v5439_v23 = vld [vmem:[#allocation25_spill] sm:$0xff] }
 0x248   : > { %1442 = vst [vmem:[%s4160_s29 + $0x20] sm:$0xff] %v1394_v58  ;;  %1443 = vst [vmem:[%s4160_s29 + $0x28] sm:$0xff] %v1395_v3  ;;  %v1353_v36 = vmul.f32 %v4252_v62, %v1313_v7  ;;  %v1280_v4 = vsel %vm1277_vm3, %v4154_v32, %v1250_v63  ;;  %v1312_v11 = vsel %vm1277_vm3, %v1250_v63, %v5367_v54  ;;  %v5437_v58 = vld [vmem:[#allocation57_spill] sm:$0xff] }
 0x249   : > { %v4450_v29 = vadd.f32 %v1111_v13, %v5430_v47  ;;  %v4453_v0 = vadd.f32 %v1112_v53, %v5431_v59  ;;  %1439 = vst [vmem:[%s4160_s29 + $0x8] sm:$0xff] %v1391_v19  ;;  %1440 = vst [vmem:[%s4160_s29 + $0x10] sm:$0xff] %v1392_v33  ;;  %v1349_v8 = vmul.f32 %v4248_v45, %v1280_v4  ;;  %v1256_v13 = vpop.permute.xlu1 %1255  ;;  %v5438_v19 = vld [vmem:[#allocation41_spill] sm:$0xff] }
 0x24a   : > { %v1350_v35 = vmul.f32 %v4252_v62, %v1312_v11  ;;  %v4460_v32 = vadd.f32 %v1108_v52, %v5432_v44  ;;  %v4463_v12 = vadd.f32 %v1109_v5, %v5433_v30  ;;  %v1400_v54 = vadd.f32 %v1352_v26, %v4322_v49  ;;  %v1254_v39 = vpop.permute.xlu0 %1253  ;;  %v5441_v44 = vld [vmem:[#allocation83_spill] sm:$0xff] }
 0x24b   : > { %v1401_v14 = vadd.f32 %v1353_v36, %v4333_v40  ;;  %v1397_v43 = vadd.f32 %v1349_v8, %v1138_v42  ;;  %v1283_v27 = vsel %vm1277_vm3, %v4183_v24, %v1256_v13  ;;  %v1315_v37 = vsel %vm1277_vm3, %v1256_v13, %v5373_v17  ;;  %v5434_v40 = vld [vmem:[#allocation67_spill] sm:$0xff]  ;;  %v5436_v24 = vld [vmem:[#allocation24_spill] sm:$0xff] }
 0x24c   : > { %v1398_v53 = vadd.f32 %v1350_v35, %v1139_v15  ;;  %1448 = vst [vmem:[%s4160_s29 + $0x50] sm:$0xff] %v1400_v54  ;;  %v1358_v49 = vmul.f32 %v4248_v45, %v1283_v27  ;;  %v1359_v52 = vmul.f32 %v4252_v62, %v1315_v37  ;;  %v1282_v42 = vsel %vm1277_vm3, %v5434_v40, %v1254_v39  ;;  %v5435_v15 = vld [vmem:[#allocation113_spill] sm:$0xff] }
 0x24d   : > { %1449 = vst [vmem:[%s4160_s29 + $0x58] sm:$0xff] %v1401_v14  ;;  %v1314_v20 = vsel %vm1277_vm3, %v1254_v39, %v5435_v15  ;;  %v1117_v5 = vmul.f32 %v5399_v21, %v5436_v24  ;;  %v1118_v17 = vmul.f32 %v5401_v56, %v5437_v58  ;;  %1445 = vst [vmem:[%s4160_s29 + $0x38] sm:$0xff] %v1397_v43  ;;  %v1260_v36 = vpop.permute.xlu1 %1259  ;;  %v5442_v14 = vld [vmem:[#allocation174_spill] sm:$0xff]  ;;  %v5443_v39 = vld [vmem:[#allocation85_spill] sm:$0xff] }
 0x24e   : > { %1446 = vst [vmem:[%s4160_s29 + $0x40] sm:$0xff] %v1398_v53  ;;  %v1355_v3 = vmul.f32 %v4248_v45, %v1282_v42  ;;  %v1356_v57 = vmul.f32 %v4252_v62, %v1314_v20  ;;  %v1114_v33 = vmul.f32 %v5399_v21, %v5438_v19  ;;  %v1115_v7 = vmul.f32 %v5401_v56, %v5439_v23  ;;  %v1258_v8 = vpop.permute.xlu0 %1257  ;;  %v5445_v42 = vld [vmem:[#allocation69_spill] sm:$0xff]  ;;  %v5447_v20 = vld [vmem:[#allocation26_spill] sm:$0xff] }
 0x24f   : > { %v1406_v63 = vadd.f32 %v1358_v49, %v4370_v1  ;;  %v1407_v26 = vadd.f32 %v1359_v52, %v4379_v51  ;;  %v1285_v47 = vsel %vm1277_vm3, %v4213_v50, %v1260_v36  ;;  %v1317_v59 = vsel %vm1277_vm3, %v1260_v36, %v5384_v28  ;;  %v5440_v50 = vld [vmem:[#allocation131_spill] sm:$0xff]  ;;  %v5444_v52 = vld [vmem:[#allocation170_spill] sm:$0xff] }
 0x250   : > { %v1403_v4 = vadd.f32 %v1355_v3, %v4382_v25  ;;  %v1404_v11 = vadd.f32 %v1356_v57, %v4385_v18  ;;  %v1364_v1 = vmul.f32 %v4248_v45, %v1285_v47  ;;  %v1365_v51 = vmul.f32 %v4252_v62, %v1317_v59  ;;  %v5449_v57 = vld [vmem:[#allocation13_spill] sm:$0xff] }
 0x251   : > { %1454 = vst [vmem:[%s4160_s29 + $0x80] sm:$0xff] %v1406_v63  ;;  %1455 = vst [vmem:[%s4160_s29 + $0x88] sm:$0xff] %v1407_v26  ;;  %v1284_v25 = vsel %vm1277_vm3, %v4224_v60, %v1258_v8  ;;  %v1316_v18 = vsel %vm1277_vm3, %v1258_v8, %v5386_v34  ;;  %v1165_v35 = vadd.f32 %v1117_v5, %v5440_v50  ;;  %v1264_v53 = vpop.permute.xlu1 %1263  ;;  %v5448_v5 = vld [vmem:[#allocation58_spill] sm:$0xff] }
 0x252   : > { %v1166_v28 = vadd.f32 %v1118_v17, %v5441_v44  ;;  %1451 = vst [vmem:[%s4160_s29 + $0x68] sm:$0xff] %v1403_v4  ;;  %1452 = vst [vmem:[%s4160_s29 + $0x70] sm:$0xff] %v1404_v11  ;;  %v1361_v30 = vmul.f32 %v4248_v45, %v1284_v25  ;;  %v1362_v54 = vmul.f32 %v4252_v62, %v1316_v18  ;;  %v5454_v18 = vld [vmem:[#allocation46_spill] sm:$0xff]  ;;  %v5455_v44 = vld [vmem:[#allocation119_spill] sm:$0xff] }
 0x253   : > { %v1162_v13 = vadd.f32 %v1114_v33, %v5442_v14  ;;  %v1163_v60 = vadd.f32 %v1115_v7, %v4210_v46  ;;  %v1412_v43 = vadd.f32 %v1364_v1, %v4390_v10  ;;  %v1413_v34 = vadd.f32 %v1365_v51, %v4393_v31  ;;  %v1262_v46 = vpop.permute.xlu0 %1261  ;;  %v5450_v33 = vld [vmem:[#allocation118_spill] sm:$0xff]  ;;  %v5453_v1 = vld [vmem:[#allocation84_spill] sm:$0xff] }
 0x254   : > { %v1409_v27 = vadd.f32 %v1361_v30, %v4396_v48  ;;  %v1410_v37 = vadd.f32 %v1362_v54, %v4400_v38  ;;  %v1287_v49 = vsel %vm1277_vm3, %v5443_v39, %v1264_v53  ;;  %v1319_v40 = vsel %vm1277_vm3, %v1264_v53, %v5444_v52  ;;  %v5446_v38 = vld [vmem:[#allocation156_spill] sm:$0xff]  ;;  %v5456_v53 = vld [vmem:[#allocation158_spill] sm:$0xff]  ;;  %v5458_v52 = vld [vmem:[#allocation161_spill] sm:$0xff] }
 0x255   : > { %1460 = vst [vmem:[%s4160_s29 + $0xb0] sm:$0xff] %v1412_v43  ;;  %1461 = vst [vmem:[%s4160_s29 + $0xb8] sm:$0xff] %v1413_v34  ;;  %v1370_v10 = vmul.f32 %v4248_v45, %v1287_v49  ;;  %v1371_v31 = vmul.f32 %v4252_v62, %v1319_v40  ;;  %v1286_v48 = vsel %vm1277_vm3, %v5445_v42, %v1262_v46  ;;  %v1268_v26 = vpop.permute.xlu1 %1267 }
 0x256   : > { %v1318_v15 = vsel %vm1277_vm3, %v1262_v46, %v5446_v38  ;;  %v1123_v24 = vmul.f32 %v5399_v21, %v5447_v20  ;;  %v1124_v58 = vmul.f32 %v5401_v56, %v5448_v5  ;;  %1457 = vst [vmem:[%s4160_s29 + $0x98] sm:$0xff] %v1409_v27  ;;  %1458 = vst [vmem:[%s4160_s29 + $0xa0] sm:$0xff] %v1410_v37  ;;  %v5457_v37 = vld [vmem:[#allocation47_spill] sm:$0xff]  ;;  %v5460_v46 = vld [vmem:[#allocation68_spill] sm:$0xff] }
 0x257   : > { %v1367_v17 = vmul.f32 %v4248_v45, %v1286_v48  ;;  %v1368_v3 = vmul.f32 %v4252_v62, %v1318_v15  ;;  %v1120_v19 = vmul.f32 %v5399_v21, %v5449_v57  ;;  %v1121_v23 = vmul.f32 %v5401_v56, %v5450_v33  ;;  %v1266_v56 = vpop.permute.xlu0 %1265  ;;  %v5462_v15 = vld [vmem:[#allocation176_spill] sm:$0xff]  ;;  %v5463_v20 = vld [vmem:[#allocation63_spill] sm:$0xff]  ;;  %v5464_v5 = vld [vmem:[#allocation21_spill] sm:$0xff] }
 0x258   : > { %v1418_v7 = vadd.f32 %v1370_v10, %v4450_v29  ;;  %v1419_v63 = vadd.f32 %v1371_v31, %v4453_v0  ;;  %v1289_v11 = vsel %vm1277_vm3, %v4285_v61, %v1268_v26  ;;  %v1321_v47 = vsel %vm1277_vm3, %v1268_v26, %v3970_v9  ;;  %v5452_v61 = vld [vmem:[#allocation133_spill] sm:$0xff] }
 0x259   : > { %v1415_v36 = vadd.f32 %v1367_v17, %v4460_v32  ;;  %v1416_v4 = vadd.f32 %v1368_v3, %v4463_v12  ;;  %v1376_v29 = vmul.f32 %v4248_v45, %v1289_v11  ;;  %v1377_v0 = vmul.f32 %v4252_v62, %v1321_v47  ;;  %v5451_v12 = vld [vmem:[#allocation125_spill] sm:$0xff]  ;;  %v1272_v14 = vpop.permute.xlu1 %1271 }
 0x25a   : > { %1466 = vst [vmem:[%s4160_s29 + $0xe0] sm:$0xff] %v1418_v7  ;;  %1467 = vst [vmem:[%s4160_s29 + $0xe8] sm:$0xff] %v1419_v63  ;;  %v1288_v32 = vsel %vm1277_vm3, %v4293_v2, %v1266_v56  ;;  %v1320_v59 = vsel %vm1277_vm3, %v1266_v56, %v5451_v12  ;;  %v1171_v8 = vadd.f32 %v1123_v24, %v5452_v61  ;;  %v5461_v31 = vld [vmem:[#allocation141_spill] sm:$0xff]  ;;  %v5465_v56 = vld [vmem:[#allocation143_spill] sm:$0xff] }
 0x25b   : > { %v1172_v9 = vadd.f32 %v1124_v58, %v5453_v1  ;;  %1463 = vst [vmem:[%s4160_s29 + $0xc8] sm:$0xff] %v1415_v36  ;;  %1464 = vst [vmem:[%s4160_s29 + $0xd0] sm:$0xff] %v1416_v4  ;;  %v1373_v51 = vmul.f32 %v4248_v45, %v1288_v32  ;;  %v1374_v25 = vmul.f32 %v4252_v62, %v1320_v59  ;;  %v1270_v49 = vpop.permute.xlu0 %1269 }
 0x25c   : > { %v1168_v50 = vadd.f32 %v1120_v19, %v5454_v18  ;;  %v1129_v2 = vmul.f32 %v5399_v21, %v5455_v44  ;;  %v1424_v30 = vadd.f32 %v1376_v29, %v1165_v35  ;;  %v1425_v54 = vadd.f32 %v1377_v0, %v1166_v28 }
 0x25d   : > { %v1421_v43 = vadd.f32 %v1373_v51, %v1162_v13  ;;  %v1422_v34 = vadd.f32 %v1374_v25, %v1163_v60  ;;  %v1291_v27 = vsel %vm1277_vm3, %v5456_v53, %v1272_v14  ;;  %v1323_v39 = vsel %vm1277_vm3, %v1272_v14, %v5457_v37  ;;  %v5459_v60 = vld [vmem:[#allocation32_spill] sm:$0xff]  ;;  %v1276_v57 = vpop.permute.xlu1 %1275 }
 0x25e   : > { %1472 = vst [vmem:[%s4160_s29 + $0x110] sm:$0xff] %v1424_v30  ;;  %1473 = vst [vmem:[%s4160_s29 + $0x118] sm:$0xff] %v1425_v54  ;;  %v1382_v35 = vmul.f32 %v4248_v45, %v1291_v27  ;;  %v1383_v28 = vmul.f32 %v4252_v62, %v1323_v39  ;;  %v1290_v13 = vsel %vm1277_vm3, %v5458_v52, %v1270_v49 }
 0x25f   : > { %v1322_v40 = vsel %vm1277_vm3, %v1270_v49, %v5459_v60  ;;  %v1169_v10 = vadd.f32 %v1121_v23, %v5460_v46  ;;  %v1126_v42 = vmul.f32 %v5399_v21, %v5461_v31  ;;  %1469 = vst [vmem:[%s4160_s29 + $0xf8] sm:$0xff] %v1421_v43  ;;  %1470 = vst [vmem:[%s4160_s29 + $0x100] sm:$0xff] %v1422_v34  ;;  %v1274_v7 = vpop.permute.xlu0 %1273 }
 0x260   : > { %v1379_v48 = vmul.f32 %v4248_v45, %v1290_v13  ;;  %v1380_v38 = vmul.f32 %v4252_v62, %v1322_v40  ;;  %v915_v24 = vadd.f32 %v5463_v20, %v5462_v15  ;;  %v1177_v58 = vadd.f32 %v1129_v2, %v5464_v5 }
 0x261   : > { %v1430_v17 = vadd.f32 %v1382_v35, %v1171_v8  ;;  %v1431_v3 = vadd.f32 %v1383_v28, %v1172_v9  ;;  %v1293_v33 = vsel %vm1277_vm3, %v4357_v41, %v1276_v57  ;;  %v1325_v23 = vsel %vm1277_vm3, %v1276_v57, %v4051_v22 }
 0x262   : > { %v1427_v21 = vadd.f32 %v1379_v48, %v1168_v50  ;;  %v1428_v19 = vadd.f32 %v1380_v38, %v1169_v10  ;;  %v1388_v63 = vmul.f32 %v4248_v45, %v1293_v33  ;;  %v1389_v26 = vmul.f32 %v4252_v62, %v1325_v23 }
 0x263   : > { %1478 = vst [vmem:[%s4160_s29 + $0x140] sm:$0xff] %v1430_v17  ;;  %1479 = vst [vmem:[%s4160_s29 + $0x148] sm:$0xff] %v1431_v3  ;;  %v1292_v36 = vsel %vm1277_vm3, %v4366_v6, %v1274_v7  ;;  %v1324_v22 = vsel %vm1277_vm3, %v1274_v7, %v4065_v55  ;;  %v1174_v41 = vadd.f32 %v1126_v42, %v915_v24  ;;  %v5466_v55 = vld [vmem:[#allocation145_spill] sm:$0xff] }
 0x264   : > { %1475 = vst [vmem:[%s4160_s29 + $0x128] sm:$0xff] %v1427_v21  ;;  %1476 = vst [vmem:[%s4160_s29 + $0x130] sm:$0xff] %v1428_v19  ;;  %v1385_v4 = vmul.f32 %v4248_v45, %v1292_v36  ;;  %v1386_v11 = vmul.f32 %v4252_v62, %v1324_v22  ;;  %v1436_v47 = vadd.f32 %v1388_v63, %v1177_v58 }
 0x265   : > { %v1437_v29 = vadd.f32 %v1389_v26, %v5465_v56 }
 0x266   : > { %v1433_v16 = vadd.f32 %v1385_v4, %v1174_v41  ;;  %v1434_v6 = vadd.f32 %v1386_v11, %v5466_v55  ;;  %1484 = vst [vmem:[%s4160_s29 + $0x170] sm:$0xff] %v1436_v47 }
 0x267   : > { %1485 = vst [vmem:[%s4160_s29 + $0x178] sm:$0xff] %v1437_v29 }
 0x268   : > { %1481 = vst [vmem:[%s4160_s29 + $0x158] sm:$0xff] %v1433_v16  ;;  %1482 = vst [vmem:[%s4160_s29 + $0x160] sm:$0xff] %v1434_v6 }
 0x269   : > { %1785 = shalt.err (!%p1782_p4)
}
 0x26a   : > { %s1786_s25 = scalar_lea.hbm %s4636_s15, 6144  ;;  %s1790_s16 = scalar_lea.hbm %s4693_s2, 49152 }
 0x26b   : > { %p1787_p9 = scmp.ne.s32.totalorder %s4636_s15, %s1786_s25  ;;  %p1791_p3 = scmp.lt.u32.totalorder %s4636_s15, %s4693_s2 }
 0x26c   : > { %p1792_p5 = scmp.lt.u32.totalorder %s1790_s16, %s1786_s25  ;;  %p1794_p13 = scmp.lt.u32.totalorder %s1786_s25, %s4636_s15 }
 0x26d   : > { %p1788_p11 = pnand %p1787_p9, %p5467_p2 }
 0x26e   : > { %p1793_p8 = por %p1792_p5, %p1791_p3 }
 0x26f   : > { %p1789_p1 = pneg %p1788_p11 }
 0x270   : > { %p1795_p10 = por %p1794_p13, %p1793_p8 }
 0x272   : > { %p1796_p12 = pnand %p1795_p10, %p1789_p1 }
 0x274   : > { %1799 = shalt.err (!%p1796_p12)
}
 0x275   : > { %s1869_s3 = smov 384   ;;  %s1870_s29 = smov 24  }
 0x276   : > { %1639 = dma.vmem_to_hbm [thread:$0]  (%p5467_p2), %s4638_s7, 6144, %s4636_s15, %s1487_s18, %s1869_s3, %s1869_s3, %s1870_s29  }
 0x277 PF: > { %p1653_p6 = scmp.ge.s32.totalorder %s1858_s14, 2  ;;  %s1518_s30 = sand.u32 1, %s1838_s9  }
 0x278   : > { %p5468_p7 = scmp.ne.s32.totalorder %s4857_s24, 0  ;;  %s1519_s12 = scalar_lea.sflag [#allocation4], %s1518_s30 }
 0x27a   : > { %p1649_p0 = pnand %p1653_p6, %p5468_p7 }
 0x27c   : > { %1833 = dma.done.wait (!%p1649_p0), %s1519_s12, 6144  }
 0x27d   : > { %1835 = vsyncadd (!%p1649_p0), %s1519_s12, 4294961152  ;;  %s21_s14 = sadd.s32 1, %s1858_s14   ;;  %s5469_s9 = smov %s1842_s10 }
 0x27e   : > { %p18_p4 = scmp.ge.s32.totalorder %s21_s14, 10   ;;  %s5470_s10 = smov %s1846_s11 }
 0x27f   : > { %s5471_s11 = smov %s1942_s23  ;;  %s5472_s12 = smov %s1854_s13 }
 0x280   : > { %s5473_s13 = smov %s5475_s17  ;;  %20 = sbr.rel (!%p18_p4) target bundleno = 8 (0x8), region = 91 }
 0x287   :  { %1524 = vsyncpa [#allocation3], 1 }
 0x288   :  { %1526 = vsyncpa [#allocation3 + $0x1], 1 }
 0x289   :  { %1527 = vsyncpa [#allocation6], 1 }
 0x28a   :  { %1529 = vsyncpa [#allocation6 + $0x1], 1 }
 0x28b   :  { %1530 = vsyncpa [#allocation4], 1 }
 0x28c   :  { %1532 = vsyncpa [#allocation4 + $0x1], 1 }

</bundles_post_ra>
